<compile_context>
chip_gen: v7x
topology: tpu7x:2x2x1
jax: 0.10.0
libtpu: 0.0.40
codegen_flags: <defaults>
</compile_context>

<pallas_src>
import functools

import jax
import jax.numpy as jnp
from jax.experimental import pallas as pl
from jax.experimental.pallas import tpu as pltpu


HIDDEN = 750        # hidden width of the original module (nn.Linear(..., 750))
HIDDEN_PAD = 768    # padded to a multiple of 128 lanes
OUT_PAD = 128       # lane-dense packed-output width


# --------------------------------------------------------------------------- #
# Kernel
# --------------------------------------------------------------------------- #
def _vae_kernel(x_ref,
                we1_ref, be1_ref,
                we2_ref, be2_ref,
                wh_ref, bh_ref,
                wd1_ref, bd1_ref,
                wd2_ref, bd2_ref,
                wd3_ref, bd3_ref,
                out_ref,
                *, state_dim, action_dim, latent_dim):
    f32 = jnp.float32
    bf16 = jnp.bfloat16

    # One activation slab per tile: [state | action | eps]  (static slices).
    x = x_ref[...]
    sa = x[:, : state_dim + action_dim]                         # encoder input
    st = x[:, :state_dim]                                       # decoder state
    eps = x[:, state_dim + action_dim:
               state_dim + action_dim + latent_dim]             # N(0,1) noise

    # ----- encoder -----
    # h = relu(e1([state, action]))            (f32, tiny K)
    h = jnp.dot(sa, we1_ref[...], preferred_element_type=f32) + be1_ref[...]
    h = jnp.maximum(h, 0.0)

    # h = relu(e2(h))    bf16 x bf16 MXU, f32 accumulate (weight stays bf16).
    h = jnp.dot(h.astype(bf16), we2_ref[...],
                preferred_element_type=f32) + be2_ref[...]
    h = jnp.maximum(h, 0.0)

    # Fused mean / log_std head (f32 for precision of std = exp(log_std)).
    ms = jnp.dot(h, wh_ref[...], preferred_element_type=f32) + bh_ref[...]
    mean = ms[:, :latent_dim]
    log_std = jnp.clip(ms[:, latent_dim:2 * latent_dim], -4.0, 15.0)
    std = jnp.exp(log_std)

    # Reparameterize: z = mean + std * eps
    z = mean + std * eps

    # ----- decoder -----
    # a = relu(d1([state, z]))   -- single fused matmul (K = state+latent).
    sz = jnp.concatenate([st, z], axis=1)
    a = jnp.dot(sz, wd1_ref[...], preferred_element_type=f32) + bd1_ref[...]
    a = jnp.maximum(a, 0.0)

    # a = relu(d2(a))    bf16 x bf16 MXU, f32 accumulate.
    a = jnp.dot(a.astype(bf16), wd2_ref[...],
                preferred_element_type=f32) + bd2_ref[...]
    a = jnp.maximum(a, 0.0)

    # u = tanh(d3(a))    (f32)
    u = jnp.tanh(jnp.dot(a, wd3_ref[...], preferred_element_type=f32)
                 + bd3_ref[...])

    # Pack (u, mean, std) + zero tail into one lane-dense (TILE_B, 128) slab
    # and write it back with a single unmasked dense store.
    tb = out_ref.shape[0]
    tail = jnp.zeros((tb, OUT_PAD - (action_dim + 2 * latent_dim)), f32)
    out_ref[...] = jnp.concatenate([u, mean, std, tail], axis=1)


# --------------------------------------------------------------------------- #
# Parameters
# --------------------------------------------------------------------------- #
def init_vae_params(key, state_dim, action_dim, latent_dim):
    """PyTorch nn.Linear-style init (U[-1/sqrt(fan_in), +1/sqrt(fan_in)])."""
    def linear(k, fan_in, fan_out):
        kw, kb = jax.random.split(k)
        bound = 1.0 / jnp.sqrt(jnp.float32(fan_in))
        w = jax.random.uniform(kw, (fan_in, fan_out), jnp.float32, -bound, bound)
        b = jax.random.uniform(kb, (1, fan_out), jnp.float32, -bound, bound)
        return w, b

    keys = jax.random.split(key, 7)
    p = {}
    p["e1_w"], p["e1_b"] = linear(keys[0], state_dim + action_dim, HIDDEN)
    p["e2_w"], p["e2_b"] = linear(keys[1], HIDDEN, HIDDEN)
    p["mean_w"], p["mean_b"] = linear(keys[2], HIDDEN, latent_dim)
    p["ls_w"], p["ls_b"] = linear(keys[3], HIDDEN, latent_dim)
    p["d1_w"], p["d1_b"] = linear(keys[4], state_dim + latent_dim, HIDDEN)
    p["d2_w"], p["d2_b"] = linear(keys[5], HIDDEN, HIDDEN)
    p["d3_w"], p["d3_b"] = linear(keys[6], HIDDEN, action_dim)
    return p


def pack_vae_params(params):
    """Pad hidden 750->768, fuse the mean/log_std heads, cast the two big
    768x768 weights to bf16.  Call ONCE at init; pass the result to every
    vae_forward call (hoisted out of the per-step path)."""
    f32, bf16 = jnp.float32, jnp.bfloat16
    hp = HIDDEN_PAD

    def pad_c(w):  # pad last dim (columns) to HIDDEN_PAD
        return jnp.pad(w, ((0, 0), (0, hp - w.shape[1])))

    def pad_r(w):  # pad first dim (rows) to HIDDEN_PAD
        return jnp.pad(w, ((0, hp - w.shape[0]), (0, 0)))

    return {
        "we1": pad_c(params["e1_w"]).astype(f32),
        "be1": pad_c(params["e1_b"]).astype(f32),
        "we2": pad_r(pad_c(params["e2_w"])).astype(bf16),
        "be2": pad_c(params["e2_b"]).astype(f32),
        "wh": pad_r(jnp.concatenate([params["mean_w"], params["ls_w"]],
                                    axis=1)).astype(f32),
        "bh": jnp.concatenate([params["mean_b"], params["ls_b"]],
                              axis=1).astype(f32),
        "wd1": pad_c(params["d1_w"]).astype(f32),       # (state+latent, 768)
        "bd1": pad_c(params["d1_b"]).astype(f32),
        "wd2": pad_r(pad_c(params["d2_w"])).astype(bf16),
        "bd2": pad_c(params["d2_b"]).astype(f32),
        "wd3": pad_r(params["d3_w"]).astype(f32),
        "bd3": params["d3_b"].astype(f32),
    }


# --------------------------------------------------------------------------- #
# Wrapper
# --------------------------------------------------------------------------- #
def vae_forward(packed, state, action, eps, *, tile_b=256):
    """packed = pack_vae_params(params) (precomputed once)."""
    B, state_dim = state.shape
    action_dim = action.shape[1]
    latent_dim = eps.shape[1]
    assert action_dim + 2 * latent_dim <= OUT_PAD

    # Clamp the tile to the (8-aligned) batch so tiny batches aren't padded to
    # 256 rows.  For v7x pick B >= 2*tile_b so both TensorCores get blocks.
    tile_b = max(8, min(tile_b, ((B + 7) // 8) * 8))
    n_blocks = pl.cdiv(B, tile_b)
    b_pad = n_blocks * tile_b

    # One activation slab -> one input DMA per batch tile.
    x = jnp.concatenate([state, action, eps], axis=1).astype(jnp.float32)
    if b_pad != B:
        x = jnp.pad(x, ((0, b_pad - B), (0, 0)))
    f_in = x.shape[1]

    weight_order = ["we1", "be1", "we2", "be2", "wh", "bh",
                    "wd1", "bd1", "wd2", "bd2", "wd3", "bd3"]
    weights = [packed[k] for k in weight_order]

    in_specs = ([pl.BlockSpec((tile_b, f_in), lambda i: (i, 0))]
                + [pl.BlockSpec(w.shape, lambda i: (0, 0))  # VMEM-resident
                   for w in weights])

    kernel = functools.partial(_vae_kernel, state_dim=state_dim,
                               action_dim=action_dim, latent_dim=latent_dim)

    packed_out = pl.pallas_call(
        kernel,
        out_shape=jax.ShapeDtypeStruct((b_pad, OUT_PAD), jnp.float32),
        grid=(n_blocks,),
        in_specs=in_specs,
        out_specs=pl.BlockSpec((tile_b, OUT_PAD), lambda i: (i, 0)),
        compiler_params=pltpu.CompilerParams(
            dimension_semantics=("parallel",),   # v7x: batch tiles across 2 TCs
            vmem_limit_bytes=32 << 20,           # legal on v5e/v6e/v7x
        ),
    )(x, *weights)

    u = packed_out[:B, 0:action_dim]
    mean = packed_out[:B, action_dim:action_dim + latent_dim]
    std = packed_out[:B, action_dim + latent_dim:action_dim + 2 * latent_dim]
    return u, mean, std


# --------------------------------------------------------------------------- #
# Pure-JAX reference
# --------------------------------------------------------------------------- #
def vae_forward_ref(params, state, action, eps, *, bf16_hidden=False):
    """Reference forward.  bf16_hidden=True mimics the kernel's accepted
    approximation (bf16 x bf16, f32-accumulate for the two 768x768 layers)."""
    f32, bf16 = jnp.float32, jnp.bfloat16
    hi = jax.lax.Precision.HIGHEST

    def big_mm(xv, w):
        if bf16_hidden:
            return jnp.dot(xv.astype(bf16), w.astype(bf16),
                           preferred_element_type=f32)
        return jnp.dot(xv, w, precision=hi)

    sa = jnp.concatenate([state, action], axis=1)
    h = jax.nn.relu(jnp.dot(sa, params["e1_w"], precision=hi) + params["e1_b"])
    h = jax.nn.relu(big_mm(h, params["e2_w"]) + params["e2_b"])
    mean = jnp.dot(h, params["mean_w"], precision=hi) + params["mean_b"]
    log_std = jnp.clip(jnp.dot(h, params["ls_w"], precision=hi) + params["ls_b"],
                       -4.0, 15.0)
    std = jnp.exp(log_std)
    z = mean + std * eps
    sz = jnp.concatenate([state, z], axis=1)
    a = jax.nn.relu(jnp.dot(sz, params["d1_w"], precision=hi) + params["d1_b"])
    a = jax.nn.relu(big_mm(a, params["d2_w"]) + params["d2_b"])
    u = jnp.tanh(jnp.dot(a, params["d3_w"], precision=hi) + params["d3_b"])
    return u, mean, std


# --------------------------------------------------------------------------- #
if __name__ == "__main__":
    state_dim, action_dim, latent_dim = 16, 8, 4
    batch = 2

    key = jax.random.PRNGKey(0)
    k_param, k_state, k_action, k_eps = jax.random.split(key, 4)

    params = init_vae_params(k_param, state_dim, action_dim, latent_dim)
    packed_params = pack_vae_params(params)   # hoisted: done once at init

    state = jax.random.normal(k_state, (batch, state_dim), jnp.float32)
    action = jax.random.normal(k_action, (batch, action_dim), jnp.float32)
    eps = jax.random.normal(k_eps, (batch, latent_dim), jnp.float32)

    u, mean, std = vae_forward(packed_params, state, action, eps)
    jax.block_until_ready((u, mean, std))

    # Compare against a reference that uses the same bf16 approximation for
    # the two 768x768 layers (isolates kernel correctness).
    u_r, mean_r, std_r = vae_forward_ref(params, state, action, eps,
                                         bf16_hidden=True)

    assert u.shape == (batch, action_dim)
    assert mean.shape == (batch, latent_dim)
    assert std.shape == (batch, latent_dim)
    assert jnp.allclose(u, u_r, atol=5e-3, rtol=5e-3)
    assert jnp.allclose(mean, mean_r, atol=5e-3, rtol=5e-3)
    assert jnp.allclose(std, std_r, atol=5e-3, rtol=5e-3)

    print("KERNEL_OK")
</pallas_src>

<mosaic_0001>
module attributes {stable_mosaic.version = 11 : i64} {
  func.func @_vae_kernel(%arg0: i32, %arg1: memref<8x28xf32, #tpu.memory_space<vmem>>, %arg2: memref<24x768xf32, #tpu.memory_space<vmem>>, %arg3: memref<1x768xf32, #tpu.memory_space<vmem>>, %arg4: memref<768x768xbf16, #tpu.memory_space<vmem>>, %arg5: memref<1x768xf32, #tpu.memory_space<vmem>>, %arg6: memref<768x8xf32, #tpu.memory_space<vmem>>, %arg7: memref<1x8xf32, #tpu.memory_space<vmem>>, %arg8: memref<20x768xf32, #tpu.memory_space<vmem>>, %arg9: memref<1x768xf32, #tpu.memory_space<vmem>>, %arg10: memref<768x768xbf16, #tpu.memory_space<vmem>>, %arg11: memref<1x768xf32, #tpu.memory_space<vmem>>, %arg12: memref<768x8xf32, #tpu.memory_space<vmem>>, %arg13: memref<1x8xf32, #tpu.memory_space<vmem>>, %arg14: memref<8x128xf32, #tpu.memory_space<vmem>>) attributes {dimension_semantics = [#tpu.dimension_semantics<parallel>], iteration_bounds = array<i64: 1>, scalar_prefetch = 0 : i64, scratch_operands = 0 : i64, tpu.core_type = #tpu.core_type<tc>, window_params = [{transform_indices = @transform_0, window_bounds = array<i64: 8, 28>}, {pipeline_mode = #tpu.pipeline_mode<synchronous>, transform_indices = @transform_1, window_bounds = array<i64: 24, 768>}, {pipeline_mode = #tpu.pipeline_mode<synchronous>, transform_indices = @transform_2, window_bounds = array<i64: 1, 768>}, {pipeline_mode = #tpu.pipeline_mode<synchronous>, transform_indices = @transform_3, window_bounds = array<i64: 768, 768>}, {pipeline_mode = #tpu.pipeline_mode<synchronous>, transform_indices = @transform_4, window_bounds = array<i64: 1, 768>}, {pipeline_mode = #tpu.pipeline_mode<synchronous>, transform_indices = @transform_5, window_bounds = array<i64: 768, 8>}, {pipeline_mode = #tpu.pipeline_mode<synchronous>, transform_indices = @transform_6, window_bounds = array<i64: 1, 8>}, {pipeline_mode = #tpu.pipeline_mode<synchronous>, transform_indices = @transform_7, window_bounds = array<i64: 20, 768>}, {pipeline_mode = #tpu.pipeline_mode<synchronous>, transform_indices = @transform_8, window_bounds = array<i64: 1, 768>}, {pipeline_mode = #tpu.pipeline_mode<synchronous>, transform_indices = @transform_9, window_bounds = array<i64: 768, 768>}, {pipeline_mode = #tpu.pipeline_mode<synchronous>, transform_indices = @transform_10, window_bounds = array<i64: 1, 768>}, {pipeline_mode = #tpu.pipeline_mode<synchronous>, transform_indices = @transform_11, window_bounds = array<i64: 768, 8>}, {pipeline_mode = #tpu.pipeline_mode<synchronous>, transform_indices = @transform_12, window_bounds = array<i64: 1, 8>}, {transform_indices = @transform_13, window_bounds = array<i64: 8, 128>}]} {
    %c0 = arith.constant 0 : index
    %c0_0 = arith.constant 0 : index
    %0 = vector.load %arg1[%c0, %c0_0] : memref<8x28xf32, #tpu.memory_space<vmem>>, vector<8x28xf32>
    %1 = vector.extract_strided_slice %0 {offsets = [0, 0], sizes = [8, 24], strides = [1, 1]} : vector<8x28xf32> to vector<8x24xf32>
    %2 = vector.extract_strided_slice %0 {offsets = [0, 0], sizes = [8, 16], strides = [1, 1]} : vector<8x28xf32> to vector<8x16xf32>
    %3 = vector.extract_strided_slice %0 {offsets = [0, 24], sizes = [8, 4], strides = [1, 1]} : vector<8x28xf32> to vector<8x4xf32>
    %c0_1 = arith.constant 0 : index
    %c0_2 = arith.constant 0 : index
    %4 = vector.load %arg2[%c0_1, %c0_2] : memref<24x768xf32, #tpu.memory_space<vmem>>, vector<24x768xf32>
    %cst = arith.constant dense<0.000000e+00> : vector<8x768xf32>
    %5 = tpu.matmul %1, %4, %cst {dimension_numbers = #tpu.dot_dimension_numbers<[1], [0], [0], [1], [0, 0, 1, 1], [], []>} : vector<8x24xf32>, vector<24x768xf32>, vector<8x768xf32> -> vector<8x768xf32>
    %c0_3 = arith.constant 0 : index
    %c0_4 = arith.constant 0 : index
    %6 = vector.load %arg3[%c0_3, %c0_4] : memref<1x768xf32, #tpu.memory_space<vmem>>, vector<1x768xf32>
    %7 = vector.broadcast %6 : vector<1x768xf32> to vector<8x768xf32>
    %8 = arith.addf %5, %7 : vector<8x768xf32>
    %cst_5 = arith.constant 0.000000e+00 : f32
    %9 = vector.broadcast %cst_5 : f32 to vector<8x768xf32>
    %10 = arith.maximumf %8, %9 : vector<8x768xf32>
    %11 = arith.truncf %10 : vector<8x768xf32> to vector<8x768xbf16>
    %c0_6 = arith.constant 0 : index
    %c0_7 = arith.constant 0 : index
    %12 = vector.load %arg4[%c0_6, %c0_7] : memref<768x768xbf16, #tpu.memory_space<vmem>>, vector<768x768xbf16>
    %cst_8 = arith.constant dense<0.000000e+00> : vector<8x768xf32>
    %13 = tpu.matmul %11, %12, %cst_8 {dimension_numbers = #tpu.dot_dimension_numbers<[1], [0], [0], [1], [0, 0, 1, 1], [], []>} : vector<8x768xbf16>, vector<768x768xbf16>, vector<8x768xf32> -> vector<8x768xf32>
    %c0_9 = arith.constant 0 : index
    %c0_10 = arith.constant 0 : index
    %14 = vector.load %arg5[%c0_9, %c0_10] : memref<1x768xf32, #tpu.memory_space<vmem>>, vector<1x768xf32>
    %15 = vector.broadcast %14 : vector<1x768xf32> to vector<8x768xf32>
    %16 = arith.addf %13, %15 : vector<8x768xf32>
    %cst_11 = arith.constant 0.000000e+00 : f32
    %17 = vector.broadcast %cst_11 : f32 to vector<8x768xf32>
    %18 = arith.maximumf %16, %17 : vector<8x768xf32>
    %c0_12 = arith.constant 0 : index
    %c0_13 = arith.constant 0 : index
    %19 = vector.load %arg6[%c0_12, %c0_13] : memref<768x8xf32, #tpu.memory_space<vmem>>, vector<768x8xf32>
    %cst_14 = arith.constant dense<0.000000e+00> : vector<8x8xf32>
    %20 = tpu.matmul %18, %19, %cst_14 {dimension_numbers = #tpu.dot_dimension_numbers<[1], [0], [0], [1], [0, 0, 1, 1], [], []>} : vector<8x768xf32>, vector<768x8xf32>, vector<8x8xf32> -> vector<8x8xf32>
    %c0_15 = arith.constant 0 : index
    %c0_16 = arith.constant 0 : index
    %21 = vector.load %arg7[%c0_15, %c0_16] : memref<1x8xf32, #tpu.memory_space<vmem>>, vector<1x8xf32>
    %22 = vector.broadcast %21 : vector<1x8xf32> to vector<8x8xf32>
    %23 = arith.addf %20, %22 : vector<8x8xf32>
    %24 = vector.extract_strided_slice %23 {offsets = [0, 0], sizes = [8, 4], strides = [1, 1]} : vector<8x8xf32> to vector<8x4xf32>
    %25 = vector.extract_strided_slice %23 {offsets = [0, 4], sizes = [8, 4], strides = [1, 1]} : vector<8x8xf32> to vector<8x4xf32>
    %cst_17 = arith.constant -4.000000e+00 : f32
    %cst_18 = arith.constant 1.500000e+01 : f32
    %26 = vector.broadcast %cst_17 : f32 to vector<8x4xf32>
    %27 = arith.maximumf %26, %25 : vector<8x4xf32>
    %28 = vector.broadcast %cst_18 : f32 to vector<8x4xf32>
    %29 = arith.minimumf %28, %27 : vector<8x4xf32>
    %30 = math.exp %29 : vector<8x4xf32>
    %31 = arith.mulf %30, %3 : vector<8x4xf32>
    %32 = arith.addf %24, %31 : vector<8x4xf32>
    %33 = tpu.concatenate %2, %32 in 1 : vector<8x16xf32>, vector<8x4xf32> -> vector<8x20xf32>
    %c0_19 = arith.constant 0 : index
    %c0_20 = arith.constant 0 : index
    %34 = vector.load %arg8[%c0_19, %c0_20] : memref<20x768xf32, #tpu.memory_space<vmem>>, vector<20x768xf32>
    %cst_21 = arith.constant dense<0.000000e+00> : vector<8x768xf32>
    %35 = tpu.matmul %33, %34, %cst_21 {dimension_numbers = #tpu.dot_dimension_numbers<[1], [0], [0], [1], [0, 0, 1, 1], [], []>} : vector<8x20xf32>, vector<20x768xf32>, vector<8x768xf32> -> vector<8x768xf32>
    %c0_22 = arith.constant 0 : index
    %c0_23 = arith.constant 0 : index
    %36 = vector.load %arg9[%c0_22, %c0_23] : memref<1x768xf32, #tpu.memory_space<vmem>>, vector<1x768xf32>
    %37 = vector.broadcast %36 : vector<1x768xf32> to vector<8x768xf32>
    %38 = arith.addf %35, %37 : vector<8x768xf32>
    %cst_24 = arith.constant 0.000000e+00 : f32
    %39 = vector.broadcast %cst_24 : f32 to vector<8x768xf32>
    %40 = arith.maximumf %38, %39 : vector<8x768xf32>
    %41 = arith.truncf %40 : vector<8x768xf32> to vector<8x768xbf16>
    %c0_25 = arith.constant 0 : index
    %c0_26 = arith.constant 0 : index
    %42 = vector.load %arg10[%c0_25, %c0_26] : memref<768x768xbf16, #tpu.memory_space<vmem>>, vector<768x768xbf16>
    %cst_27 = arith.constant dense<0.000000e+00> : vector<8x768xf32>
    %43 = tpu.matmul %41, %42, %cst_27 {dimension_numbers = #tpu.dot_dimension_numbers<[1], [0], [0], [1], [0, 0, 1, 1], [], []>} : vector<8x768xbf16>, vector<768x768xbf16>, vector<8x768xf32> -> vector<8x768xf32>
    %c0_28 = arith.constant 0 : index
    %c0_29 = arith.constant 0 : index
    %44 = vector.load %arg11[%c0_28, %c0_29] : memref<1x768xf32, #tpu.memory_space<vmem>>, vector<1x768xf32>
    %45 = vector.broadcast %44 : vector<1x768xf32> to vector<8x768xf32>
    %46 = arith.addf %43, %45 : vector<8x768xf32>
    %cst_30 = arith.constant 0.000000e+00 : f32
    %47 = vector.broadcast %cst_30 : f32 to vector<8x768xf32>
    %48 = arith.maximumf %46, %47 : vector<8x768xf32>
    %c0_31 = arith.constant 0 : index
    %c0_32 = arith.constant 0 : index
    %49 = vector.load %arg12[%c0_31, %c0_32] : memref<768x8xf32, #tpu.memory_space<vmem>>, vector<768x8xf32>
    %cst_33 = arith.constant dense<0.000000e+00> : vector<8x8xf32>
    %50 = tpu.matmul %48, %49, %cst_33 {dimension_numbers = #tpu.dot_dimension_numbers<[1], [0], [0], [1], [0, 0, 1, 1], [], []>} : vector<8x768xf32>, vector<768x8xf32>, vector<8x8xf32> -> vector<8x8xf32>
    %c0_34 = arith.constant 0 : index
    %c0_35 = arith.constant 0 : index
    %51 = vector.load %arg13[%c0_34, %c0_35] : memref<1x8xf32, #tpu.memory_space<vmem>>, vector<1x8xf32>
    %52 = vector.broadcast %51 : vector<1x8xf32> to vector<8x8xf32>
    %53 = arith.addf %50, %52 : vector<8x8xf32>
    %54 = math.tanh %53 : vector<8x8xf32>
    %cst_36 = arith.constant 0.000000e+00 : f32
    %55 = vector.broadcast %cst_36 : f32 to vector<8x112xf32>
    %56 = tpu.concatenate %54, %24, %30, %55 in 1 : vector<8x8xf32>, vector<8x4xf32>, vector<8x4xf32>, vector<8x112xf32> -> vector<8x128xf32>
    %c0_37 = arith.constant 0 : index
    %c0_38 = arith.constant 0 : index
    %57 = vector.load %arg14[%c0_37, %c0_38] : memref<8x128xf32, #tpu.memory_space<vmem>>, vector<8x128xf32>
    tpu.vector_store %arg14[%c0_37, %c0_38], %56 {strides = array<i32>} : memref<8x128xf32, #tpu.memory_space<vmem>>, vector<8x128xf32>,
    return
  }
  func.func @transform_0(%arg0: i32) -> (i32, i32) {
    %c0_i32 = arith.constant 0 : i32
    %c0_i32_0 = arith.constant 0 : i32
    return %arg0, %c0_i32 : i32, i32
  }
  func.func @transform_1(%arg0: i32) -> (i32, i32) {
    %c0_i32 = arith.constant 0 : i32
    %c0_i32_0 = arith.constant 0 : i32
    %c0_i32_1 = arith.constant 0 : i32
    return %c0_i32, %c0_i32_0 : i32, i32
  }
  func.func @transform_2(%arg0: i32) -> (i32, i32) {
    %c0_i32 = arith.constant 0 : i32
    %c0_i32_0 = arith.constant 0 : i32
    %c0_i32_1 = arith.constant 0 : i32
    return %c0_i32, %c0_i32_0 : i32, i32
  }
  func.func @transform_3(%arg0: i32) -> (i32, i32) {
    %c0_i32 = arith.constant 0 : i32
    %c0_i32_0 = arith.constant 0 : i32
    %c0_i32_1 = arith.constant 0 : i32
    return %c0_i32, %c0_i32_0 : i32, i32
  }
  func.func @transform_4(%arg0: i32) -> (i32, i32) {
    %c0_i32 = arith.constant 0 : i32
    %c0_i32_0 = arith.constant 0 : i32
    %c0_i32_1 = arith.constant 0 : i32
    return %c0_i32, %c0_i32_0 : i32, i32
  }
  func.func @transform_5(%arg0: i32) -> (i32, i32) {
    %c0_i32 = arith.constant 0 : i32
    %c0_i32_0 = arith.constant 0 : i32
    %c0_i32_1 = arith.constant 0 : i32
    return %c0_i32, %c0_i32_0 : i32, i32
  }
  func.func @transform_6(%arg0: i32) -> (i32, i32) {
    %c0_i32 = arith.constant 0 : i32
    %c0_i32_0 = arith.constant 0 : i32
    %c0_i32_1 = arith.constant 0 : i32
    return %c0_i32, %c0_i32_0 : i32, i32
  }
  func.func @transform_7(%arg0: i32) -> (i32, i32) {
    %c0_i32 = arith.constant 0 : i32
    %c0_i32_0 = arith.constant 0 : i32
    %c0_i32_1 = arith.constant 0 : i32
    return %c0_i32, %c0_i32_0 : i32, i32
  }
  func.func @transform_8(%arg0: i32) -> (i32, i32) {
    %c0_i32 = arith.constant 0 : i32
    %c0_i32_0 = arith.constant 0 : i32
    %c0_i32_1 = arith.constant 0 : i32
    return %c0_i32, %c0_i32_0 : i32, i32
  }
  func.func @transform_9(%arg0: i32) -> (i32, i32) {
    %c0_i32 = arith.constant 0 : i32
    %c0_i32_0 = arith.constant 0 : i32
    %c0_i32_1 = arith.constant 0 : i32
    return %c0_i32, %c0_i32_0 : i32, i32
  }
  func.func @transform_10(%arg0: i32) -> (i32, i32) {
    %c0_i32 = arith.constant 0 : i32
    %c0_i32_0 = arith.constant 0 : i32
    %c0_i32_1 = arith.constant 0 : i32
    return %c0_i32, %c0_i32_0 : i32, i32
  }
  func.func @transform_11(%arg0: i32) -> (i32, i32) {
    %c0_i32 = arith.constant 0 : i32
    %c0_i32_0 = arith.constant 0 : i32
    %c0_i32_1 = arith.constant 0 : i32
    return %c0_i32, %c0_i32_0 : i32, i32
  }
  func.func @transform_12(%arg0: i32) -> (i32, i32) {
    %c0_i32 = arith.constant 0 : i32
    %c0_i32_0 = arith.constant 0 : i32
    %c0_i32_1 = arith.constant 0 : i32
    return %c0_i32, %c0_i32_0 : i32, i32
  }
  func.func @transform_13(%arg0: i32) -> (i32, i32) {
    %c0_i32 = arith.constant 0 : i32
    %c0_i32_0 = arith.constant 0 : i32
    return %arg0, %c0_i32 : i32, i32
  }
}

</mosaic_0001>

<bundles_post_ra>
// kernel: tpu_custom_call.1
= control target key start
LH: loop header
LB: loop body
LE: loop exit
PB: predicated region body
PF: predicated region fallthrough
CT: control target
= control target key end

     0   :  { %18 = vsyncpa [#allocation3], 0  ;;  %s8966_s0 = inlined_call_operand.hbm [shape: f32[8,28], index: 0, kind: input, shape index: {}]   ;;  %s8967_s1 = inlined_call_operand.hbm [shape: f32[24,768], index: 1, kind: input, shape index: {}]   ;;  %s8968_s2 = inlined_call_operand.hbm [shape: f32[1,768], index: 2, kind: input, shape index: {}]   ;;  %s8969_s3 = inlined_call_operand.hbm [shape: bf16[768,768], index: 3, kind: input, shape index: {}]   ;;  %s8970_s4 = inlined_call_operand.hbm [shape: f32[1,768], index: 4, kind: input, shape index: {}]   ;;  %s8971_s5 = inlined_call_operand.vmem [shape: f32[768,8], index: 5, kind: input, shape index: {}]   ;;  %s8972_s6 = inlined_call_operand.hbm [shape: f32[1,8], index: 6, kind: input, shape index: {}]   ;;  %s8973_s7 = inlined_call_operand.hbm [shape: f32[20,768], index: 7, kind: input, shape index: {}]   ;;  %s8974_s8 = inlined_call_operand.hbm [shape: f32[1,768], index: 8, kind: input, shape index: {}]   ;;  %s8975_s9 = inlined_call_operand.hbm [shape: bf16[768,768], index: 9, kind: input, shape index: {}]   ;;  %s8976_s10 = inlined_call_operand.hbm [shape: f32[1,768], index: 10, kind: input, shape index: {}]   ;;  %s8977_s11 = inlined_call_operand.vmem [shape: f32[768,8], index: 11, kind: input, shape index: {}]   ;;  %s8978_s12 = inlined_call_operand.hbm [shape: f32[1,8], index: 12, kind: input, shape index: {}]   ;;  %s8979_s13 = inlined_call_operand.hbm [shape: f32[8,128], index: 13, kind: output, shape index: {}]  }
   0x1   :  { %19 = vsyncpa [#allocation6], 0 }
   0x2   :  { %20 = vsyncpa [#allocation9], 0 }
   0x3   :  { %21 = vsyncpa [#allocation12], 0 }
   0x4   :  { %22 = vsyncpa [#allocation15], 0 }
   0x5   :  { %23 = vsyncpa [#allocation18], 0 }
   0x6   :  { %24 = vsyncpa [#allocation4], 0  ;;  %s7952_s25 = smov [#allocation5]   ;;  %s7674_s29 = scalar_lea.hbm %s8967_s1, 2304 }
   0x7   :  { %s40_s26 = sshll.u32 %s7952_s25, 4  ;;  %p7675_p0 = scmp.ne.s32.totalorder %s8967_s1, %s7674_s29  ;;  %s41_s26 = int_to_ptr.vmem [resolvable:$true] %s40_s26 }
   0x8   :  { %p7678_p1 = scmp.lt.u32.totalorder %s7674_s29, %s8967_s1 }
   0xa   :  { %p7680_p2 = pnand %p7678_p1, %p7675_p0 }
   0xc   :  { %7683 = shalt.err (!%p7680_p2)
}
   0xd   :  { %s7684_s17 = scalar_lea.vmem %s41_s26, 2304  ;;  %p7689_p4 = scmp.lt.s32.totalorder %s41_s26, %s41_s26 }
   0xe   :  { %p7685_p3 = scmp.ne.s32.totalorder %s41_s26, %s7684_s17  ;;  %p7690_p5 = scmp.lt.s32.totalorder %s7684_s17, %s7684_s17 }
  0x10   :  { %p7691_p6 = por %p7690_p5, %p7689_p4 }
  0x12   :  { %p7692_p7 = pnand %p7691_p6, %p7685_p3 }
  0x14   :  { %7695 = shalt.err (!%p7692_p7)
}
  0x15   :  { %s7953_s18 = smov 768   ;;  %s7954_s19 = smov 48  }
  0x16   :  { %46 = dma.hbm_to_vmem [thread:$0]  %s8967_s1, 2304, %s41_s26, [#allocation6], %s7953_s18, %s7953_s18, %s7954_s19  }
  0x17   :  { %s7955_s22 = smov [#allocation8]   ;;  %s7696_s27 = scalar_lea.hbm %s8969_s3, 36864 }
  0x18   :  { %s62_s23 = sshll.u32 %s7955_s22, 4  ;;  %p7697_p8 = scmp.ne.s32.totalorder %s8969_s3, %s7696_s27  ;;  %s63_s23 = int_to_ptr.vmem [resolvable:$true] %s62_s23 }
  0x19   :  { %p7700_p9 = scmp.lt.u32.totalorder %s7696_s27, %s8969_s3 }
  0x1b   :  { %p7702_p10 = pnand %p7700_p9, %p7697_p8 }
  0x1d   :  { %7705 = shalt.err (!%p7702_p10)
}
  0x1e   :  { %s7706_s15 = scalar_lea.vmem %s63_s23, 36864  ;;  %p7711_p12 = scmp.lt.s32.totalorder %s63_s23, %s63_s23 }
  0x1f   :  { %p7707_p11 = scmp.ne.s32.totalorder %s63_s23, %s7706_s15  ;;  %p7712_p13 = scmp.lt.s32.totalorder %s7706_s15, %s7706_s15 }
  0x21   :  { %p7713_p0 = por %p7712_p13, %p7711_p12 }
  0x23   :  { %p7714_p1 = pnand %p7713_p0, %p7707_p11 }
  0x25   :  { %7717 = shalt.err (!%p7714_p1)
}
  0x26   :  { %s7956_s1 = smov 384   ;;  %s7957_s26 = smov 24  }
  0x27   :  { %68 = dma.hbm_to_vmem [thread:$0]  %s8969_s3, 36864, %s63_s23, [#allocation9], %s7956_s1, %s7956_s1, %s7957_s26  }
  0x28   :  { %s7958_s20 = smov [#allocation11]   ;;  %s7959_s22 = smov [#allocation14]  }
  0x29   :  { %s87_s21 = sshll.u32 %s7958_s20, 4  ;;  %s109_s24 = sshll.u32 %s7959_s22, 4  ;;  %s88_s21 = int_to_ptr.vmem [resolvable:$true] %s87_s21  ;;  %s110_s24 = int_to_ptr.vmem [resolvable:$true] %s109_s24 }
  0x2a   :  { %s7718_s28 = scalar_lea.hbm %s8972_s6, 16 }
  0x2b   :  { %p7719_p2 = scmp.ne.s32.totalorder %s8972_s6, %s7718_s28  ;;  %p7722_p3 = scmp.lt.u32.totalorder %s7718_s28, %s8972_s6 }
  0x2d   :  { %p7724_p4 = pnand %p7722_p3, %p7719_p2 }
  0x2f   :  { %7727 = shalt.err (!%p7724_p4)
}
  0x30   :  { %s7728_s3 = scalar_lea.vmem %s88_s21, 16  ;;  %s7732_s23 = scalar_lea.vmem %s88_s21, 32 }
  0x31   :  { %p7729_p5 = scmp.ne.s32.totalorder %s88_s21, %s7728_s3  ;;  %p7733_p6 = scmp.lt.s32.totalorder %s88_s21, %s88_s21 }
  0x32   :  { %p7734_p7 = scmp.lt.s32.totalorder %s7732_s23, %s7728_s3 }
  0x34   :  { %p7735_p8 = por %p7734_p7, %p7733_p6 }
  0x36   :  { %p7736_p9 = pnand %p7735_p8, %p7729_p5 }
  0x38   :  { %7739 = shalt.err (!%p7736_p9)
}
  0x39   :  { %90 = dma.hbm_to_vmem [thread:$0]  %s8972_s6, 16, %s88_s21, [#allocation12]  }
  0x3a   :  { %s7740_s25 = scalar_lea.hbm %s8974_s8, 96 }
  0x3b   :  { %p7741_p10 = scmp.ne.s32.totalorder %s8974_s8, %s7740_s25  ;;  %p7744_p11 = scmp.lt.u32.totalorder %s7740_s25, %s8974_s8 }
  0x3d   :  { %p7746_p12 = pnand %p7744_p11, %p7741_p10 }
  0x3f   :  { %7749 = shalt.err (!%p7746_p12)
}
  0x40   :  { %s7750_s14 = scalar_lea.vmem %s110_s24, 96  ;;  %p7755_p0 = scmp.lt.s32.totalorder %s110_s24, %s110_s24 }
  0x41   :  { %p7751_p13 = scmp.ne.s32.totalorder %s110_s24, %s7750_s14  ;;  %p7756_p1 = scmp.lt.s32.totalorder %s7750_s14, %s7750_s14 }
  0x43   :  { %p7757_p2 = por %p7756_p1, %p7755_p0 }
  0x45   :  { %p7758_p3 = pnand %p7757_p2, %p7751_p13 }
  0x47   :  { %7761 = shalt.err (!%p7758_p3)
}
  0x48   :  { %112 = dma.hbm_to_vmem [thread:$0]  %s8974_s8, 96, %s110_s24, [#allocation15]  }
  0x49   :  { %s7960_s15 = smov [#allocation17]   ;;  %s7961_s23 = smov [#allocation2]  }
  0x4a   :  { %s131_s3 = sshll.u32 %s7960_s15, 4  ;;  %s31_s16 = sshll.u32 %s7961_s23, 4  ;;  %s132_s3 = int_to_ptr.vmem [resolvable:$true] %s131_s3  ;;  %s32_s16 = int_to_ptr.vmem [resolvable:$true] %s31_s16 }
  0x4b   :  { %s7762_s22 = scalar_lea.hbm %s8976_s10, 96 }
  0x4c   :  { %p7763_p4 = scmp.ne.s32.totalorder %s8976_s10, %s7762_s22  ;;  %p7766_p5 = scmp.lt.u32.totalorder %s7762_s22, %s8976_s10 }
  0x4e   :  { %p7768_p6 = pnand %p7766_p5, %p7763_p4 }
  0x50   :  { %7771 = shalt.err (!%p7768_p6)
}
  0x51   :  { %s7772_s8 = scalar_lea.vmem %s132_s3, 96  ;;  %p7777_p8 = scmp.lt.s32.totalorder %s132_s3, %s132_s3 }
  0x52   :  { %p7773_p7 = scmp.ne.s32.totalorder %s132_s3, %s7772_s8  ;;  %p7778_p9 = scmp.lt.s32.totalorder %s7772_s8, %s7772_s8 }
  0x54   :  { %p7779_p10 = por %p7778_p9, %p7777_p8 }
  0x56   :  { %p7780_p11 = pnand %p7779_p10, %p7773_p7 }
  0x58   :  { %7783 = shalt.err (!%p7780_p11)
}
  0x59   :  { %134 = dma.hbm_to_vmem [thread:$0]  %s8976_s10, 96, %s132_s3, [#allocation18]  }
  0x5a   :  { %s7784_s21 = scalar_lea.hbm %s8966_s0, 128 }
  0x5b   :  { %p7785_p12 = scmp.ne.s32.totalorder %s8966_s0, %s7784_s21  ;;  %p7788_p13 = scmp.lt.u32.totalorder %s7784_s21, %s8966_s0 }
  0x5d   :  { %p7790_p0 = pnand %p7788_p13, %p7785_p12 }
  0x5f   :  { %7793 = shalt.err (!%p7790_p0)
}
  0x60   :  { %s7794_s22 = scalar_lea.vmem %s32_s16, 128  ;;  %p7799_p2 = scmp.lt.s32.totalorder %s32_s16, %s32_s16 }
  0x61   :  { %p7795_p1 = scmp.ne.s32.totalorder %s32_s16, %s7794_s22  ;;  %p7800_p3 = scmp.lt.s32.totalorder %s7794_s22, %s7794_s22 }
  0x63   :  { %p7801_p4 = por %p7800_p3, %p7799_p2 }
  0x65   :  { %p7802_p5 = pnand %p7801_p4, %p7795_p1 }
  0x67   :  { %7805 = shalt.err (!%p7802_p5)
}
  0x68   :  { %34 = dma.hbm_to_vmem [thread:$0]  %s8966_s0, 128, %s32_s16, [#allocation3]  }
  0x69   :  { %s7962_s25 = smov [#allocation7]   ;;  %s7963_s28 = smov [#allocation10]  }
  0x6a   :  { %s53_s27 = sshll.u32 %s7962_s25, 4  ;;  %s75_s29 = sshll.u32 %s7963_s28, 4  ;;  %s54_s27 = int_to_ptr.vmem [resolvable:$true] %s53_s27  ;;  %s76_s29 = int_to_ptr.vmem [resolvable:$true] %s75_s29 }
  0x6b   :  { %s7806_s30 = scalar_lea.hbm %s8968_s2, 96 }
  0x6c   :  { %p7807_p6 = scmp.ne.s32.totalorder %s8968_s2, %s7806_s30  ;;  %p7810_p7 = scmp.lt.u32.totalorder %s7806_s30, %s8968_s2 }
  0x6e   :  { %p7812_p8 = pnand %p7810_p7, %p7807_p6 }
  0x70   :  { %7815 = shalt.err (!%p7812_p8)
}
  0x71   :  { %s7816_s0 = scalar_lea.vmem %s54_s27, 96  ;;  %p7821_p10 = scmp.lt.s32.totalorder %s54_s27, %s54_s27 }
  0x72   :  { %p7817_p9 = scmp.ne.s32.totalorder %s54_s27, %s7816_s0  ;;  %p7822_p11 = scmp.lt.s32.totalorder %s7816_s0, %s7816_s0 }
  0x74   :  { %p7823_p12 = por %p7822_p11, %p7821_p10 }
  0x76   :  { %p7824_p13 = pnand %p7823_p12, %p7817_p9 }
  0x78   :  { %7827 = shalt.err (!%p7824_p13)
}
  0x79   :  { %56 = dma.hbm_to_vmem [thread:$0]  %s8968_s2, 96, %s54_s27, [#allocation6]  }
  0x7a   :  { %s7828_s22 = scalar_lea.hbm %s8970_s4, 96 }
  0x7b   :  { %p7829_p0 = scmp.ne.s32.totalorder %s8970_s4, %s7828_s22  ;;  %p7832_p1 = scmp.lt.u32.totalorder %s7828_s22, %s8970_s4 }
  0x7d   :  { %p7834_p2 = pnand %p7832_p1, %p7829_p0 }
  0x7f   :  { %7837 = shalt.err (!%p7834_p2)
}
  0x80   :  { %s7838_s8 = scalar_lea.vmem %s76_s29, 96  ;;  %p7843_p4 = scmp.lt.s32.totalorder %s76_s29, %s76_s29 }
  0x81   :  { %p7839_p3 = scmp.ne.s32.totalorder %s76_s29, %s7838_s8  ;;  %p7844_p5 = scmp.lt.s32.totalorder %s7838_s8, %s7838_s8 }
  0x83   :  { %p7845_p6 = por %p7844_p5, %p7843_p4 }
  0x85   :  { %p7846_p7 = pnand %p7845_p6, %p7839_p3 }
  0x87   :  { %7849 = shalt.err (!%p7846_p7)
}
  0x88   :  { %78 = dma.hbm_to_vmem [thread:$0]  %s8970_s4, 96, %s76_s29, [#allocation9]  }
  0x89   :  { %s7964_s24 = smov [#allocation13]   ;;  %s7965_s14 = smov [#allocation16]  }
  0x8a   :  { %s96_s30 = sshll.u32 %s7964_s24, 4  ;;  %s118_s6 = sshll.u32 %s7965_s14, 4  ;;  %s97_s30 = int_to_ptr.vmem [resolvable:$true] %s96_s30  ;;  %s8145_s6 = int_to_ptr.vmem [resolvable:$true] %s118_s6 }
  0x8b   :  { %s7850_s0 = scalar_lea.hbm %s8973_s7, 2304 }
  0x8c   :  { %p7851_p8 = scmp.ne.s32.totalorder %s8973_s7, %s7850_s0  ;;  %p7854_p9 = scmp.lt.u32.totalorder %s7850_s0, %s8973_s7 }
  0x8e   :  { %p7856_p10 = pnand %p7854_p9, %p7851_p8 }
  0x90   :  { %7859 = shalt.err (!%p7856_p10)
}
  0x91   :  { %s7860_s4 = scalar_lea.vmem %s97_s30, 2304  ;;  %p7865_p12 = scmp.lt.s32.totalorder %s97_s30, %s97_s30 }
  0x92   :  { %p7861_p11 = scmp.ne.s32.totalorder %s97_s30, %s7860_s4  ;;  %p7866_p13 = scmp.lt.s32.totalorder %s7860_s4, %s7860_s4 }
  0x94   :  { %p7867_p0 = por %p7866_p13, %p7865_p12 }
  0x96   :  { %p7868_p1 = pnand %p7867_p0, %p7861_p11 }
  0x98   :  { %7871 = shalt.err (!%p7868_p1)
}
  0x99   :  { %102 = dma.hbm_to_vmem [thread:$0]  %s8973_s7, 2304, %s97_s30, [#allocation12], %s7953_s18, %s7953_s18, %s7954_s19  }
  0x9a   :  { %s7872_s25 = scalar_lea.hbm %s8975_s9, 36864 }
  0x9b   :  { %p7873_p2 = scmp.ne.s32.totalorder %s8975_s9, %s7872_s25  ;;  %p7876_p3 = scmp.lt.u32.totalorder %s7872_s25, %s8975_s9 }
  0x9d   :  { %p7878_p4 = pnand %p7876_p3, %p7873_p2 }
  0x9f   :  { %7881 = shalt.err (!%p7878_p4)
}
  0xa0   :  { %s7882_s24 = scalar_lea.vmem %s8145_s6, 36864  ;;  %p7887_p6 = scmp.lt.s32.totalorder %s8145_s6, %s8145_s6 }
  0xa1   :  { %p7883_p5 = scmp.ne.s32.totalorder %s8145_s6, %s7882_s24  ;;  %p7888_p7 = scmp.lt.s32.totalorder %s7882_s24, %s7882_s24 }
  0xa3   :  { %p7889_p8 = por %p7888_p7, %p7887_p6 }
  0xa5   :  { %p7890_p9 = pnand %p7889_p8, %p7883_p5 }
  0xa7   :  { %7893 = shalt.err (!%p7890_p9)
}
  0xa8   :  { %124 = dma.hbm_to_vmem [thread:$0]  %s8975_s9, 36864, %s8145_s6, [#allocation15], %s7956_s1, %s7956_s1, %s7957_s26  }
  0xa9   :  { %s7966_s19 = smov [#allocation19]   ;;  %s7894_s15 = scalar_lea.hbm %s8978_s12, 16 }
  0xaa   :  { %s143_s30 = sshll.u32 %s7966_s19, 4  ;;  %p7895_p10 = scmp.ne.s32.totalorder %s8978_s12, %s7894_s15  ;;  %s144_s30 = int_to_ptr.vmem [resolvable:$true] %s143_s30 }
  0xab   :  { %p7898_p11 = scmp.lt.u32.totalorder %s7894_s15, %s8978_s12 }
  0xad   :  { %p7900_p12 = pnand %p7898_p11, %p7895_p10 }
  0xaf   :  { %7903 = shalt.err (!%p7900_p12)
}
  0xb0   :  { %s7904_s20 = scalar_lea.vmem %s144_s30, 16  ;;  %s7908_s9 = scalar_lea.vmem %s144_s30, 32 }
  0xb1   :  { %p7905_p13 = scmp.ne.s32.totalorder %s144_s30, %s7904_s20  ;;  %p7909_p0 = scmp.lt.s32.totalorder %s144_s30, %s144_s30 }
  0xb2   :  { %p7910_p1 = scmp.lt.s32.totalorder %s7908_s9, %s7904_s20 }
  0xb4   :  { %p7911_p2 = por %p7910_p1, %p7909_p0 }
  0xb6   :  { %p7912_p3 = pnand %p7911_p2, %p7905_p13 }
  0xb8   :  { %7915 = shalt.err (!%p7912_p3)
}
  0xb9   :  { %146 = dma.hbm_to_vmem [thread:$0]  %s8978_s12, 16, %s144_s30, [#allocation18]  }
  0xba   :  { %7938 = dma.done.wait [#allocation3], 128  }
  0xbb   :  { %7939 = vsyncadd [#allocation3], 4294967168 }
  0xbc   :  { %7940 = dma.done.wait [#allocation6], 2400  }
  0xbd   :  { %7941 = vsyncadd [#allocation6], 4294964896 }
  0xbe   :  { %7942 = dma.done.wait [#allocation9], 36960  }
  0xbf   :  { %7943 = vsyncadd [#allocation9], 4294930336 }
  0xc0   :  { %7944 = dma.done.wait [#allocation12], 2320  }
  0xc1   :  { %7945 = vsyncadd [#allocation12], 4294964976 }
  0xc2   :  { %7946 = dma.done.wait [#allocation15], 36960  }
  0xc3   :  { %7947 = vsyncadd [#allocation15], 4294930336 }
  0xc4   :  { %7948 = dma.done.wait [#allocation18], 112  }
  0xc5   :  { %7949 = vsyncadd [#allocation18], 4294967184  ;;  %v7967_v0 = vmov 0.0   ;;  %v182_v1 = vld [vmem:[#allocation5 + $0x8] sm:$0xff]  ;;  %v188_v2 = vld [vmem:[#allocation5 + $0x38] sm:$0xff]  ;;  %vm231_vm0 = vcmask 195584  }
  0xc6   :  { %299 = vmatprep.mubr.f32.mxu1 %v7967_v0  ;;  %v181_v3 = vld [vmem:[#allocation5] sm:$0xff]  ;;  %v6508_v4 = vpack.c.bf16 %v188_v2, %v182_v1  ;;  %v187_v5 = vld [vmem:[#allocation5 + $0x30] sm:$0xff]  ;;  %v194_v7 = vld [vmem:[#allocation5 + $0x68] sm:$0xff]  ;;  %s7968_s20 = smov 108   ;;  %vm2981_vm1 = vcmask 1043456   ;;  %s7970_s9 = smov 8  }
  0xc7   :  { %v6510_v6 = vpack.c.bf16 %v187_v5, %v181_v3  ;;  %v184_v8 = vld [vmem:[#allocation5 + $0x18] sm:$0xff]  ;;  %v190_v9 = vld [vmem:[#allocation5 + $0x48] sm:$0xff]  ;;  %v183_v10 = vld [vmem:[#allocation5 + $0x10] sm:$0xff]  ;;  %s7971_s1 = smov 16   ;;  %vm2925_vm2 = vcmask 130048   ;;  %vm2977_vm3 = vcmask 162816  }
  0xc8   :  { %6509 = vmatprep.subr.bf16.mxu1 %v6508_v4  ;;  %v189_v11 = vld [vmem:[#allocation5 + $0x40] sm:$0xff]  ;;  %v180_v13 = vld [vmem:[#allocation2] sm:$0xff]  ;;  %v6512_v14 = vpack.c.bf16 %v190_v9, %v184_v8  ;;  %v186_v17 = vld [vmem:[#allocation5 + $0x28] sm:$0xff]  ;;  %vm5682_vm4 = vcmask 64512   ;;  %vm5684_vm5 = vcmask 97280  }
  0xc9   :  { %6511 = vmatpush1.bf16.msra.mxu1 %v6510_v6  ;;  %v193_v12 = vld [vmem:[#allocation5 + $0x60] sm:$0xff]  ;;  %v6514_v15 = vpack.c.bf16 %v189_v11, %v183_v10  ;;  %v196_v16 = vld [vmem:[#allocation5 + $0x78] sm:$0xff]  ;;  %v191_v22 = vld [vmem:[#allocation5 + $0x50] sm:$0xff] }
  0xca   :  { %239 = vmatprep.subr.mxu1 %v194_v7  ;;  %v192_v18 = vld [vmem:[#allocation5 + $0x58] sm:$0xff]  ;;  %v185_v19 = vld [vmem:[#allocation5 + $0x20] sm:$0xff]  ;;  %v195_v23 = vld [vmem:[#allocation5 + $0x70] sm:$0xff] }
  0xcb   :  { %v6808_v20 = vld [vmem:[#allocation8 + $0xc] ss:$24 sps:$4 sm:$0xff]   ;;  %v6810_v21 = vld [vmem:[#allocation8 + $0x8] ss:$24 sps:$4 sm:$0xff]   ;;  %v6516_v24 = vpack.c.bf16 %v192_v18, %v186_v17  ;;  %v6814_v25 = vld [vmem:[#allocation8 + $0x3c] ss:$24 sps:$4 sm:$0xff]   ;;  %v6518_v26 = vpack.c.bf16 %v191_v22, %v185_v19 }
  0xcc   :  { %2343 = vmatprep.subr.bf16.mxu0 %v6808_v20  ;;  %v198_v27 = vld [vmem:[#allocation5 + $0x88] sm:$0xff]  ;;  %v6820_v29 = vld [vmem:[#allocation8 + $0x6c] ss:$24 sps:$4 sm:$0xff]   ;;  %v6822_v33 = vld [vmem:[#allocation8 + $0x68] ss:$24 sps:$4 sm:$0xff]  }
  0xcd   :  { %240 = vmatpush1.msra.mxu1 %v193_v12  ;;  %2344 = vmatpush1.bf16.msra.mxu0 %v6810_v21  ;;  %v6816_v28 = vld [vmem:[#allocation8 + $0x38] ss:$24 sps:$4 sm:$0xff]   ;;  %v6807_v32 = vld [vmem:[#allocation8 + $0x4] ss:$24 sps:$4 sm:$0xff]   ;;  %v6813_v34 = vld [vmem:[#allocation8 + $0x34] ss:$24 sps:$4 sm:$0xff]  }
  0xce   :  { %5708 = vmatmul.mubr.msk.f32.vlgmr.msra.gmra.mrb[0].mxu1 %vm231_vm0, %v180_v13  ;;  %6513 = vmatprep.subr.bf16.mxu1 %v6512_v14  ;;  %v197_v30 = vld [vmem:[#allocation5 + $0x80] sm:$0xff]  ;;  %v6805_v31 = vld [vmem:[#allocation8] ss:$24 sps:$4 sm:$0xff]   ;;  %v6826_v35 = vld [vmem:[#allocation8 + $0x9c] ss:$24 sps:$4 sm:$0xff]  }
  0xcf   :  { %6515 = vmatpush1.bf16.msra.mxu1 %v6514_v15  ;;  %370 = vmatprep.mubr.f32.mxu1 %v7967_v0  ;;  %v6811_v36 = vld [vmem:[#allocation8 + $0x30] ss:$24 sps:$4 sm:$0xff]   ;;  %v6819_v38 = vld [vmem:[#allocation8 + $0x64] ss:$24 sps:$4 sm:$0xff]   ;;  %v6817_v40 = vld [vmem:[#allocation8 + $0x60] ss:$24 sps:$4 sm:$0xff]  }
  0xd0   :  { %310 = vmatprep.subr.mxu1 %v196_v16  ;;  %2345 = vmatprep.subr.bf16.mxu0 %v6814_v25  ;;  %v6828_v37 = vld [vmem:[#allocation8 + $0x98] ss:$24 sps:$4 sm:$0xff]   ;;  %v6832_v39 = vld [vmem:[#allocation8 + $0xcc] ss:$24 sps:$4 sm:$0xff]   ;;  %v6834_v41 = vld [vmem:[#allocation8 + $0xc8] ss:$24 sps:$4 sm:$0xff]  }
  0xd1   :  { %2346 = vmatpush1.bf16.msra.mxu0 %v6816_v28  ;;  %v6825_v42 = vld [vmem:[#allocation8 + $0x94] ss:$24 sps:$4 sm:$0xff]   ;;  %v6823_v44 = vld [vmem:[#allocation8 + $0x90] ss:$24 sps:$4 sm:$0xff]   ;;  %v6831_v46 = vld [vmem:[#allocation8 + $0xc4] ss:$24 sps:$4 sm:$0xff]  }
  0xd2   :  { %2347 = vmatprep.subr.bf16.mxu0 %v6820_v29  ;;  %v6838_v43 = vld [vmem:[#allocation8 + $0xfc] ss:$24 sps:$4 sm:$0xff]   ;;  %v6840_v45 = vld [vmem:[#allocation8 + $0xf8] ss:$24 sps:$4 sm:$0xff]   ;;  %v6844_v47 = vld [vmem:[#allocation8 + $0x12c] ss:$24 sps:$4 sm:$0xff]   ;;  %v201_v29 = vlaneseq }
  0xd3   :  { %311 = vmatpush1.msra.mxu1 %v195_v23  ;;  %v6829_v48 = vld [vmem:[#allocation8 + $0xc0] ss:$24 sps:$4 sm:$0xff]   ;;  %v6837_v50 = vld [vmem:[#allocation8 + $0xf4] ss:$24 sps:$4 sm:$0xff]   ;;  %v6835_v52 = vld [vmem:[#allocation8 + $0xf0] ss:$24 sps:$4 sm:$0xff]  }
  0xd4   :  { %5709 = vmatmul.mubr.msk.f32.vlgmr.msra.gmra.mrb[2].mxu1 %vm231_vm0, %v180_v13  ;;  %6517 = vmatprep.subr.bf16.mxu1 %v6516_v24  ;;  %v6846_v49 = vld [vmem:[#allocation8 + $0x128] ss:$24 sps:$4 sm:$0xff]   ;;  %v6850_v51 = vld [vmem:[#allocation8 + $0x15c] ss:$24 sps:$4 sm:$0xff]   ;;  %v6852_v53 = vld [vmem:[#allocation8 + $0x158] ss:$24 sps:$4 sm:$0xff]  }
  0xd5   :  { %6519 = vmatpush1.bf16.msra.mxu1 %v6518_v26  ;;  %441 = vmatprep.mubr.f32.mxu1 %v7967_v0  ;;  %v6843_v54 = vld [vmem:[#allocation8 + $0x124] ss:$24 sps:$4 sm:$0xff]   ;;  %v6841_v56 = vld [vmem:[#allocation8 + $0x120] ss:$24 sps:$4 sm:$0xff]   ;;  %v6849_v58 = vld [vmem:[#allocation8 + $0x154] ss:$24 sps:$4 sm:$0xff]  }
  0xd6   :  { %381 = vmatprep.subr.mxu1 %v198_v27  ;;  %2348 = vmatpush1.bf16.msra.mxu0 %v6822_v33  ;;  %v6856_v55 = vld [vmem:[#allocation8 + $0x18c] ss:$24 sps:$4 sm:$0xff]   ;;  %v6858_v57 = vld [vmem:[#allocation8 + $0x188] ss:$24 sps:$4 sm:$0xff]   ;;  %v6862_v59 = vld [vmem:[#allocation8 + $0x1bc] ss:$24 sps:$4 sm:$0xff]  }
  0xd7   :  { %2349 = vmatprep.subr.bf16.mxu0 %v6826_v35  ;;  %v6847_v60 = vld [vmem:[#allocation8 + $0x150] ss:$24 sps:$4 sm:$0xff]   ;;  %v6855_v62 = vld [vmem:[#allocation8 + $0x184] ss:$24 sps:$4 sm:$0xff]   ;;  %v6853_v1 = vld [vmem:[#allocation8 + $0x180] ss:$24 sps:$4 sm:$0xff]  }
  0xd8   :  { %v6864_v61 = vld [vmem:[#allocation8 + $0x1b8] ss:$24 sps:$4 sm:$0xff]   ;;  %v6868_v63 = vld [vmem:[#allocation8 + $0x1ec] ss:$24 sps:$4 sm:$0xff]   ;;  %v6870_v2 = vld [vmem:[#allocation8 + $0x1e8] ss:$24 sps:$4 sm:$0xff]  }
  0xd9   :  { %382 = vmatpush1.msra.mxu1 %v197_v30  ;;  %v6861_v3 = vld [vmem:[#allocation8 + $0x1b4] ss:$24 sps:$4 sm:$0xff]   ;;  %v6859_v5 = vld [vmem:[#allocation8 + $0x1b0] ss:$24 sps:$4 sm:$0xff]   ;;  %v6867_v7 = vld [vmem:[#allocation8 + $0x1e4] ss:$24 sps:$4 sm:$0xff]  }
  0xda   :  { %5710 = vmatmul.mubr.msk.f32.vlgmr.msra.gmra.mrb[4].mxu1 %vm231_vm0, %v180_v13  ;;  %2220 = vmatprep.subr.bf16.mxu1 %v6807_v32  ;;  %v6874_v4 = vld [vmem:[#allocation8 + $0x21c] ss:$24 sps:$4 sm:$0xff]   ;;  %v6876_v6 = vld [vmem:[#allocation8 + $0x218] ss:$24 sps:$4 sm:$0xff]   ;;  %v6880_v8 = vld [vmem:[#allocation8 + $0x24c] ss:$24 sps:$4 sm:$0xff]  }
  0xdb   :  { %2221 = vmatpush1.bf16.msra.mxu1 %v6805_v31  ;;  %2350 = vmatpush1.bf16.msra.mxu0 %v6828_v37  ;;  %v6865_v9 = vld [vmem:[#allocation8 + $0x1e0] ss:$24 sps:$4 sm:$0xff]   ;;  %v6873_v11 = vld [vmem:[#allocation8 + $0x214] ss:$24 sps:$4 sm:$0xff]   ;;  %v6871_v13 = vld [vmem:[#allocation8 + $0x210] ss:$24 sps:$4 sm:$0xff]  }
  0xdc   :  { %2222 = vmatprep.subr.bf16.mxu1 %v6813_v34  ;;  %2351 = vmatprep.subr.bf16.mxu0 %v6832_v39  ;;  %v6882_v10 = vld [vmem:[#allocation8 + $0x248] ss:$24 sps:$4 sm:$0xff]   ;;  %v6886_v12 = vld [vmem:[#allocation8 + $0x27c] ss:$24 sps:$4 sm:$0xff]   ;;  %v6888_v14 = vld [vmem:[#allocation8 + $0x278] ss:$24 sps:$4 sm:$0xff]  }
  0xdd   :  { %v6879_v15 = vld [vmem:[#allocation8 + $0x244] ss:$24 sps:$4 sm:$0xff]   ;;  %v6877_v16 = vld [vmem:[#allocation8 + $0x240] ss:$24 sps:$4 sm:$0xff]   ;;  %v6885_v17 = vld [vmem:[#allocation8 + $0x274] ss:$24 sps:$4 sm:$0xff]  }
  0xde   :  { %v6883_v18 = vld [vmem:[#allocation8 + $0x270] ss:$24 sps:$4 sm:$0xff]   ;;  %v6891_v19 = vld [vmem:[#allocation8 + $0x2a4] ss:$24 sps:$4 sm:$0xff]   ;;  %v6889_v21 = vld [vmem:[#allocation8 + $0x2a0] ss:$24 sps:$4 sm:$0xff]  }
  0xdf   :  { %2223 = vmatpush1.bf16.msra.mxu1 %v6811_v36  ;;  %2352 = vmatpush1.bf16.msra.mxu0 %v6834_v41  ;;  %v6892_v20 = vld [vmem:[#allocation8 + $0x2ac] ss:$24 sps:$4 sm:$0xff]   ;;  %v6894_v22 = vld [vmem:[#allocation8 + $0x2a8] ss:$24 sps:$4 sm:$0xff]   ;;  %v6898_v24 = vld [vmem:[#allocation8 + $0x2dc] ss:$24 sps:$4 sm:$0xff]  }
  0xe0   :  { %2224 = vmatprep.subr.bf16.mxu1 %v6819_v38  ;;  %2353 = vmatprep.subr.bf16.mxu0 %v6838_v43  ;;  %v6897_v23 = vld [vmem:[#allocation8 + $0x2d4] ss:$24 sps:$4 sm:$0xff]   ;;  %v6895_v25 = vld [vmem:[#allocation8 + $0x2d0] ss:$24 sps:$4 sm:$0xff]   ;;  %v6903_v27 = vld [vmem:[#allocation8 + $0x304] ss:$24 sps:$4 sm:$0xff]  }
  0xe1   :  { %v6900_v26 = vld [vmem:[#allocation8 + $0x2d8] ss:$24 sps:$4 sm:$0xff]   ;;  %v6906_v28 = vld [vmem:[#allocation8 + $0x30c] ss:$24 sps:$4 sm:$0xff]   ;;  %v8200_v30 = vshrl.u32 %v201_v29, 7 }
  0xe2   :  { %v8205_v32 = vld [vmem:[#allocation7] sm:$0x3f]  ;;  %v6966_v29 = vld [vmem:[#allocation8 + $0x4ec] ss:$24 sps:$4 sm:$0xff]  }
  0xe3   :  { %2225 = vmatpush1.bf16.msra.mxu1 %v6817_v40  ;;  %2354 = vmatpush1.bf16.msra.mxu0 %v6840_v45  ;;  %v8203_v31 = vsub.s32 0, %v8200_v30  ;;  %v8208_v33 = vsub.s32 1, %v8200_v30  ;;  %v8215_v37 = vsub.s32 3, %v8200_v30  ;;  %v6901_v43 = vld [vmem:[#allocation8 + $0x300] ss:$24 sps:$4 sm:$0xff]  }
  0xe4   :  { %2226 = vmatprep.subr.bf16.mxu1 %v6825_v42  ;;  %2355 = vmatprep.subr.bf16.mxu0 %v6844_v47 }
  0xe5   :  { %v204_v34 = vrot.slane %v8205_v32, %v8203_v31  ;;  %v208_v35 = vrot.slane %v8205_v32, %v8208_v33  ;;  %v216_v45 = vrot.slane %v8205_v32, %v8215_v37 }
  0xe7   :  { %2227 = vmatpush1.bf16.msra.mxu1 %v6823_v44  ;;  %2356 = vmatpush1.bf16.msra.mxu0 %v6846_v49  ;;  %v6904_v44 = vld [vmem:[#allocation8 + $0x308] ss:$24 sps:$4 sm:$0xff]  }
  0xe8   :  { %2228 = vmatprep.subr.bf16.mxu1 %v6831_v46  ;;  %2357 = vmatprep.subr.bf16.mxu0 %v6850_v51  ;;  %v6909_v46 = vld [vmem:[#allocation8 + $0x334] ss:$24 sps:$4 sm:$0xff]  }
  0xeb   :  { %2229 = vmatpush1.bf16.msra.mxu1 %v6829_v48  ;;  %2358 = vmatpush1.bf16.msra.mxu0 %v6852_v53  ;;  %v6910_v53 = vld [vmem:[#allocation8 + $0x338] ss:$24 sps:$4 sm:$0xff]  }
  0xec   :  { %2230 = vmatprep.subr.bf16.mxu1 %v6837_v50  ;;  %2359 = vmatprep.subr.bf16.mxu0 %v6856_v55  ;;  %v6912_v50 = vld [vmem:[#allocation8 + $0x33c] ss:$24 sps:$4 sm:$0xff]  }
  0xed   :  { %v6915_v55 = vld [vmem:[#allocation8 + $0x364] ss:$24 sps:$4 sm:$0xff]  }
  0xef   :  { %2231 = vmatpush1.bf16.msra.mxu1 %v6835_v52  ;;  %2360 = vmatpush1.bf16.msra.mxu0 %v6858_v57  ;;  %v6907_v52 = vld [vmem:[#allocation8 + $0x330] ss:$24 sps:$4 sm:$0xff]  }
  0xf0   :  { %2232 = vmatprep.subr.bf16.mxu1 %v6843_v54  ;;  %2361 = vmatprep.subr.bf16.mxu0 %v6862_v59  ;;  %v6916_v59 = vld [vmem:[#allocation8 + $0x368] ss:$24 sps:$4 sm:$0xff]  }
  0xf3   :  { %2233 = vmatpush1.bf16.msra.mxu1 %v6841_v56  ;;  %2362 = vmatpush1.bf16.msra.mxu0 %v6864_v61  ;;  %v6918_v56 = vld [vmem:[#allocation8 + $0x36c] ss:$24 sps:$4 sm:$0xff]  }
  0xf4   :  { %2234 = vmatprep.subr.bf16.mxu1 %v6849_v58  ;;  %2363 = vmatprep.subr.bf16.mxu0 %v6868_v63  ;;  %v6913_v58 = vld [vmem:[#allocation8 + $0x360] ss:$24 sps:$4 sm:$0xff]   ;;  %v6921_v63 = vld [vmem:[#allocation8 + $0x394] ss:$24 sps:$4 sm:$0xff]  }
  0xf7   :  { %2235 = vmatpush1.bf16.msra.mxu1 %v6847_v60  ;;  %2364 = vmatpush1.bf16.msra.mxu0 %v6870_v2  ;;  %v6919_v2 = vld [vmem:[#allocation8 + $0x390] ss:$24 sps:$4 sm:$0xff]  }
  0xf8   :  { %2236 = vmatprep.subr.bf16.mxu1 %v6855_v62  ;;  %2365 = vmatprep.subr.bf16.mxu0 %v6874_v4  ;;  %v6927_v4 = vld [vmem:[#allocation8 + $0x3c4] ss:$24 sps:$4 sm:$0xff]  }
  0xfb   :  { %2237 = vmatpush1.bf16.msra.mxu1 %v6853_v1  ;;  %2366 = vmatpush1.bf16.msra.mxu0 %v6876_v6  ;;  %v6924_v1 = vld [vmem:[#allocation8 + $0x39c] ss:$24 sps:$4 sm:$0xff]   ;;  %v6925_v6 = vld [vmem:[#allocation8 + $0x3c0] ss:$24 sps:$4 sm:$0xff]  }
  0xfc   :  { %2238 = vmatprep.subr.bf16.mxu1 %v6861_v3  ;;  %2367 = vmatprep.subr.bf16.mxu0 %v6880_v8  ;;  %v6922_v3 = vld [vmem:[#allocation8 + $0x398] ss:$24 sps:$4 sm:$0xff]   ;;  %v6933_v8 = vld [vmem:[#allocation8 + $0x3f4] ss:$24 sps:$4 sm:$0xff]  }
  0xff   :  { %2239 = vmatpush1.bf16.msra.mxu1 %v6859_v5  ;;  %2368 = vmatpush1.bf16.msra.mxu0 %v6882_v10  ;;  %v6930_v5 = vld [vmem:[#allocation8 + $0x3cc] ss:$24 sps:$4 sm:$0xff]   ;;  %v6931_v10 = vld [vmem:[#allocation8 + $0x3f0] ss:$24 sps:$4 sm:$0xff]  }
 0x100   :  { %2240 = vmatprep.subr.bf16.mxu1 %v6867_v7  ;;  %2369 = vmatprep.subr.bf16.mxu0 %v6886_v12  ;;  %v6928_v7 = vld [vmem:[#allocation8 + $0x3c8] ss:$24 sps:$4 sm:$0xff]   ;;  %v6939_v12 = vld [vmem:[#allocation8 + $0x424] ss:$24 sps:$4 sm:$0xff]  }
 0x103   :  { %2241 = vmatpush1.bf16.msra.mxu1 %v6865_v9  ;;  %2370 = vmatpush1.bf16.msra.mxu0 %v6888_v14  ;;  %v6936_v9 = vld [vmem:[#allocation8 + $0x3fc] ss:$24 sps:$4 sm:$0xff]   ;;  %v6937_v14 = vld [vmem:[#allocation8 + $0x420] ss:$24 sps:$4 sm:$0xff]  }
 0x104   :  { %2242 = vmatprep.subr.bf16.mxu1 %v6873_v11  ;;  %2371 = vmatprep.subr.bf16.mxu0 %v6892_v20  ;;  %v6934_v11 = vld [vmem:[#allocation8 + $0x3f8] ss:$24 sps:$4 sm:$0xff]   ;;  %v6951_v20 = vld [vmem:[#allocation8 + $0x484] ss:$24 sps:$4 sm:$0xff]  }
 0x107   :  { %2243 = vmatpush1.bf16.msra.mxu1 %v6871_v13  ;;  %2372 = vmatpush1.bf16.msra.mxu0 %v6894_v22  ;;  %v6942_v13 = vld [vmem:[#allocation8 + $0x42c] ss:$24 sps:$4 sm:$0xff]   ;;  %v6949_v22 = vld [vmem:[#allocation8 + $0x480] ss:$24 sps:$4 sm:$0xff]  }
 0x108   :  { %2244 = vmatprep.subr.bf16.mxu1 %v6879_v15  ;;  %2373 = vmatprep.subr.bf16.mxu0 %v6898_v24  ;;  %v6940_v15 = vld [vmem:[#allocation8 + $0x428] ss:$24 sps:$4 sm:$0xff]   ;;  %v6957_v24 = vld [vmem:[#allocation8 + $0x4b4] ss:$24 sps:$4 sm:$0xff]  }
 0x10b   :  { %2245 = vmatpush1.bf16.msra.mxu1 %v6877_v16  ;;  %2374 = vmatpush1.bf16.msra.mxu0 %v6900_v26  ;;  %v6945_v16 = vld [vmem:[#allocation8 + $0x454] ss:$24 sps:$4 sm:$0xff]   ;;  %v6955_v26 = vld [vmem:[#allocation8 + $0x4b0] ss:$24 sps:$4 sm:$0xff]  }
 0x10c   :  { %2246 = vmatprep.subr.bf16.mxu1 %v6885_v17  ;;  %2384 = vmatprep.subr.bf16.mxu0 %v6906_v28  ;;  %v6948_v17 = vld [vmem:[#allocation8 + $0x45c] ss:$24 sps:$4 sm:$0xff]  }
 0x10d   :  { %v6963_v28 = vld [vmem:[#allocation8 + $0x4e4] ss:$24 sps:$4 sm:$0xff]  }
 0x10f   :  { %2247 = vmatpush1.bf16.msra.mxu1 %v6883_v18  ;;  %v6943_v18 = vld [vmem:[#allocation8 + $0x450] ss:$24 sps:$4 sm:$0xff]  }
 0x110   :  { %2248 = vmatprep.subr.bf16.mxu1 %v6891_v19  ;;  %v6946_v19 = vld [vmem:[#allocation8 + $0x458] ss:$24 sps:$4 sm:$0xff]  }
 0x113   :  { %2249 = vmatpush1.bf16.msra.mxu1 %v6889_v21  ;;  %v6954_v21 = vld [vmem:[#allocation8 + $0x48c] ss:$24 sps:$4 sm:$0xff]  }
 0x114   :  { %2250 = vmatprep.subr.bf16.mxu1 %v6897_v23  ;;  %v6952_v23 = vld [vmem:[#allocation8 + $0x488] ss:$24 sps:$4 sm:$0xff]  }
 0x117   :  { %2251 = vmatpush1.bf16.msra.mxu1 %v6895_v25  ;;  %v6960_v25 = vld [vmem:[#allocation8 + $0x4bc] ss:$24 sps:$4 sm:$0xff]  }
 0x118   :  { %2261 = vmatprep.subr.bf16.mxu1 %v6903_v27  ;;  %v6958_v27 = vld [vmem:[#allocation8 + $0x4b8] ss:$24 sps:$4 sm:$0xff]  }
 0x1a1   :  { %v301_v36 = vpop.f32.mrb[0].mxu1 }
 0x1a2   :  { %v302_v38 = vadd.f32 %v301_v36, %v204_v34  ;;  %v303_v39 = vpop.f32.mrb[1].mxu1  ;;  %v6961_v34 = vld [vmem:[#allocation8 + $0x4e0] ss:$24 sps:$4 sm:$0xff]   ;;  %v6969_v36 = vld [vmem:[#allocation8 + $0x514] ss:$24 sps:$4 sm:$0xff]  }
 0x1a3   :  { %v304_v40 = vadd.f32 %v303_v39, %v208_v35  ;;  %v6964_v35 = vld [vmem:[#allocation8 + $0x4e8] ss:$24 sps:$4 sm:$0xff]  }
 0x1a4   :  { %v448_v41 = vmax.f32 %v302_v38, 0.0  ;;  %v6972_v38 = vld [vmem:[#allocation8 + $0x51c] ss:$24 sps:$4 sm:$0xff]   ;;  %v6967_v39 = vld [vmem:[#allocation8 + $0x510] ss:$24 sps:$4 sm:$0xff]  }
 0x1a5   :  { %v449_v42 = vmax.f32 %v304_v40, 0.0  ;;  %v6970_v40 = vld [vmem:[#allocation8 + $0x518] ss:$24 sps:$4 sm:$0xff]  }
 0x1a6   :  { %v8223_v49 = vpack.c.bf16 %v448_v41, %v448_v41  ;;  %v6975_v41 = vld [vmem:[#allocation8 + $0x544] ss:$24 sps:$4 sm:$0xff]  }
 0x1a7   :  { %v8219_v47 = vpack.c.bf16 %v449_v42, %v449_v42  ;;  %v8221_v48 = vpop.f32.mrb[2].mxu1  ;;  %v6978_v42 = vld [vmem:[#allocation8 + $0x54c] ss:$24 sps:$4 sm:$0xff]  }
 0x1a8   :  { %v374_v51 = vpop.f32.mrb[3].mxu1 }
 0x1a9   :  { %2252 = vmatprep.mubr.bf16.mxu1 %v8219_v47  ;;  %2375 = vmatprep.mubr.bf16.mxu0 %v8219_v47  ;;  %v375_v54 = vadd.f32 %v374_v51, %v216_v45  ;;  %v6976_v45 = vld [vmem:[#allocation8 + $0x548] ss:$24 sps:$4 sm:$0xff]   ;;  %v8241_v51 = vsub.s32 5, %v8200_v30 }
 0x1aa   :  { %2253 = vmatmul.mubr.bf16.vlgmr.msra.gmra.mrb[8].mxu1 %v8223_v49  ;;  %2376 = vmatmul.mubr.bf16.vlgmr.msra.gmra.mrb[0].mxu0 %v8223_v49 }
 0x1ab   :  { %2262 = vmatpush1.bf16.msra.mxu1 %v6901_v43  ;;  %2385 = vmatpush1.bf16.msra.mxu0 %v6904_v44  ;;  %v451_v57 = vmax.f32 %v375_v54, 0.0  ;;  %v8238_v43 = vsub.s32 2, %v8200_v30  ;;  %v6973_v44 = vld [vmem:[#allocation8 + $0x540] ss:$24 sps:$4 sm:$0xff]  }
 0x1ac   :  { %2263 = vmatprep.subr.bf16.mxu1 %v6909_v46  ;;  %2386 = vmatprep.subr.bf16.mxu0 %v6912_v50  ;;  %v6981_v46 = vld [vmem:[#allocation8 + $0x574] ss:$24 sps:$4 sm:$0xff]   ;;  %v6982_v54 = vld [vmem:[#allocation8 + $0x578] ss:$24 sps:$4 sm:$0xff]  }
 0x1ad   :  { %v8229_v60 = vpack.c.bf16 %v451_v57, %v451_v57  ;;  %v8231_v61 = vpop.f32.mrb[4].mxu1  ;;  %v6984_v50 = vld [vmem:[#allocation8 + $0x57c] ss:$24 sps:$4 sm:$0xff]   ;;  %v224_v57 = vrot.slane %v8205_v32, %v8241_v51 }
 0x1ae   :  { %v8233_v62 = vpop.f32.mrb[5].mxu1 }
 0x1af   :  { %2264 = vmatpush1.bf16.msra.mxu1 %v6907_v52  ;;  %2387 = vmatpush1.bf16.msra.mxu0 %v6910_v53  ;;  %v212_v52 = vrot.slane %v8205_v32, %v8238_v43  ;;  %v6979_v53 = vld [vmem:[#allocation8 + $0x570] ss:$24 sps:$4 sm:$0xff]  }
 0x1b0   :  { %2265 = vmatprep.subr.bf16.mxu1 %v6915_v55  ;;  %2388 = vmatprep.subr.bf16.mxu0 %v6918_v56  ;;  %v6987_v55 = vld [vmem:[#allocation8 + $0x5a4] ss:$24 sps:$4 sm:$0xff]  }
 0x1b1   :  { %2293 = vmatprep.mubr.bf16.mxu1 %v8229_v60  ;;  %2416 = vmatprep.mubr.bf16.mxu0 %v8229_v60  ;;  %v6990_v56 = vld [vmem:[#allocation8 + $0x5ac] ss:$24 sps:$4 sm:$0xff]  }
 0x1b3   :  { %2266 = vmatpush1.bf16.msra.mxu1 %v6913_v58  ;;  %2389 = vmatpush1.bf16.msra.mxu0 %v6916_v59  ;;  %v373_v58 = vadd.f32 %v8221_v48, %v212_v52  ;;  %v6985_v59 = vld [vmem:[#allocation8 + $0x5a0] ss:$24 sps:$4 sm:$0xff]  }
 0x1b4   :  { %2267 = vmatprep.subr.bf16.mxu1 %v6921_v63  ;;  %2390 = vmatprep.subr.bf16.mxu0 %v6924_v1  ;;  %v6988_v63 = vld [vmem:[#allocation8 + $0x5a8] ss:$24 sps:$4 sm:$0xff]   ;;  %v6993_v1 = vld [vmem:[#allocation8 + $0x5d4] ss:$24 sps:$4 sm:$0xff]  }
 0x1b5   :  { %v7045_v52 = vld [vmem:[#allocation8 + $0x780] ss:$24 sps:$4 sm:$0xff]  }
 0x1b7   :  { %2268 = vmatpush1.bf16.msra.mxu1 %v6919_v2  ;;  %2391 = vmatpush1.bf16.msra.mxu0 %v6922_v3  ;;  %v6996_v2 = vld [vmem:[#allocation8 + $0x5dc] ss:$24 sps:$4 sm:$0xff]   ;;  %v446_v3 = vadd.f32 %v8233_v62, %v224_v57  ;;  %v7054_v57 = vld [vmem:[#allocation8 + $0x7b8] ss:$24 sps:$4 sm:$0xff]  }
 0x1b8   :  { %2269 = vmatprep.subr.bf16.mxu1 %v6927_v4  ;;  %2392 = vmatprep.subr.bf16.mxu0 %v6930_v5  ;;  %v450_v4 = vmax.f32 %v373_v58, 0.0  ;;  %v6991_v5 = vld [vmem:[#allocation8 + $0x5d0] ss:$24 sps:$4 sm:$0xff]   ;;  %v7008_v62 = vld [vmem:[#allocation8 + $0x63c] ss:$24 sps:$4 sm:$0xff]  }
 0x1b9   :  { %v453_v48 = vmax.f32 %v446_v3, 0.0  ;;  %v7059_v58 = vld [vmem:[#allocation8 + $0x7e4] ss:$24 sps:$4 sm:$0xff]  }
 0x1ba   :  { %v7068_v3 = vld [vmem:[#allocation8 + $0x81c] ss:$24 sps:$4 sm:$0xff]  }
 0x1bb   :  { %2270 = vmatpush1.bf16.msra.mxu1 %v6925_v6  ;;  %2393 = vmatpush1.bf16.msra.mxu0 %v6928_v7  ;;  %v6994_v6 = vld [vmem:[#allocation8 + $0x5d8] ss:$24 sps:$4 sm:$0xff]   ;;  %v6999_v7 = vld [vmem:[#allocation8 + $0x604] ss:$24 sps:$4 sm:$0xff]  }
 0x1bc   :  { %2271 = vmatprep.subr.bf16.mxu1 %v6933_v8  ;;  %2394 = vmatprep.subr.bf16.mxu0 %v6936_v9  ;;  %v7002_v8 = vld [vmem:[#allocation8 + $0x60c] ss:$24 sps:$4 sm:$0xff]   ;;  %v8249_v9 = vpack.c.bf16 %v450_v4, %v450_v4  ;;  %v7063_v4 = vld [vmem:[#allocation8 + $0x810] ss:$24 sps:$4 sm:$0xff]  }
 0x1bf   :  { %2272 = vmatpush1.bf16.msra.mxu1 %v6931_v10  ;;  %2395 = vmatpush1.bf16.msra.mxu0 %v6934_v11  ;;  %v6997_v10 = vld [vmem:[#allocation8 + $0x600] ss:$24 sps:$4 sm:$0xff]  }
 0x1c0   :  { %2273 = vmatprep.subr.bf16.mxu1 %v6939_v12  ;;  %2396 = vmatprep.subr.bf16.mxu0 %v6942_v13  ;;  %v7000_v11 = vld [vmem:[#allocation8 + $0x608] ss:$24 sps:$4 sm:$0xff]   ;;  %v7005_v12 = vld [vmem:[#allocation8 + $0x634] ss:$24 sps:$4 sm:$0xff]   ;;  %v8251_v13 = vpack.c.bf16 %v453_v48, %v453_v48 }
 0x1c1   :  { %v7069_v48 = vld [vmem:[#allocation8 + $0x840] ss:$24 sps:$4 sm:$0xff]  }
 0x1c3   :  { %2274 = vmatpush1.bf16.msra.mxu1 %v6937_v14  ;;  %2397 = vmatpush1.bf16.msra.mxu0 %v6940_v15  ;;  %v7003_v14 = vld [vmem:[#allocation8 + $0x630] ss:$24 sps:$4 sm:$0xff]  }
 0x1c4   :  { %2275 = vmatprep.subr.bf16.mxu1 %v6945_v16  ;;  %2398 = vmatprep.subr.bf16.mxu0 %v6948_v17  ;;  %v7006_v15 = vld [vmem:[#allocation8 + $0x638] ss:$24 sps:$4 sm:$0xff]   ;;  %v7011_v16 = vld [vmem:[#allocation8 + $0x664] ss:$24 sps:$4 sm:$0xff]  }
 0x1c5   :  { %v7014_v17 = vld [vmem:[#allocation8 + $0x66c] ss:$24 sps:$4 sm:$0xff]  }
 0x1c7   :  { %2276 = vmatpush1.bf16.msra.mxu1 %v6943_v18  ;;  %2399 = vmatpush1.bf16.msra.mxu0 %v6946_v19  ;;  %v7009_v18 = vld [vmem:[#allocation8 + $0x660] ss:$24 sps:$4 sm:$0xff]  }
 0x1c8   :  { %2277 = vmatprep.subr.bf16.mxu1 %v6951_v20  ;;  %2400 = vmatprep.subr.bf16.mxu0 %v6954_v21  ;;  %v7012_v19 = vld [vmem:[#allocation8 + $0x668] ss:$24 sps:$4 sm:$0xff]   ;;  %v7017_v20 = vld [vmem:[#allocation8 + $0x694] ss:$24 sps:$4 sm:$0xff]  }
 0x1c9   :  { %v7020_v21 = vld [vmem:[#allocation8 + $0x69c] ss:$24 sps:$4 sm:$0xff]  }
 0x1cb   :  { %2278 = vmatpush1.bf16.msra.mxu1 %v6949_v22  ;;  %2401 = vmatpush1.bf16.msra.mxu0 %v6952_v23  ;;  %v7015_v22 = vld [vmem:[#allocation8 + $0x690] ss:$24 sps:$4 sm:$0xff]  }
 0x1cc   :  { %2279 = vmatprep.subr.bf16.mxu1 %v6957_v24  ;;  %2402 = vmatprep.subr.bf16.mxu0 %v6960_v25  ;;  %v7018_v23 = vld [vmem:[#allocation8 + $0x698] ss:$24 sps:$4 sm:$0xff]   ;;  %v7023_v24 = vld [vmem:[#allocation8 + $0x6c4] ss:$24 sps:$4 sm:$0xff]  }
 0x1cd   :  { %v7026_v25 = vld [vmem:[#allocation8 + $0x6cc] ss:$24 sps:$4 sm:$0xff]  }
 0x1cf   :  { %2280 = vmatpush1.bf16.msra.mxu1 %v6955_v26  ;;  %2403 = vmatpush1.bf16.msra.mxu0 %v6958_v27  ;;  %v7021_v26 = vld [vmem:[#allocation8 + $0x6c0] ss:$24 sps:$4 sm:$0xff]  }
 0x1d0   :  { %2281 = vmatprep.subr.bf16.mxu1 %v6963_v28  ;;  %2404 = vmatprep.subr.bf16.mxu0 %v6966_v29  ;;  %v7024_v27 = vld [vmem:[#allocation8 + $0x6c8] ss:$24 sps:$4 sm:$0xff]   ;;  %v7029_v28 = vld [vmem:[#allocation8 + $0x6f4] ss:$24 sps:$4 sm:$0xff]  }
 0x1d1   :  { %v7032_v29 = vld [vmem:[#allocation8 + $0x6fc] ss:$24 sps:$4 sm:$0xff]  }
 0x1d3   :  { %2282 = vmatpush1.bf16.msra.mxu1 %v6961_v34  ;;  %2405 = vmatpush1.bf16.msra.mxu0 %v6964_v35  ;;  %v7027_v34 = vld [vmem:[#allocation8 + $0x6f0] ss:$24 sps:$4 sm:$0xff]  }
 0x1d4   :  { %2283 = vmatprep.subr.bf16.mxu1 %v6969_v36  ;;  %2406 = vmatprep.subr.bf16.mxu0 %v6972_v38  ;;  %v7030_v35 = vld [vmem:[#allocation8 + $0x6f8] ss:$24 sps:$4 sm:$0xff]   ;;  %v7035_v36 = vld [vmem:[#allocation8 + $0x724] ss:$24 sps:$4 sm:$0xff]  }
 0x1d5   :  { %v7038_v38 = vld [vmem:[#allocation8 + $0x72c] ss:$24 sps:$4 sm:$0xff]  }
 0x1d7   :  { %2284 = vmatpush1.bf16.msra.mxu1 %v6967_v39  ;;  %2407 = vmatpush1.bf16.msra.mxu0 %v6970_v40  ;;  %v7033_v39 = vld [vmem:[#allocation8 + $0x720] ss:$24 sps:$4 sm:$0xff]  }
 0x1d8   :  { %2285 = vmatprep.subr.bf16.mxu1 %v6975_v41  ;;  %2408 = vmatprep.subr.bf16.mxu0 %v6978_v42  ;;  %v7036_v40 = vld [vmem:[#allocation8 + $0x728] ss:$24 sps:$4 sm:$0xff]   ;;  %v7041_v41 = vld [vmem:[#allocation8 + $0x754] ss:$24 sps:$4 sm:$0xff]  }
 0x1d9   :  { %v7044_v42 = vld [vmem:[#allocation8 + $0x75c] ss:$24 sps:$4 sm:$0xff]  }
 0x1db   :  { %2286 = vmatpush1.bf16.msra.mxu1 %v6973_v44  ;;  %2409 = vmatpush1.bf16.msra.mxu0 %v6976_v45  ;;  %v7039_v44 = vld [vmem:[#allocation8 + $0x750] ss:$24 sps:$4 sm:$0xff]  }
 0x1dc   :  { %2287 = vmatprep.subr.bf16.mxu1 %v6981_v46  ;;  %2410 = vmatprep.subr.bf16.mxu0 %v6984_v50  ;;  %v7042_v45 = vld [vmem:[#allocation8 + $0x758] ss:$24 sps:$4 sm:$0xff]   ;;  %v7047_v46 = vld [vmem:[#allocation8 + $0x784] ss:$24 sps:$4 sm:$0xff]  }
 0x1dd   :  { %v7050_v50 = vld [vmem:[#allocation8 + $0x78c] ss:$24 sps:$4 sm:$0xff]  }
 0x1df   :  { %2288 = vmatpush1.bf16.msra.mxu1 %v6979_v53  ;;  %2411 = vmatpush1.bf16.msra.mxu0 %v6982_v54  ;;  %v7048_v53 = vld [vmem:[#allocation8 + $0x788] ss:$24 sps:$4 sm:$0xff]   ;;  %v7053_v54 = vld [vmem:[#allocation8 + $0x7b4] ss:$24 sps:$4 sm:$0xff]  }
 0x1e0   :  { %2289 = vmatprep.subr.bf16.mxu1 %v6987_v55  ;;  %2412 = vmatprep.subr.bf16.mxu0 %v6990_v56  ;;  %v7056_v55 = vld [vmem:[#allocation8 + $0x7bc] ss:$24 sps:$4 sm:$0xff]   ;;  %v7051_v56 = vld [vmem:[#allocation8 + $0x7b0] ss:$24 sps:$4 sm:$0xff]  }
 0x1e3   :  { %2290 = vmatpush1.bf16.msra.mxu1 %v6985_v59  ;;  %2413 = vmatpush1.bf16.msra.mxu0 %v6988_v63  ;;  %v7062_v59 = vld [vmem:[#allocation8 + $0x7ec] ss:$24 sps:$4 sm:$0xff]   ;;  %v7057_v63 = vld [vmem:[#allocation8 + $0x7e0] ss:$24 sps:$4 sm:$0xff]  }
 0x1e4   :  { %2291 = vmatprep.subr.bf16.mxu1 %v6993_v1  ;;  %2414 = vmatprep.subr.bf16.mxu0 %v6996_v2  ;;  %v7060_v1 = vld [vmem:[#allocation8 + $0x7e8] ss:$24 sps:$4 sm:$0xff]   ;;  %v7065_v2 = vld [vmem:[#allocation8 + $0x814] ss:$24 sps:$4 sm:$0xff]  }
 0x1e7   :  { %2292 = vmatpush1.bf16.msra.mxu1 %v6991_v5  ;;  %2415 = vmatpush1.bf16.msra.mxu0 %v6994_v6  ;;  %v7066_v5 = vld [vmem:[#allocation8 + $0x818] ss:$24 sps:$4 sm:$0xff]   ;;  %v7071_v6 = vld [vmem:[#allocation8 + $0x844] ss:$24 sps:$4 sm:$0xff]  }
 0x1e8   :  { %2302 = vmatprep.subr.bf16.mxu1 %v6999_v7  ;;  %2425 = vmatprep.subr.bf16.mxu0 %v7002_v8  ;;  %v7074_v7 = vld [vmem:[#allocation8 + $0x84c] ss:$24 sps:$4 sm:$0xff]   ;;  %v8258_v8 = vsub.s32 4, %v8200_v30 }
 0x1e9   :  { %v7086_v30 = vld [vmem:[#allocation8 + $0x8ac] ss:$24 sps:$4 sm:$0xff]  }
 0x1ea   :  { %2294 = vmatmul.mubr.bf16.vlgmr.msra.gmra.mrb[8].mxu1 %v8249_v9  ;;  %2417 = vmatmul.mubr.bf16.vlgmr.msra.gmra.mrb[0].mxu0 %v8249_v9 }
 0x1eb   :  { %2303 = vmatpush1.bf16.msra.mxu1 %v6997_v10  ;;  %2426 = vmatpush1.bf16.msra.mxu0 %v7000_v11  ;;  %v7072_v10 = vld [vmem:[#allocation8 + $0x848] ss:$24 sps:$4 sm:$0xff]   ;;  %v7077_v11 = vld [vmem:[#allocation8 + $0x874] ss:$24 sps:$4 sm:$0xff]  }
 0x1ec   :  { %2304 = vmatprep.subr.bf16.mxu1 %v7005_v12  ;;  %2427 = vmatprep.subr.bf16.mxu0 %v7008_v62  ;;  %v7080_v12 = vld [vmem:[#allocation8 + $0x87c] ss:$24 sps:$4 sm:$0xff]   ;;  %v220_v62 = vrot.slane %v8205_v32, %v8258_v8  ;;  %v7087_v32 = vld [vmem:[#allocation8 + $0x8d0] ss:$24 sps:$4 sm:$0xff]  }
 0x1ed   :  { %2334 = vmatprep.mubr.bf16.mxu1 %v8251_v13  ;;  %2457 = vmatprep.mubr.bf16.mxu0 %v8251_v13 }
 0x1ef   :  { %2305 = vmatpush1.bf16.msra.mxu1 %v7003_v14  ;;  %2428 = vmatpush1.bf16.msra.mxu0 %v7006_v15  ;;  %v7075_v14 = vld [vmem:[#allocation8 + $0x870] ss:$24 sps:$4 sm:$0xff]  }
 0x1f0   :  { %2306 = vmatprep.subr.bf16.mxu1 %v7011_v16  ;;  %2429 = vmatprep.subr.bf16.mxu0 %v7014_v17  ;;  %v7078_v15 = vld [vmem:[#allocation8 + $0x878] ss:$24 sps:$4 sm:$0xff]   ;;  %v7083_v16 = vld [vmem:[#allocation8 + $0x8a4] ss:$24 sps:$4 sm:$0xff]   ;;  %v444_v17 = vadd.f32 %v8231_v61, %v220_v62 }
 0x1f1   :  { %v7093_v61 = vld [vmem:[#allocation8 + $0x10] ss:$24 sps:$4 sm:$0xff]  }
 0x1f2   :  { %v2613_v62 = vld [vmem:[%s8971_s5 + $0x90] sm:$0xff] }
 0x1f3   :  { %2307 = vmatpush1.bf16.msra.mxu1 %v7009_v18  ;;  %2430 = vmatpush1.bf16.msra.mxu0 %v7012_v19  ;;  %v7081_v18 = vld [vmem:[#allocation8 + $0x8a0] ss:$24 sps:$4 sm:$0xff]  }
 0x1f4   :  { %2308 = vmatprep.subr.bf16.mxu1 %v7017_v20  ;;  %2431 = vmatprep.subr.bf16.mxu0 %v7020_v21  ;;  %v7084_v19 = vld [vmem:[#allocation8 + $0x8a8] ss:$24 sps:$4 sm:$0xff]   ;;  %v7089_v20 = vld [vmem:[#allocation8 + $0x8d4] ss:$24 sps:$4 sm:$0xff]  }
 0x1f5   :  { %v7092_v21 = vld [vmem:[#allocation8 + $0x8dc] ss:$24 sps:$4 sm:$0xff]  }
 0x1f7   :  { %2309 = vmatpush1.bf16.msra.mxu1 %v7015_v22  ;;  %2432 = vmatpush1.bf16.msra.mxu0 %v7018_v23  ;;  %v452_v22 = vmax.f32 %v444_v17, 0.0  ;;  %v7090_v23 = vld [vmem:[#allocation8 + $0x8d8] ss:$24 sps:$4 sm:$0xff]  }
 0x1f8   :  { %2310 = vmatprep.subr.bf16.mxu1 %v7023_v24  ;;  %2433 = vmatprep.subr.bf16.mxu0 %v7026_v25  ;;  %v7095_v24 = vld [vmem:[#allocation8 + $0x14] ss:$24 sps:$4 sm:$0xff]  }
 0x1f9   :  { %v8263_v25 = vpack.c.bf16 %v452_v22, %v452_v22  ;;  %v7144_v22 = vld [vmem:[#allocation8 + $0x340] ss:$24 sps:$4 sm:$0xff]  }
 0x1fb   :  { %2311 = vmatpush1.bf16.msra.mxu1 %v7021_v26  ;;  %2434 = vmatpush1.bf16.msra.mxu0 %v7024_v27  ;;  %v7098_v26 = vld [vmem:[#allocation8 + $0x44] ss:$24 sps:$4 sm:$0xff]   ;;  %v7096_v27 = vld [vmem:[#allocation8 + $0x40] ss:$24 sps:$4 sm:$0xff]  }
 0x1fc   :  { %2312 = vmatprep.subr.bf16.mxu1 %v7029_v28  ;;  %2435 = vmatprep.subr.bf16.mxu0 %v7032_v29  ;;  %v7101_v28 = vld [vmem:[#allocation8 + $0x74] ss:$24 sps:$4 sm:$0xff]   ;;  %v7099_v29 = vld [vmem:[#allocation8 + $0x70] ss:$24 sps:$4 sm:$0xff]  }
 0x1ff   :  { %2313 = vmatpush1.bf16.msra.mxu1 %v7027_v34  ;;  %2436 = vmatpush1.bf16.msra.mxu0 %v7030_v35  ;;  %v7104_v34 = vld [vmem:[#allocation8 + $0xa4] ss:$24 sps:$4 sm:$0xff]   ;;  %v7102_v35 = vld [vmem:[#allocation8 + $0xa0] ss:$24 sps:$4 sm:$0xff]  }
 0x200   :  { %2314 = vmatprep.subr.bf16.mxu1 %v7035_v36  ;;  %2437 = vmatprep.subr.bf16.mxu0 %v7038_v38  ;;  %v7107_v36 = vld [vmem:[#allocation8 + $0xd4] ss:$24 sps:$4 sm:$0xff]   ;;  %v7105_v38 = vld [vmem:[#allocation8 + $0xd0] ss:$24 sps:$4 sm:$0xff]  }
 0x203   :  { %2315 = vmatpush1.bf16.msra.mxu1 %v7033_v39  ;;  %2438 = vmatpush1.bf16.msra.mxu0 %v7036_v40  ;;  %v7110_v39 = vld [vmem:[#allocation8 + $0x104] ss:$24 sps:$4 sm:$0xff]   ;;  %v7108_v40 = vld [vmem:[#allocation8 + $0x100] ss:$24 sps:$4 sm:$0xff]  }
 0x204   :  { %2316 = vmatprep.subr.bf16.mxu1 %v7041_v41  ;;  %2439 = vmatprep.subr.bf16.mxu0 %v7044_v42  ;;  %v7113_v41 = vld [vmem:[#allocation8 + $0x134] ss:$24 sps:$4 sm:$0xff]   ;;  %v7116_v42 = vld [vmem:[#allocation8 + $0x164] ss:$24 sps:$4 sm:$0xff]  }
 0x207   :  { %2317 = vmatpush1.bf16.msra.mxu1 %v7039_v44  ;;  %2440 = vmatpush1.bf16.msra.mxu0 %v7042_v45  ;;  %v7114_v44 = vld [vmem:[#allocation8 + $0x160] ss:$24 sps:$4 sm:$0xff]   ;;  %v7119_v45 = vld [vmem:[#allocation8 + $0x194] ss:$24 sps:$4 sm:$0xff]  }
 0x208   :  { %2318 = vmatprep.subr.bf16.mxu1 %v7047_v46  ;;  %2441 = vmatprep.subr.bf16.mxu0 %v7050_v50  ;;  %v7117_v46 = vld [vmem:[#allocation8 + $0x190] ss:$24 sps:$4 sm:$0xff]   ;;  %v7122_v50 = vld [vmem:[#allocation8 + $0x1c4] ss:$24 sps:$4 sm:$0xff]  }
 0x20b   :  { %2319 = vmatpush1.bf16.msra.mxu1 %v7045_v52  ;;  %2442 = vmatpush1.bf16.msra.mxu0 %v7048_v53  ;;  %v7120_v52 = vld [vmem:[#allocation8 + $0x1c0] ss:$24 sps:$4 sm:$0xff]   ;;  %v7125_v53 = vld [vmem:[#allocation8 + $0x1f4] ss:$24 sps:$4 sm:$0xff]  }
 0x20c   :  { %2320 = vmatprep.subr.bf16.mxu1 %v7053_v54  ;;  %2443 = vmatprep.subr.bf16.mxu0 %v7056_v55  ;;  %v7123_v54 = vld [vmem:[#allocation8 + $0x1f0] ss:$24 sps:$4 sm:$0xff]   ;;  %v7128_v55 = vld [vmem:[#allocation8 + $0x224] ss:$24 sps:$4 sm:$0xff]  }
 0x20f   :  { %2321 = vmatpush1.bf16.msra.mxu1 %v7051_v56  ;;  %2444 = vmatpush1.bf16.msra.mxu0 %v7054_v57  ;;  %v7126_v56 = vld [vmem:[#allocation8 + $0x220] ss:$24 sps:$4 sm:$0xff]   ;;  %v7131_v57 = vld [vmem:[#allocation8 + $0x254] ss:$24 sps:$4 sm:$0xff]  }
 0x210   :  { %2322 = vmatprep.subr.bf16.mxu1 %v7059_v58  ;;  %2445 = vmatprep.subr.bf16.mxu0 %v7062_v59  ;;  %v7129_v58 = vld [vmem:[#allocation8 + $0x250] ss:$24 sps:$4 sm:$0xff]   ;;  %v7134_v59 = vld [vmem:[#allocation8 + $0x284] ss:$24 sps:$4 sm:$0xff]  }
 0x213   :  { %2323 = vmatpush1.bf16.msra.mxu1 %v7057_v63  ;;  %2446 = vmatpush1.bf16.msra.mxu0 %v7060_v1  ;;  %v7132_v63 = vld [vmem:[#allocation8 + $0x280] ss:$24 sps:$4 sm:$0xff]   ;;  %v7137_v1 = vld [vmem:[#allocation8 + $0x2b4] ss:$24 sps:$4 sm:$0xff]  }
 0x214   :  { %2324 = vmatprep.subr.bf16.mxu1 %v7065_v2  ;;  %2447 = vmatprep.subr.bf16.mxu0 %v7068_v3  ;;  %v7135_v2 = vld [vmem:[#allocation8 + $0x2b0] ss:$24 sps:$4 sm:$0xff]   ;;  %v7140_v3 = vld [vmem:[#allocation8 + $0x2e4] ss:$24 sps:$4 sm:$0xff]  }
 0x217   :  { %2325 = vmatpush1.bf16.msra.mxu1 %v7063_v4  ;;  %2448 = vmatpush1.bf16.msra.mxu0 %v7066_v5  ;;  %v2611_v4 = vld [vmem:[%s8971_s5 + $0x80] sm:$0xff]  ;;  %v2612_v5 = vld [vmem:[%s8971_s5 + $0x88] sm:$0xff] }
 0x218   :  { %2326 = vmatprep.subr.bf16.mxu1 %v7071_v6  ;;  %2449 = vmatprep.subr.bf16.mxu0 %v7074_v7  ;;  %v6520_v6 = vpack.c.bf16 %v2612_v5, %v2611_v4  ;;  %v2595_v7 = vld [vmem:[%s8971_s5] sm:$0xff]  ;;  %v7161_v5 = vld [vmem:[#allocation8 + $0x434] ss:$24 sps:$4 sm:$0xff]  }
 0x219   :  { %v7156_v4 = vld [vmem:[#allocation8 + $0x400] ss:$24 sps:$4 sm:$0xff]  }
 0x21b   :  { %2327 = vmatpush1.bf16.msra.mxu1 %v7069_v48  ;;  %2450 = vmatpush1.bf16.msra.mxu0 %v7072_v10  ;;  %v2596_v48 = vld [vmem:[%s8971_s5 + $0x8] sm:$0xff] }
 0x21c   :  { %2328 = vmatprep.subr.bf16.mxu1 %v7077_v11  ;;  %2451 = vmatprep.subr.bf16.mxu0 %v7080_v12  ;;  %v6522_v10 = vpack.c.bf16 %v2596_v48, %v2595_v7  ;;  %v7138_v11 = vld [vmem:[#allocation8 + $0x2e0] ss:$24 sps:$4 sm:$0xff]   ;;  %v7143_v12 = vld [vmem:[#allocation8 + $0x314] ss:$24 sps:$4 sm:$0xff]  }
 0x21d   :  { %v2626_v7 = vld [vmem:[%s8971_s5 + $0xf8] sm:$0xff] }
 0x21f   :  { %2329 = vmatpush1.bf16.msra.mxu1 %v7075_v14  ;;  %2452 = vmatpush1.bf16.msra.mxu0 %v7078_v15  ;;  %v2614_v14 = vld [vmem:[%s8971_s5 + $0x98] sm:$0xff] }
 0x220   :  { %2330 = vmatprep.subr.bf16.mxu1 %v7083_v16  ;;  %2453 = vmatprep.subr.bf16.mxu0 %v7086_v30  ;;  %v6524_v15 = vpack.c.bf16 %v2614_v14, %v2613_v62  ;;  %v2597_v16 = vld [vmem:[%s8971_s5 + $0x10] sm:$0xff]  ;;  %v2598_v30 = vld [vmem:[%s8971_s5 + $0x18] sm:$0xff] }
 0x221   :  { %v6526_v17 = vpack.c.bf16 %v2598_v30, %v2597_v16  ;;  %v7159_v62 = vld [vmem:[#allocation8 + $0x430] ss:$24 sps:$4 sm:$0xff]   ;;  %v7164_v14 = vld [vmem:[#allocation8 + $0x464] ss:$24 sps:$4 sm:$0xff]  }
 0x222   :  { %v2644_v16 = vld [vmem:[%s8971_s5 + $0x188] sm:$0xff] }
 0x223   :  { %2331 = vmatpush1.bf16.msra.mxu1 %v7081_v18  ;;  %2454 = vmatpush1.bf16.msra.mxu0 %v7084_v19  ;;  %v7141_v18 = vld [vmem:[#allocation8 + $0x310] ss:$24 sps:$4 sm:$0xff]   ;;  %v7146_v19 = vld [vmem:[#allocation8 + $0x344] ss:$24 sps:$4 sm:$0xff]  }
 0x224   :  { %2332 = vmatprep.subr.bf16.mxu1 %v7089_v20  ;;  %2455 = vmatprep.subr.bf16.mxu0 %v7092_v21  ;;  %v2615_v20 = vld [vmem:[%s8971_s5 + $0xa0] sm:$0xff]  ;;  %v2616_v21 = vld [vmem:[%s8971_s5 + $0xa8] sm:$0xff] }
 0x227   :  { %2333 = vmatpush1.bf16.msra.mxu1 %v7087_v32  ;;  %2456 = vmatpush1.bf16.msra.mxu0 %v7090_v23  ;;  %v6528_v32 = vpack.c.bf16 %v2616_v21, %v2615_v20  ;;  %v2599_v23 = vld [vmem:[%s8971_s5 + $0x20] sm:$0xff] }
 0x228   :  { %2466 = vmatprep.subr.bf16.mxu1 %v7095_v24  ;;  %6521 = vmatprep.subr.bf16.mxu0 %v6520_v6  ;;  %v2600_v24 = vld [vmem:[%s8971_s5 + $0x28] sm:$0xff]  ;;  %v2625_v6 = vld [vmem:[%s8971_s5 + $0xf0] sm:$0xff]  ;;  %v7170_v20 = vld [vmem:[#allocation8 + $0x4c4] ss:$24 sps:$4 sm:$0xff]  }
 0x229   :  { %v6548_v48 = vpack.c.bf16 %v2626_v7, %v2625_v6  ;;  %v7168_v21 = vld [vmem:[#allocation8 + $0x4c0] ss:$24 sps:$4 sm:$0xff]   ;;  %v7233_v6 = vld [vmem:[#allocation8 + $0x8b4] ss:$24 sps:$4 sm:$0xff]   ;;  %v7231_v7 = vld [vmem:[#allocation8 + $0x8b0] ss:$24 sps:$4 sm:$0xff]  }
 0x22a   :  { %2335 = vmatmul.mubr.bf16.vlgmr.msra.gmra.mrb[8].mxu1 %v8263_v25  ;;  %2458 = vmatmul.mubr.bf16.vlgmr.msra.gmra.mrb[0].mxu0 %v8263_v25 }
 0x22b   :  { %2467 = vmatpush1.bf16.msra.mxu1 %v7093_v61  ;;  %2498 = vmatprep.mubr.bf16.mxu1 %v8219_v47  ;;  %v7111_v47 = vld [vmem:[#allocation8 + $0x130] ss:$24 sps:$4 sm:$0xff]   ;;  %v6530_v61 = vpack.c.bf16 %v2600_v24, %v2599_v23  ;;  %v7176_v23 = vld [vmem:[#allocation8 + $0x524] ss:$24 sps:$4 sm:$0xff]   ;;  %v7174_v24 = vld [vmem:[#allocation8 + $0x520] ss:$24 sps:$4 sm:$0xff]  }
 0x22c   :  { %2468 = vmatprep.subr.bf16.mxu1 %v7098_v26  ;;  %6523 = vmatpush3.bf16.msra.mxu0 %v6522_v10  ;;  %v2617_v26 = vld [vmem:[%s8971_s5 + $0xb0] sm:$0xff] }
 0x22d   :  { %6525 = vmatprep.subr.bf16.mxu0 %v6524_v15  ;;  %v2609_v10 = vld [vmem:[%s8971_s5 + $0x70] sm:$0xff]  ;;  %v2643_v15 = vld [vmem:[%s8971_s5 + $0x180] sm:$0xff] }
 0x22e   :  { %v6552_v30 = vpack.c.bf16 %v2644_v16, %v2643_v15 }
 0x22f   :  { %2469 = vmatpush1.bf16.msra.mxu1 %v7096_v27  ;;  %v2618_v27 = vld [vmem:[%s8971_s5 + $0xb8] sm:$0xff] }
 0x230   :  { %2470 = vmatprep.subr.bf16.mxu1 %v7101_v28  ;;  %6527 = vmatpush3.bf16.msra.mxu0 %v6526_v17  ;;  %v2601_v28 = vld [vmem:[%s8971_s5 + $0x30] sm:$0xff] }
 0x231   :  { %6529 = vmatprep.subr.bf16.mxu0 %v6528_v32  ;;  %v7162_v17 = vld [vmem:[#allocation8 + $0x460] ss:$24 sps:$4 sm:$0xff]   ;;  %v7171_v32 = vld [vmem:[#allocation8 + $0x4f0] ss:$24 sps:$4 sm:$0xff]  }
 0x233   :  { %2471 = vmatpush1.bf16.msra.mxu1 %v7099_v29  ;;  %v6532_v29 = vpack.c.bf16 %v2618_v27, %v2617_v26  ;;  %v7177_v26 = vld [vmem:[#allocation8 + $0x550] ss:$24 sps:$4 sm:$0xff]   ;;  %v7182_v27 = vld [vmem:[#allocation8 + $0x584] ss:$24 sps:$4 sm:$0xff]  }
 0x234   :  { %2472 = vmatprep.subr.bf16.mxu1 %v7104_v34  ;;  %v2619_v34 = vld [vmem:[%s8971_s5 + $0xc0] sm:$0xff]  ;;  %6531 = vmatpush3.bf16.msra.mxu0 %v6530_v61  ;;  %v7179_v61 = vld [vmem:[#allocation8 + $0x554] ss:$24 sps:$4 sm:$0xff]  }
 0x235   :  { %6533 = vmatprep.subr.bf16.mxu0 %v6532_v29  ;;  %v7185_v29 = vld [vmem:[#allocation8 + $0x5b4] ss:$24 sps:$4 sm:$0xff]  }
 0x237   :  { %2473 = vmatpush1.bf16.msra.mxu1 %v7102_v35  ;;  %v2620_v35 = vld [vmem:[%s8971_s5 + $0xc8] sm:$0xff] }
 0x238   :  { %2474 = vmatprep.subr.bf16.mxu1 %v7107_v36  ;;  %v7149_v36 = vld [vmem:[#allocation8 + $0x374] ss:$24 sps:$4 sm:$0xff]  }
 0x23b   :  { %2475 = vmatpush1.bf16.msra.mxu1 %v7105_v38 }
 0x23c   :  { %2476 = vmatprep.subr.bf16.mxu1 %v7110_v39  ;;  %v2603_v39 = vld [vmem:[%s8971_s5 + $0x40] sm:$0xff] }
 0x23f   :  { %2477 = vmatpush1.bf16.msra.mxu1 %v7108_v40  ;;  %v2604_v40 = vld [vmem:[%s8971_s5 + $0x48] sm:$0xff] }
 0x240   :  { %2478 = vmatprep.subr.bf16.mxu1 %v7113_v41  ;;  %v7147_v41 = vld [vmem:[#allocation8 + $0x370] ss:$24 sps:$4 sm:$0xff]  }
 0x243   :  { %2479 = vmatpush1.bf16.msra.mxu1 %v7111_v47  ;;  %v2621_v47 = vld [vmem:[%s8971_s5 + $0xd0] sm:$0xff] }
 0x244   :  { %2480 = vmatprep.subr.bf16.mxu1 %v7116_v42  ;;  %v2622_v42 = vld [vmem:[%s8971_s5 + $0xd8] sm:$0xff] }
 0x247   :  { %2481 = vmatpush1.bf16.msra.mxu1 %v7114_v44  ;;  %v7152_v44 = vld [vmem:[#allocation8 + $0x3a4] ss:$24 sps:$4 sm:$0xff]  }
 0x248   :  { %2482 = vmatprep.subr.bf16.mxu1 %v7119_v45  ;;  %v6538_v45 = vpack.c.bf16 %v2604_v40, %v2603_v39  ;;  %v7192_v39 = vld [vmem:[#allocation8 + $0x640] ss:$24 sps:$4 sm:$0xff]   ;;  %v7197_v40 = vld [vmem:[#allocation8 + $0x674] ss:$24 sps:$4 sm:$0xff]  }
 0x24b   :  { %2483 = vmatpush1.bf16.msra.mxu1 %v7117_v46  ;;  %v6540_v46 = vpack.c.bf16 %v2622_v42, %v2621_v47  ;;  %v7200_v47 = vld [vmem:[#allocation8 + $0x6a4] ss:$24 sps:$4 sm:$0xff]   ;;  %v7198_v42 = vld [vmem:[#allocation8 + $0x6a0] ss:$24 sps:$4 sm:$0xff]  }
 0x24c   :  { %2484 = vmatprep.subr.bf16.mxu1 %v7122_v50  ;;  %v2605_v50 = vld [vmem:[%s8971_s5 + $0x50] sm:$0xff] }
 0x24f   :  { %2485 = vmatpush1.bf16.msra.mxu1 %v7120_v52  ;;  %v2606_v52 = vld [vmem:[%s8971_s5 + $0x58] sm:$0xff] }
 0x250   :  { %2486 = vmatprep.subr.bf16.mxu1 %v7125_v53  ;;  %v7150_v53 = vld [vmem:[#allocation8 + $0x3a0] ss:$24 sps:$4 sm:$0xff]  }
 0x253   :  { %2487 = vmatpush1.bf16.msra.mxu1 %v7123_v54  ;;  %v2623_v54 = vld [vmem:[%s8971_s5 + $0xe0] sm:$0xff] }
 0x254   :  { %2488 = vmatprep.subr.bf16.mxu1 %v7128_v55  ;;  %v2624_v55 = vld [vmem:[%s8971_s5 + $0xe8] sm:$0xff] }
 0x257   :  { %2489 = vmatpush1.bf16.msra.mxu1 %v7126_v56  ;;  %v7155_v56 = vld [vmem:[#allocation8 + $0x3d4] ss:$24 sps:$4 sm:$0xff]  }
 0x258   :  { %2490 = vmatprep.subr.bf16.mxu1 %v7131_v57  ;;  %v6542_v57 = vpack.c.bf16 %v2606_v52, %v2605_v50  ;;  %v7209_v50 = vld [vmem:[#allocation8 + $0x734] ss:$24 sps:$4 sm:$0xff]   ;;  %v7212_v52 = vld [vmem:[#allocation8 + $0x764] ss:$24 sps:$4 sm:$0xff]  }
 0x25b   :  { %2491 = vmatpush1.bf16.msra.mxu1 %v7129_v58  ;;  %v6544_v58 = vpack.c.bf16 %v2624_v55, %v2623_v54  ;;  %v7215_v54 = vld [vmem:[#allocation8 + $0x794] ss:$24 sps:$4 sm:$0xff]   ;;  %v7213_v55 = vld [vmem:[#allocation8 + $0x790] ss:$24 sps:$4 sm:$0xff]  }
 0x25c   :  { %2492 = vmatprep.subr.bf16.mxu1 %v7134_v59  ;;  %v2607_v59 = vld [vmem:[%s8971_s5 + $0x60] sm:$0xff] }
 0x25f   :  { %2493 = vmatpush1.bf16.msra.mxu1 %v7132_v63  ;;  %v2608_v63 = vld [vmem:[%s8971_s5 + $0x68] sm:$0xff] }
 0x260   :  { %2494 = vmatprep.subr.bf16.mxu1 %v7137_v1  ;;  %v7153_v1 = vld [vmem:[#allocation8 + $0x3d0] ss:$24 sps:$4 sm:$0xff]  }
 0x263   :  { %2495 = vmatpush1.bf16.msra.mxu1 %v7135_v2  ;;  %v7158_v2 = vld [vmem:[#allocation8 + $0x404] ss:$24 sps:$4 sm:$0xff]  }
 0x264   :  { %2496 = vmatprep.subr.bf16.mxu1 %v7140_v3  ;;  %v6546_v3 = vpack.c.bf16 %v2608_v63, %v2607_v59  ;;  %v7219_v59 = vld [vmem:[#allocation8 + $0x7f0] ss:$24 sps:$4 sm:$0xff]   ;;  %v7224_v63 = vld [vmem:[#allocation8 + $0x824] ss:$24 sps:$4 sm:$0xff]  }
 0x267   :  { %2497 = vmatpush1.bf16.msra.mxu1 %v7138_v11  ;;  %v2610_v11 = vld [vmem:[%s8971_s5 + $0x78] sm:$0xff] }
 0x268   :  { %2507 = vmatprep.subr.bf16.mxu1 %v7143_v12  ;;  %v6550_v12 = vpack.c.bf16 %v2610_v11, %v2609_v10  ;;  %v7234_v10 = vld [vmem:[#allocation8 + $0x8e0] ss:$24 sps:$4 sm:$0xff]  }
 0x269   :  { %v8375_v11 = vld [vmem:[#allocation10] sm:$0x3f] }
 0x26a   :  { %2499 = vmatmul.mubr.bf16.vlgmr.msra.gmra.mrb[12].mxu1 %v8223_v49  ;;  %v2602_v49 = vld [vmem:[%s8971_s5 + $0x38] sm:$0xff] }
 0x26b   :  { %2508 = vmatpush1.bf16.msra.mxu1 %v7141_v18  ;;  %2539 = vmatprep.mubr.bf16.mxu1 %v8229_v60  ;;  %v6534_v38 = vpack.c.bf16 %v2602_v49, %v2601_v28  ;;  %v6536_v60 = vpack.c.bf16 %v2620_v35, %v2619_v34  ;;  %v7167_v18 = vld [vmem:[#allocation8 + $0x494] ss:$24 sps:$4 sm:$0xff]   ;;  %v7180_v28 = vld [vmem:[#allocation8 + $0x580] ss:$24 sps:$4 sm:$0xff]   ;;  %v7183_v49 = vld [vmem:[#allocation8 + $0x5b0] ss:$24 sps:$4 sm:$0xff]  }
 0x26c   :  { %2509 = vmatprep.subr.bf16.mxu1 %v7146_v19  ;;  %v7165_v19 = vld [vmem:[#allocation8 + $0x490] ss:$24 sps:$4 sm:$0xff]   ;;  %v7188_v34 = vld [vmem:[#allocation8 + $0x5e4] ss:$24 sps:$4 sm:$0xff]   ;;  %v7186_v35 = vld [vmem:[#allocation8 + $0x5e0] ss:$24 sps:$4 sm:$0xff]  }
 0x26d   :  { %6535 = vmatpush3.bf16.msra.mxu0 %v6534_v38  ;;  %v7189_v38 = vld [vmem:[#allocation8 + $0x610] ss:$24 sps:$4 sm:$0xff]  }
 0x26e   :  { %6537 = vmatprep.subr.bf16.mxu0 %v6536_v60  ;;  %v7194_v60 = vld [vmem:[#allocation8 + $0x644] ss:$24 sps:$4 sm:$0xff]  }
 0x26f   :  { %2510 = vmatpush1.bf16.msra.mxu1 %v7144_v22  ;;  %v7173_v22 = vld [vmem:[#allocation8 + $0x4f4] ss:$24 sps:$4 sm:$0xff]  }
 0x270   :  { %2511 = vmatprep.subr.bf16.mxu1 %v7149_v36  ;;  %v7191_v36 = vld [vmem:[#allocation8 + $0x614] ss:$24 sps:$4 sm:$0xff]  }
 0x271   :  { %6539 = vmatpush3.bf16.msra.mxu0 %v6538_v45  ;;  %v7201_v45 = vld [vmem:[#allocation8 + $0x6d0] ss:$24 sps:$4 sm:$0xff]  }
 0x272   :  { %6541 = vmatprep.subr.bf16.mxu0 %v6540_v46  ;;  %v7206_v46 = vld [vmem:[#allocation8 + $0x704] ss:$24 sps:$4 sm:$0xff]  }
 0x273   :  { %2512 = vmatpush1.bf16.msra.mxu1 %v7147_v41  ;;  %v7195_v41 = vld [vmem:[#allocation8 + $0x670] ss:$24 sps:$4 sm:$0xff]  }
 0x274   :  { %2513 = vmatprep.subr.bf16.mxu1 %v7152_v44  ;;  %v7203_v44 = vld [vmem:[#allocation8 + $0x6d4] ss:$24 sps:$4 sm:$0xff]  }
 0x275   :  { %6543 = vmatpush3.bf16.msra.mxu0 %v6542_v57  ;;  %v7216_v57 = vld [vmem:[#allocation8 + $0x7c0] ss:$24 sps:$4 sm:$0xff]  }
 0x276   :  { %6545 = vmatprep.subr.bf16.mxu0 %v6544_v58  ;;  %v7221_v58 = vld [vmem:[#allocation8 + $0x7f4] ss:$24 sps:$4 sm:$0xff]  }
 0x277   :  { %2514 = vmatpush1.bf16.msra.mxu1 %v7150_v53  ;;  %v7210_v53 = vld [vmem:[#allocation8 + $0x760] ss:$24 sps:$4 sm:$0xff]  }
 0x278   :  { %2515 = vmatprep.subr.bf16.mxu1 %v7155_v56  ;;  %v7218_v56 = vld [vmem:[#allocation8 + $0x7c4] ss:$24 sps:$4 sm:$0xff]  }
 0x279   :  { %6547 = vmatpush3.bf16.msra.mxu0 %v6546_v3  ;;  %v7225_v3 = vld [vmem:[#allocation8 + $0x850] ss:$24 sps:$4 sm:$0xff]  }
 0x27a   :  { %6549 = vmatprep.subr.bf16.mxu0 %v6548_v48  ;;  %v7236_v48 = vld [vmem:[#allocation8 + $0x8e4] ss:$24 sps:$4 sm:$0xff]  }
 0x27b   :  { %2516 = vmatpush1.bf16.msra.mxu1 %v7153_v1  ;;  %v7222_v1 = vld [vmem:[#allocation8 + $0x820] ss:$24 sps:$4 sm:$0xff]  }
 0x27c   :  { %2517 = vmatprep.subr.bf16.mxu1 %v7158_v2  ;;  %v7227_v2 = vld [vmem:[#allocation8 + $0x854] ss:$24 sps:$4 sm:$0xff]  }
 0x27d   :  { %6551 = vmatpush3.bf16.msra.mxu0 %v6550_v12  ;;  %v753_v12 = vrot.slane %v8375_v11, %v8203_v31 }
 0x27e   :  { %6553 = vmatprep.subr.bf16.mxu0 %v6552_v30 }
 0x27f   :  { %2518 = vmatpush1.bf16.msra.mxu1 %v7156_v4  ;;  %v7230_v4 = vld [vmem:[#allocation8 + $0x884] ss:$24 sps:$4 sm:$0xff]  }
 0x280   :  { %2519 = vmatprep.subr.bf16.mxu1 %v7161_v5  ;;  %v7228_v5 = vld [vmem:[#allocation8 + $0x880] ss:$24 sps:$4 sm:$0xff]  }
 0x283   :  { %2520 = vmatpush1.bf16.msra.mxu1 %v7159_v62  ;;  %v757_v62 = vrot.slane %v8375_v11, %v8208_v33 }
 0x284   :  { %2521 = vmatprep.subr.bf16.mxu1 %v7164_v14  ;;  %v765_v14 = vrot.slane %v8375_v11, %v8215_v37 }
 0x287   :  { %2522 = vmatpush1.bf16.msra.mxu1 %v7162_v17 }
 0x288   :  { %2523 = vmatprep.subr.bf16.mxu1 %v7167_v18 }
 0x28b   :  { %2524 = vmatpush1.bf16.msra.mxu1 %v7165_v19  ;;  %v2628_v19 = vld [vmem:[%s8971_s5 + $0x108] sm:$0xff] }
 0x28c   :  { %2525 = vmatprep.subr.bf16.mxu1 %v7170_v20 }
 0x28f   :  { %2526 = vmatpush1.bf16.msra.mxu1 %v7168_v21 }
 0x290   :  { %2527 = vmatprep.subr.bf16.mxu1 %v7173_v22 }
 0x293   :  { %2528 = vmatpush1.bf16.msra.mxu1 %v7171_v32 }
 0x294   :  { %2529 = vmatprep.subr.bf16.mxu1 %v7176_v23  ;;  %v2645_v23 = vld [vmem:[%s8971_s5 + $0x190] sm:$0xff] }
 0x297   :  { %2530 = vmatpush1.bf16.msra.mxu1 %v7174_v24  ;;  %v2646_v24 = vld [vmem:[%s8971_s5 + $0x198] sm:$0xff] }
 0x298   :  { %2531 = vmatprep.subr.bf16.mxu1 %v7179_v61 }
 0x29b   :  { %2532 = vmatpush1.bf16.msra.mxu1 %v7177_v26 }
 0x29c   :  { %2533 = vmatprep.subr.bf16.mxu1 %v7182_v27 }
 0x29f   :  { %2534 = vmatpush1.bf16.msra.mxu1 %v7180_v28 }
 0x2a0   :  { %2535 = vmatprep.subr.bf16.mxu1 %v7185_v29 }
 0x2a3   :  { %2536 = vmatpush1.bf16.msra.mxu1 %v7183_v49  ;;  %v6556_v49 = vpack.c.bf16 %v2646_v24, %v2645_v23  ;;  %v2677_v23 = vld [vmem:[%s8971_s5 + $0x290] sm:$0xff]  ;;  %v2678_v24 = vld [vmem:[%s8971_s5 + $0x298] sm:$0xff] }
 0x2a4   :  { %2537 = vmatprep.subr.bf16.mxu1 %v7188_v34  ;;  %v2629_v34 = vld [vmem:[%s8971_s5 + $0x110] sm:$0xff] }
 0x2a7   :  { %2538 = vmatpush1.bf16.msra.mxu1 %v7186_v35  ;;  %v2630_v35 = vld [vmem:[%s8971_s5 + $0x118] sm:$0xff] }
 0x2a8   :  { %2548 = vmatprep.subr.bf16.mxu1 %v7191_v36 }
 0x2aa   :  { %2540 = vmatmul.mubr.bf16.vlgmr.msra.gmra.mrb[12].mxu1 %v8249_v9  ;;  %v7204_v9 = vld [vmem:[#allocation8 + $0x700] ss:$24 sps:$4 sm:$0xff]  }
 0x2ab   :  { %2549 = vmatpush1.bf16.msra.mxu1 %v7189_v38  ;;  %2580 = vmatprep.mubr.bf16.mxu1 %v8251_v13  ;;  %v7207_v13 = vld [vmem:[#allocation8 + $0x730] ss:$24 sps:$4 sm:$0xff]  }
 0x2ac   :  { %2550 = vmatprep.subr.bf16.mxu1 %v7194_v60  ;;  %v2647_v38 = vld [vmem:[%s8971_s5 + $0x1a0] sm:$0xff]  ;;  %v2648_v60 = vld [vmem:[%s8971_s5 + $0x1a8] sm:$0xff] }
 0x2af   :  { %2551 = vmatpush1.bf16.msra.mxu1 %v7192_v39  ;;  %v6558_v39 = vpack.c.bf16 %v2630_v35, %v2629_v34 }
 0x2b0   :  { %2552 = vmatprep.subr.bf16.mxu1 %v7197_v40  ;;  %v6560_v40 = vpack.c.bf16 %v2648_v60, %v2647_v38  ;;  %v2664_v38 = vld [vmem:[%s8971_s5 + $0x228] sm:$0xff]  ;;  %v2681_v60 = vld [vmem:[%s8971_s5 + $0x2b0] sm:$0xff] }
 0x2b3   :  { %2553 = vmatpush1.bf16.msra.mxu1 %v7195_v41  ;;  %v2631_v41 = vld [vmem:[%s8971_s5 + $0x120] sm:$0xff] }
 0x2b4   :  { %2554 = vmatprep.subr.bf16.mxu1 %v7200_v47  ;;  %v2632_v47 = vld [vmem:[%s8971_s5 + $0x128] sm:$0xff] }
 0x2b7   :  { %2555 = vmatpush1.bf16.msra.mxu1 %v7198_v42  ;;  %v2649_v42 = vld [vmem:[%s8971_s5 + $0x1b0] sm:$0xff] }
 0x2b8   :  { %2556 = vmatprep.subr.bf16.mxu1 %v7203_v44  ;;  %v2650_v44 = vld [vmem:[%s8971_s5 + $0x1b8] sm:$0xff] }
 0x2bb   :  { %2557 = vmatpush1.bf16.msra.mxu1 %v7201_v45  ;;  %v6562_v45 = vpack.c.bf16 %v2632_v47, %v2631_v41  ;;  %v2665_v47 = vld [vmem:[%s8971_s5 + $0x230] sm:$0xff] }
 0x2bc   :  { %2558 = vmatprep.subr.bf16.mxu1 %v7206_v46  ;;  %v6564_v46 = vpack.c.bf16 %v2650_v44, %v2649_v42  ;;  %v2666_v42 = vld [vmem:[%s8971_s5 + $0x238] sm:$0xff]  ;;  %v2683_v44 = vld [vmem:[%s8971_s5 + $0x2c0] sm:$0xff] }
 0x2bf   :  { %2559 = vmatpush1.bf16.msra.mxu1 %v7204_v9  ;;  %v2633_v9 = vld [vmem:[%s8971_s5 + $0x130] sm:$0xff] }
 0x2c0   :  { %2560 = vmatprep.subr.bf16.mxu1 %v7209_v50  ;;  %v2634_v50 = vld [vmem:[%s8971_s5 + $0x138] sm:$0xff] }
 0x2c3   :  { %2561 = vmatpush1.bf16.msra.mxu1 %v7207_v13  ;;  %v2651_v13 = vld [vmem:[%s8971_s5 + $0x1c0] sm:$0xff] }
 0x2c4   :  { %2562 = vmatprep.subr.bf16.mxu1 %v7212_v52  ;;  %v2652_v52 = vld [vmem:[%s8971_s5 + $0x1c8] sm:$0xff] }
 0x2c7   :  { %2563 = vmatpush1.bf16.msra.mxu1 %v7210_v53  ;;  %v6566_v53 = vpack.c.bf16 %v2634_v50, %v2633_v9  ;;  %v2667_v50 = vld [vmem:[%s8971_s5 + $0x240] sm:$0xff] }
 0x2c8   :  { %2564 = vmatprep.subr.bf16.mxu1 %v7215_v54  ;;  %v6568_v54 = vpack.c.bf16 %v2652_v52, %v2651_v13  ;;  %v2668_v13 = vld [vmem:[%s8971_s5 + $0x248] sm:$0xff]  ;;  %v2685_v52 = vld [vmem:[%s8971_s5 + $0x2d0] sm:$0xff] }
 0x2cb   :  { %2565 = vmatpush1.bf16.msra.mxu1 %v7213_v55  ;;  %v2635_v55 = vld [vmem:[%s8971_s5 + $0x140] sm:$0xff] }
 0x2cc   :  { %2566 = vmatprep.subr.bf16.mxu1 %v7218_v56  ;;  %v2636_v56 = vld [vmem:[%s8971_s5 + $0x148] sm:$0xff] }
 0x2cf   :  { %2567 = vmatpush1.bf16.msra.mxu1 %v7216_v57  ;;  %v2653_v57 = vld [vmem:[%s8971_s5 + $0x1d0] sm:$0xff] }
 0x2d0   :  { %2568 = vmatprep.subr.bf16.mxu1 %v7221_v58  ;;  %v2654_v58 = vld [vmem:[%s8971_s5 + $0x1d8] sm:$0xff] }
 0x2d3   :  { %2569 = vmatpush1.bf16.msra.mxu1 %v7219_v59  ;;  %v6570_v59 = vpack.c.bf16 %v2636_v56, %v2635_v55  ;;  %v2669_v56 = vld [vmem:[%s8971_s5 + $0x250] sm:$0xff] }
 0x2d4   :  { %2570 = vmatprep.subr.bf16.mxu1 %v7224_v63  ;;  %v6572_v63 = vpack.c.bf16 %v2654_v58, %v2653_v57  ;;  %v2670_v57 = vld [vmem:[%s8971_s5 + $0x258] sm:$0xff]  ;;  %v2687_v58 = vld [vmem:[%s8971_s5 + $0x2e0] sm:$0xff] }
 0x2d7   :  { %2571 = vmatpush1.bf16.msra.mxu1 %v7222_v1  ;;  %v2637_v1 = vld [vmem:[%s8971_s5 + $0x150] sm:$0xff] }
 0x2d8   :  { %2572 = vmatprep.subr.bf16.mxu1 %v7227_v2  ;;  %v2638_v2 = vld [vmem:[%s8971_s5 + $0x158] sm:$0xff] }
 0x2db   :  { %2573 = vmatpush1.bf16.msra.mxu1 %v7225_v3  ;;  %v2655_v3 = vld [vmem:[%s8971_s5 + $0x1e0] sm:$0xff] }
 0x2dc   :  { %2574 = vmatprep.subr.bf16.mxu1 %v7230_v4  ;;  %v2656_v4 = vld [vmem:[%s8971_s5 + $0x1e8] sm:$0xff] }
 0x2df   :  { %2575 = vmatpush1.bf16.msra.mxu1 %v7228_v5  ;;  %v6574_v5 = vpack.c.bf16 %v2638_v2, %v2637_v1  ;;  %v2671_v2 = vld [vmem:[%s8971_s5 + $0x260] sm:$0xff] }
 0x2e0   :  { %2576 = vmatprep.subr.bf16.mxu1 %v7233_v6  ;;  %v6576_v6 = vpack.c.bf16 %v2656_v4, %v2655_v3  ;;  %v2672_v3 = vld [vmem:[%s8971_s5 + $0x268] sm:$0xff] }
 0x2e1   :  { %v6610_v4 = vpack.c.bf16 %v2672_v3, %v2671_v2  ;;  %v7252_v2 = vld [vmem:[#allocation16 + $0x68] ss:$24 sps:$4 sm:$0xff]   ;;  %v7260_v3 = vld [vmem:[#allocation16 + $0x9c] ss:$24 sps:$4 sm:$0xff]  }
 0x2e3   :  { %2577 = vmatpush1.bf16.msra.mxu1 %v7231_v7  ;;  %v2639_v7 = vld [vmem:[%s8971_s5 + $0x160] sm:$0xff] }
 0x2e4   :  { %2578 = vmatprep.subr.bf16.mxu1 %v7236_v48  ;;  %v2640_v48 = vld [vmem:[%s8971_s5 + $0x168] sm:$0xff] }
 0x2e7   :  { %2579 = vmatpush1.bf16.msra.mxu1 %v7234_v10  ;;  %v2657_v10 = vld [vmem:[%s8971_s5 + $0x1f0] sm:$0xff] }
 0x2ea   :  { %2581 = vmatmul.mubr.bf16.vlgmr.msra.gmra.mrb[12].mxu1 %v8263_v25  ;;  %v2627_v25 = vld [vmem:[%s8971_s5 + $0x100] sm:$0xff] }
 0x2eb   :  { %v6554_v28 = vpack.c.bf16 %v2628_v19, %v2627_v25  ;;  %v2676_v25 = vld [vmem:[%s8971_s5 + $0x288] sm:$0xff] }
 0x2fd   :  { %v2336_v15 = vpop.f32.mrb[8].mxu1  ;;  %v8383_v16 = vpop.f32.mrb[0].mxu0 }
 0x2fe   :  { %v6724_v30 = vadd.f32 %v2336_v15, %v753_v12  ;;  %v2338_v17 = vpop.f32.mrb[9].mxu1  ;;  %v2461_v18 = vpop.f32.mrb[1].mxu0  ;;  %v2658_v12 = vld [vmem:[%s8971_s5 + $0x1f8] sm:$0xff] }
 0x2ff   :  { %v6725_v20 = vadd.f32 %v2338_v17, %v757_v62  ;;  %v6727_v21 = vadd.f32 %v2461_v18, %v765_v14  ;;  %v2340_v22 = vpop.f32.mrb[10].mxu1  ;;  %v2463_v32 = vpop.f32.mrb[2].mxu0  ;;  %v6578_v62 = vpack.c.bf16 %v2640_v48, %v2639_v7  ;;  %v761_v14 = vrot.slane %v8375_v11, %v8238_v43  ;;  %v2642_v17 = vld [vmem:[%s8971_s5 + $0x178] sm:$0xff]  ;;  %v2675_v18 = vld [vmem:[%s8971_s5 + $0x280] sm:$0xff]  ;;  %v2673_v48 = vld [vmem:[%s8971_s5 + $0x270] sm:$0xff] }
 0x300   :  { %v2341_v61 = vpop.f32.mrb[11].mxu1  ;;  %v2464_v26 = vpop.f32.mrb[3].mxu0  ;;  %v2589_v29 = vmax.f32 %v6724_v30, 0.0  ;;  %v6580_v15 = vpack.c.bf16 %v2658_v12, %v2657_v10  ;;  %v2641_v30 = vld [vmem:[%s8971_s5 + $0x170] sm:$0xff]  ;;  %v2659_v22 = vld [vmem:[%s8971_s5 + $0x200] sm:$0xff]  ;;  %v2660_v32 = vld [vmem:[%s8971_s5 + $0x208] sm:$0xff] }
 0x301   :  { %v2590_v27 = vmax.f32 %v6725_v20, 0.0  ;;  %v2592_v36 = vmax.f32 %v6727_v21, 0.0  ;;  %v6582_v19 = vpack.c.bf16 %v2642_v17, %v2641_v30  ;;  %v6726_v20 = vadd.f32 %v8383_v16, %v761_v14  ;;  %v2674_v10 = vld [vmem:[%s8971_s5 + $0x278] sm:$0xff] }
 0x302   :  { %v6584_v21 = vpack.c.bf16 %v2676_v25, %v2675_v18  ;;  %v6586_v16 = vpack.c.bf16 %v2660_v32, %v2659_v22  ;;  %v6588_v26 = vpack.c.bf16 %v2678_v24, %v2677_v23  ;;  %v6614_v12 = vpack.c.bf16 %v2674_v10, %v2673_v48  ;;  %v7270_v48 = vld [vmem:[#allocation16 + $0xf8] ss:$24 sps:$4 sm:$0xff]   ;;  %v7278_v10 = vld [vmem:[#allocation16 + $0x12c] ss:$24 sps:$4 sm:$0xff]  }
 0x303   :  { %2762 = vmatprep.mubr.f32.mxu0 %v2590_v27  ;;  %v2591_v61 = vmax.f32 %v6726_v20, 0.0  ;;  %v2661_v27 = vld [vmem:[%s8971_s5 + $0x210] sm:$0xff]  ;;  %v769_v14 = vrot.slane %v8375_v11, %v8258_v8 }
 0x304   :  { %2763 = vmatmul.mubr.f32.vlgmr.msra.gmra.mrb[4].mxu0 %v2589_v29  ;;  %v2679_v29 = vld [vmem:[%s8971_s5 + $0x2a0] sm:$0xff] }
 0x305   :  { %6555 = vmatpush3.bf16.msra.mxu0 %v6554_v28  ;;  %2832 = vmatprep.mubr.f32.mxu0 %v2592_v36  ;;  %v2662_v28 = vld [vmem:[%s8971_s5 + $0x218] sm:$0xff]  ;;  %v2663_v36 = vld [vmem:[%s8971_s5 + $0x220] sm:$0xff] }
 0x306   :  { %6557 = vmatprep.subr.bf16.mxu0 %v6556_v49  ;;  %v2680_v49 = vld [vmem:[%s8971_s5 + $0x2a8] sm:$0xff]  ;;  %v6590_v34 = vpack.c.bf16 %v2662_v28, %v2661_v27 }
 0x307   :  { %v6592_v35 = vpack.c.bf16 %v2680_v49, %v2679_v29 }
 0x309   :  { %6559 = vmatpush3.bf16.msra.mxu0 %v6558_v39  ;;  %v2682_v39 = vld [vmem:[%s8971_s5 + $0x2b8] sm:$0xff] }
 0x30a   :  { %6561 = vmatprep.subr.bf16.mxu0 %v6560_v40  ;;  %v6594_v40 = vpack.c.bf16 %v2664_v38, %v2663_v36  ;;  %v6596_v41 = vpack.c.bf16 %v2682_v39, %v2681_v60  ;;  %v2928_v39 = vld [vmem:[#allocation13 + $0x8] sm:$0xff] }
 0x30d   :  { %6563 = vmatpush3.bf16.msra.mxu0 %v6562_v45  ;;  %v2684_v45 = vld [vmem:[%s8971_s5 + $0x2c8] sm:$0xff] }
 0x30e   :  { %6565 = vmatprep.subr.bf16.mxu0 %v6564_v46  ;;  %v6598_v46 = vpack.c.bf16 %v2666_v42, %v2665_v47  ;;  %v6600_v9 = vpack.c.bf16 %v2684_v45, %v2683_v44  ;;  %v2933_v42 = vld [vmem:[#allocation13 + $0x30] sm:$0xff] }
 0x311   :  { %6567 = vmatpush3.bf16.msra.mxu0 %v6566_v53  ;;  %v2686_v53 = vld [vmem:[%s8971_s5 + $0x2d8] sm:$0xff] }
 0x312   :  { %6569 = vmatprep.subr.bf16.mxu0 %v6568_v54  ;;  %v6602_v54 = vpack.c.bf16 %v2668_v13, %v2667_v50  ;;  %v6604_v55 = vpack.c.bf16 %v2686_v53, %v2685_v52  ;;  %v2939_v13 = vld [vmem:[#allocation13 + $0x60] sm:$0xf]  ;;  %v2930_v52 = vld [vmem:[#allocation13 + $0x18] sm:$0xff]  ;;  %v2936_v53 = vld [vmem:[#allocation13 + $0x48] sm:$0xff] }
 0x315   :  { %6571 = vmatpush3.bf16.msra.mxu0 %v6570_v59  ;;  %v2688_v59 = vld [vmem:[%s8971_s5 + $0x2e8] sm:$0xff] }
 0x316   :  { %6573 = vmatprep.subr.bf16.mxu0 %v6572_v63  ;;  %v6606_v63 = vpack.c.bf16 %v2670_v57, %v2669_v56  ;;  %v6608_v1 = vpack.c.bf16 %v2688_v59, %v2687_v58  ;;  %v7240_v57 = vld [vmem:[#allocation16 + $0x8] ss:$24 sps:$4 sm:$0xff]   ;;  %v7242_v58 = vld [vmem:[#allocation16 + $0xc] ss:$24 sps:$4 sm:$0xff]   ;;  %v7248_v59 = vld [vmem:[#allocation16 + $0x3c] ss:$24 sps:$4 sm:$0xff]  }
 0x317   :  { %5108 = vmatprep.subr.bf16.mxu1 %v7242_v58  ;;  %v7287_v58 = vld [vmem:[#allocation16 + $0x184] ss:$24 sps:$4 sm:$0xff]  }
 0x318   :  { %5109 = vmatpush1.bf16.msra.mxu1 %v7240_v57  ;;  %v7279_v57 = vld [vmem:[#allocation16 + $0x150] ss:$24 sps:$4 sm:$0xff]  }
 0x319   :  { %6575 = vmatpush3.bf16.msra.mxu0 %v6574_v5  ;;  %v2689_v5 = vld [vmem:[%s8971_s5 + $0x2f0] sm:$0xff]  ;;  %5110 = vmatprep.subr.bf16.mxu1 %v7248_v59 }
 0x31a   :  { %6577 = vmatprep.subr.bf16.mxu0 %v6576_v6  ;;  %v2690_v6 = vld [vmem:[%s8971_s5 + $0x2f8] sm:$0xff]  ;;  %s7969_s5 = smov 124  }
 0x31b   :  { %v6612_v7 = vpack.c.bf16 %v2690_v6, %v2689_v5  ;;  %v7266_v5 = vld [vmem:[#allocation16 + $0xcc] ss:$24 sps:$4 sm:$0xff]   ;;  %v7264_v6 = vld [vmem:[#allocation16 + $0xc8] ss:$24 sps:$4 sm:$0xff]  }
 0x31c   :  { %v7285_v59 = vld [vmem:[#allocation16 + $0x180] ss:$24 sps:$4 sm:$0xff]  }
 0x31d   :  { %6579 = vmatpush3.bf16.msra.mxu0 %v6578_v62  ;;  %v8574_v62 = vld [vmem:[#allocation2] sm:$0xff] }
 0x31e   :  { %6581 = vmatprep.subr.bf16.mxu0 %v6580_v15  ;;  %2912 = vrot.lane.b32.xlu0 %v8574_v62, %s7968_s20  ;;  %v773_v15 = vrot.slane %v8375_v11, %v8241_v51 }
 0x321   :  { %6583 = vmatpush3.bf16.msra.mxu0 %v6582_v19 }
 0x322   :  { %6585 = vmatprep.subr.bf16.mxu0 %v6584_v21 }
 0x324   :  { %2833 = vmatmul.mubr.f32.vlgmr.msra.gmra.mrb[6].mxu0 %v2591_v61 }
 0x325   :  { %6587 = vmatpush3.bf16.msra.mxu0 %v6586_v16  ;;  %v5999_v16 = vld [vmem:[#allocation11] ss:$0 sm:$0xff] }
 0x326   :  { %6589 = vmatprep.subr.bf16.mxu0 %v6588_v26 }
 0x329   :  { %6591 = vmatpush3.bf16.msra.mxu0 %v6590_v34 }
 0x32a   :  { %6593 = vmatprep.subr.bf16.mxu0 %v6592_v35 }
 0x32d   :  { %6595 = vmatpush3.bf16.msra.mxu0 %v6594_v40  ;;  %v2934_v40 = vld [vmem:[#allocation13 + $0x38] sm:$0xff] }
 0x32e   :  { %6597 = vmatprep.subr.bf16.mxu0 %v6596_v41  ;;  %v2927_v41 = vld [vmem:[#allocation13] sm:$0xff]  ;;  %v6616_v47 = vpack.c.bf16 %v2934_v40, %v2928_v39  ;;  %v2944_v40 = vld [vmem:[#allocation13 + $0x88] sm:$0xf] }
 0x32f   :  { %v6618_v45 = vpack.c.bf16 %v2933_v42, %v2927_v41  ;;  %v7239_v41 = vld [vmem:[#allocation16 + $0x4] ss:$24 sps:$4 sm:$0xff]   ;;  %v7245_v42 = vld [vmem:[#allocation16 + $0x34] ss:$24 sps:$4 sm:$0xff]  }
 0x331   :  { %6599 = vmatpush3.bf16.msra.mxu0 %v6598_v46  ;;  %v2940_v46 = vld [vmem:[#allocation13 + $0x68] sm:$0xf] }
 0x332   :  { %6601 = vmatprep.subr.bf16.mxu0 %v6600_v9 }
 0x335   :  { %6603 = vmatpush3.bf16.msra.mxu0 %v6602_v54  ;;  %v6620_v54 = vpack.c.bf16 %v2936_v53, %v2930_v52  ;;  %v7269_v52 = vld [vmem:[#allocation16 + $0xf4] ss:$24 sps:$4 sm:$0xff]   ;;  %v7267_v53 = vld [vmem:[#allocation16 + $0xf0] ss:$24 sps:$4 sm:$0xff]  }
 0x336   :  { %6605 = vmatprep.subr.bf16.mxu0 %v6604_v55 }
 0x339   :  { %6607 = vmatpush3.bf16.msra.mxu0 %v6606_v63  ;;  %v7246_v63 = vld [vmem:[#allocation16 + $0x38] ss:$24 sps:$4 sm:$0xff]  }
 0x33a   :  { %6609 = vmatprep.subr.bf16.mxu0 %v6608_v1  ;;  %v7254_v1 = vld [vmem:[#allocation16 + $0x6c] ss:$24 sps:$4 sm:$0xff]   ;;  %5111 = vmatpush1.bf16.msra.mxu1 %v7246_v63 }
 0x33b   :  { %5112 = vmatprep.subr.bf16.mxu1 %v7254_v1  ;;  %v7293_v63 = vld [vmem:[#allocation16 + $0x1b4] ss:$24 sps:$4 sm:$0xff]   ;;  %v7291_v1 = vld [vmem:[#allocation16 + $0x1b0] ss:$24 sps:$4 sm:$0xff]  }
 0x33d   :  { %6611 = vmatpush3.bf16.msra.mxu0 %v6610_v4  ;;  %v7258_v4 = vld [vmem:[#allocation16 + $0x98] ss:$24 sps:$4 sm:$0xff]  }
 0x33e   :  { %6613 = vmatprep.subr.bf16.mxu0 %v6612_v7  ;;  %5113 = vmatpush1.bf16.msra.mxu1 %v7252_v2  ;;  %v7272_v7 = vld [vmem:[#allocation16 + $0xfc] ss:$24 sps:$4 sm:$0xff]  }
 0x33f   :  { %5114 = vmatprep.subr.bf16.mxu1 %v7260_v3  ;;  %v7299_v2 = vld [vmem:[#allocation16 + $0x1e4] ss:$24 sps:$4 sm:$0xff]   ;;  %v7297_v3 = vld [vmem:[#allocation16 + $0x1e0] ss:$24 sps:$4 sm:$0xff]  }
 0x341   :  { %6615 = vmatpush3.bf16.msra.mxu0 %v6614_v12  ;;  %v7276_v12 = vld [vmem:[#allocation16 + $0x128] ss:$24 sps:$4 sm:$0xff]  }
 0x342   :  { %6617 = vmatprep.subr.bf16.mxu0 %v6616_v47  ;;  %5115 = vmatpush1.bf16.msra.mxu1 %v7258_v4  ;;  %v7237_v47 = vld [vmem:[#allocation16] ss:$24 sps:$4 sm:$0xff]   ;;  %v7305_v4 = vld [vmem:[#allocation16 + $0x214] ss:$24 sps:$4 sm:$0xff]  }
 0x343   :  { %5116 = vmatprep.subr.bf16.mxu1 %v7266_v5  ;;  %v7303_v5 = vld [vmem:[#allocation16 + $0x210] ss:$24 sps:$4 sm:$0xff]  }
 0x346   :  { %5117 = vmatpush1.bf16.msra.mxu1 %v7264_v6  ;;  %v7311_v6 = vld [vmem:[#allocation16 + $0x244] ss:$24 sps:$4 sm:$0xff]  }
 0x347   :  { %5118 = vmatprep.subr.bf16.mxu1 %v7272_v7  ;;  %v7309_v7 = vld [vmem:[#allocation16 + $0x240] ss:$24 sps:$4 sm:$0xff]  }
 0x34a   :  { %5119 = vmatpush1.bf16.msra.mxu1 %v7270_v48  ;;  %v7317_v48 = vld [vmem:[#allocation16 + $0x274] ss:$24 sps:$4 sm:$0xff]  }
 0x34b   :  { %5120 = vmatprep.subr.bf16.mxu1 %v7278_v10  ;;  %v7315_v10 = vld [vmem:[#allocation16 + $0x270] ss:$24 sps:$4 sm:$0xff]  }
 0x34e   :  { %5121 = vmatpush1.bf16.msra.mxu1 %v7276_v12  ;;  %v7323_v12 = vld [vmem:[#allocation16 + $0x2a4] ss:$24 sps:$4 sm:$0xff]  }
 0x390   :  { %v2913_v44 = vpop.permute.xlu0 %2912 }
 0x3bd   :  { %v2582_v30 = vpop.f32.mrb[12].mxu1 }
 0x3be   :  { %v6728_v17 = vadd.f32 %v2582_v30, %v769_v14  ;;  %v2584_v18 = vpop.f32.mrb[13].mxu1  ;;  %v7284_v14 = vld [vmem:[#allocation16 + $0x15c] ss:$24 sps:$4 sm:$0xff]   ;;  %v7290_v30 = vld [vmem:[#allocation16 + $0x18c] ss:$24 sps:$4 sm:$0xff]  }
 0x3bf   :  { %v6729_v25 = vadd.f32 %v2584_v18, %v773_v15  ;;  %v2586_v19 = vpop.f32.mrb[14].mxu1  ;;  %v7282_v15 = vld [vmem:[#allocation16 + $0x158] ss:$24 sps:$4 sm:$0xff]   ;;  %5122 = vmatprep.subr.bf16.mxu1 %v7284_v14  ;;  %v7296_v18 = vld [vmem:[#allocation16 + $0x1bc] ss:$24 sps:$4 sm:$0xff]  }
 0x3c0   :  { %v2587_v20 = vpop.f32.mrb[15].mxu1  ;;  %v2593_v22 = vmax.f32 %v6728_v17, 0.0  ;;  %5123 = vmatpush1.bf16.msra.mxu1 %v7282_v15  ;;  %v7288_v17 = vld [vmem:[#allocation16 + $0x188] ss:$24 sps:$4 sm:$0xff]   ;;  %v7302_v19 = vld [vmem:[#allocation16 + $0x1ec] ss:$24 sps:$4 sm:$0xff]  }
 0x3c1   :  { %v2594_v21 = vmax.f32 %v6729_v25, 0.0  ;;  %5124 = vmatprep.subr.bf16.mxu1 %v7290_v30  ;;  %v7294_v25 = vld [vmem:[#allocation16 + $0x1b8] ss:$24 sps:$4 sm:$0xff]   ;;  %v7300_v20 = vld [vmem:[#allocation16 + $0x1e8] ss:$24 sps:$4 sm:$0xff]  }
 0x3c2   :  { %v7326_v14 = vld [vmem:[#allocation16 + $0x2ac] ss:$24 sps:$4 sm:$0xff]   ;;  %v7321_v15 = vld [vmem:[#allocation16 + $0x2a0] ss:$24 sps:$4 sm:$0xff]  }
 0x3c3   :  { %2902 = vmatprep.mubr.f32.mxu0 %v2594_v21  ;;  %v7308_v21 = vld [vmem:[#allocation16 + $0x21c] ss:$24 sps:$4 sm:$0xff]   ;;  %v7324_v30 = vld [vmem:[#allocation16 + $0x2a8] ss:$24 sps:$4 sm:$0xff]  }
 0x3c4   :  { %2903 = vmatmul.mubr.f32.vlgmr.msra.gmra.mrb[8].mxu0 %v2593_v22  ;;  %5125 = vmatpush1.bf16.msra.mxu1 %v7288_v17  ;;  %v7306_v22 = vld [vmem:[#allocation16 + $0x218] ss:$24 sps:$4 sm:$0xff]   ;;  %v7329_v17 = vld [vmem:[#allocation16 + $0x2d4] ss:$24 sps:$4 sm:$0xff]  }
 0x3c5   :  { %3064 = vmatprep.mubr.f32.mxu0 %v7967_v0  ;;  %6619 = vmatpush1.bf16.msra.mxu0 %v6618_v45  ;;  %v7251_v45 = vld [vmem:[#allocation16 + $0x64] ss:$24 sps:$4 sm:$0xff]  }
 0x3c6   :  { %6000 = vmatprep.subr.msk.mxu0 %vm2981_vm1, %v2940_v46  ;;  %5126 = vmatprep.subr.bf16.mxu1 %v7296_v18  ;;  %v7249_v46 = vld [vmem:[#allocation16 + $0x60] ss:$24 sps:$4 sm:$0xff]   ;;  %v7332_v18 = vld [vmem:[#allocation16 + $0x2dc] ss:$24 sps:$4 sm:$0xff]  }
 0x3c8   :  { %5127 = vmatpush1.bf16.msra.mxu1 %v7294_v25  ;;  %v7327_v25 = vld [vmem:[#allocation16 + $0x2d0] ss:$24 sps:$4 sm:$0xff]  }
 0x3c9   :  { %6001 = vmatpush1.msk.msra.mxu0 %vm2981_vm1, %v2939_v13  ;;  %5128 = vmatprep.subr.bf16.mxu1 %v7302_v19  ;;  %v7261_v13 = vld [vmem:[#allocation16 + $0xc0] ss:$24 sps:$4 sm:$0xff]  }
 0x3ca   :  { %6621 = vmatprep.subr.bf16.mxu0 %v6620_v54  ;;  %v7275_v54 = vld [vmem:[#allocation16 + $0x124] ss:$24 sps:$4 sm:$0xff]   ;;  %v7330_v19 = vld [vmem:[#allocation16 + $0x2d8] ss:$24 sps:$4 sm:$0xff]  }
 0x3cc   :  { %5129 = vmatpush1.bf16.msra.mxu1 %v7300_v20  ;;  %v7335_v20 = vld [vmem:[#allocation16 + $0x304] ss:$24 sps:$4 sm:$0xff]  }
 0x3cd   :  { %5130 = vmatprep.subr.bf16.mxu1 %v7308_v21  ;;  %v7338_v21 = vld [vmem:[#allocation16 + $0x30c] ss:$24 sps:$4 sm:$0xff]  }
 0x3d0   :  { %5131 = vmatpush1.bf16.msra.mxu1 %v7306_v22  ;;  %v8595_v22 = vld [vmem:[#allocation14] sm:$0x3f] }
 0x3d7   :  { %v6330_v32 = vpop.f32.mrb[4].mxu0 }
 0x3d8   :  { %v6331_v23 = vpop.f32.mrb[5].mxu0 }
 0x3d9   :  { %v6332_v24 = vadd.f32 %v6331_v23, %v6330_v32  ;;  %v7314_v32 = vld [vmem:[#allocation16 + $0x24c] ss:$24 sps:$4 sm:$0xff]   ;;  %v7312_v23 = vld [vmem:[#allocation16 + $0x248] ss:$24 sps:$4 sm:$0xff]  }
 0x3da   :  { %5132 = vmatprep.subr.bf16.mxu1 %v7314_v32  ;;  %v2950_v32 = vrot.slane %v8595_v22, %v8203_v31 }
 0x3db   :  { %v2765_v27 = vadd.f32 %v6332_v24, %v5999_v16  ;;  %v7320_v24 = vld [vmem:[#allocation16 + $0x27c] ss:$24 sps:$4 sm:$0xff]   ;;  %5133 = vmatpush1.bf16.msra.mxu1 %v7312_v23  ;;  %v7318_v16 = vld [vmem:[#allocation16 + $0x278] ss:$24 sps:$4 sm:$0xff]   ;;  %v2954_v23 = vrot.slane %v8595_v22, %v8208_v33 }
 0x3dc   :  { %5134 = vmatprep.subr.bf16.mxu1 %v7320_v24 }
 0x3df   :  { %5135 = vmatpush1.bf16.msra.mxu1 %v7318_v16 }
 0x3e0   :  { %5136 = vmatprep.subr.bf16.mxu1 %v7326_v14  ;;  %v7383_v14 = vld [vmem:[#allocation16 + $0x484] ss:$24 sps:$4 sm:$0xff]  }
 0x3e3   :  { %5137 = vmatpush1.bf16.msra.mxu1 %v7324_v30  ;;  %v7381_v30 = vld [vmem:[#allocation16 + $0x480] ss:$24 sps:$4 sm:$0xff]  }
 0x3e4   :  { %5138 = vmatprep.subr.bf16.mxu1 %v7332_v18  ;;  %v7389_v18 = vld [vmem:[#allocation16 + $0x4b4] ss:$24 sps:$4 sm:$0xff]  }
 0x3e7   :  { %5139 = vmatpush1.bf16.msra.mxu1 %v7330_v19  ;;  %v7387_v19 = vld [vmem:[#allocation16 + $0x4b0] ss:$24 sps:$4 sm:$0xff]  }
 0x3e8   :  { %5149 = vmatprep.subr.bf16.mxu1 %v7338_v21  ;;  %v7395_v21 = vld [vmem:[#allocation16 + $0x4e4] ss:$24 sps:$4 sm:$0xff]  }
 0x3f7   :  { %v6365_v61 = vpop.f32.mrb[6].mxu0 }
 0x3f8   :  { %v6366_v26 = vpop.f32.mrb[7].mxu0 }
 0x3f9   :  { %v6367_v11 = vadd.f32 %v6366_v26, %v6365_v61  ;;  %v2929_v61 = vld [vmem:[#allocation13 + $0x10] sm:$0xff]  ;;  %v2935_v26 = vld [vmem:[#allocation13 + $0x40] sm:$0xff] }
 0x3fb   :  { %v2835_v28 = vadd.f32 %v6367_v11, %v2765_v27  ;;  %v6622_v27 = vpack.c.bf16 %v2935_v26, %v2929_v61 }
 0x497   :  { %v6400_v29 = vpop.f32.mrb[8].mxu0 }
 0x498   :  { %v6401_v49 = vpop.f32.mrb[9].mxu0 }
 0x499   :  { %v6402_v34 = vadd.f32 %v6401_v49, %v6400_v29  ;;  %v2942_v29 = vld [vmem:[#allocation13 + $0x78] sm:$0xf]  ;;  %v2932_v49 = vld [vmem:[#allocation13 + $0x28] sm:$0xff] }
 0x49b   :  { %v2905_v35 = vadd.f32 %v6402_v34, %v2835_v28  ;;  %v2938_v34 = vld [vmem:[#allocation13 + $0x58] sm:$0xff] }
 0x49d   :  { %v2908_v36 = vmax.f32 %v2905_v35, -4.0 }
 0x49f   :  { %v2909_v38 = vmin.f32 %v2908_v36, 15.0  ;;  %v2937_v36 = vld [vmem:[#allocation13 + $0x50] sm:$0xff] }
 0x4a1   :  { %v2910_v60 = vmul.f32 1.442695, %v2909_v38  ;;  %v2941_v38 = vld [vmem:[#allocation13 + $0x70] sm:$0xf] }
 0x4a3   :  { %7669 = vpow2.f32 %v2910_v60  ;;  %v6624_v60 = vpack.c.bf16 %v2938_v34, %v2932_v49  ;;  %v7333_v34 = vld [vmem:[#allocation16 + $0x300] ss:$24 sps:$4 sm:$0xff]  }
 0x4ad   :  { %v7670_v9 = vpop.eup %7669 }
 0x4ae   :  { %v2915_v50 = vmul.f32 %v7670_v9, %v2913_v44  ;;  %v7243_v44 = vld [vmem:[#allocation16 + $0x30] ss:$24 sps:$4 sm:$0xff]  }
 0x4b0   :  { %2917 = vrot.lane.b32.xlu0 %v2915_v50, %s7969_s5  ;;  %v7263_v50 = vld [vmem:[#allocation16 + $0xc4] ss:$24 sps:$4 sm:$0xff]  }
 0x4b4   :  { %5679 = vrot.lane.b32.xlu0 %v7670_v9, %s7970_s9  ;;  %v7257_v9 = vld [vmem:[#allocation16 + $0x94] ss:$24 sps:$4 sm:$0xff]  }
 0x522   :  { %v2918_v55 = vpop.permute.xlu0 %2917 }
 0x523   :  { %v2920_v56 = vadd.f32 %v2918_v55, %v2905_v35  ;;  %v7273_v55 = vld [vmem:[#allocation16 + $0x120] ss:$24 sps:$4 sm:$0xff]  }
 0x525   :  { %2922 = vrot.lane.b32.xlu1 %v2920_v56, %s7971_s1  ;;  %v7281_v56 = vld [vmem:[#allocation16 + $0x154] ss:$24 sps:$4 sm:$0xff]  }
 0x529   :  { %5675 = vrot.lane.b32.xlu1 %v2905_v35, %s7970_s9  ;;  %v2931_v35 = vld [vmem:[#allocation13 + $0x20] sm:$0xff] }
 0x52a   :  { %v6626_v39 = vpack.c.bf16 %v2937_v36, %v2931_v35  ;;  %v7336_v35 = vld [vmem:[#allocation16 + $0x308] ss:$24 sps:$4 sm:$0xff]  }
 0x597   :  { %v2923_v11 = vpop.permute.xlu1 %2922 }
 0x598   :  { %v2926_v28 = vsel %vm2925_vm2, %v8574_v62, %v2923_v11  ;;  %v2943_v62 = vld [vmem:[#allocation13 + $0x80] sm:$0xf] }
 0x599   :  { %6002 = vmatmul.mubr.msk.f32.vlgmr.msra.gmra.mrb[10].mxu0 %vm2977_vm3, %v2926_v28 }
 0x59a   :  { %6623 = vmatpush1.bf16.msra.mxu0 %v6622_v27  ;;  %3135 = vmatprep.mubr.f32.mxu0 %v7967_v0 }
 0x59b   :  { %6003 = vmatprep.subr.msk.mxu0 %vm2981_vm1, %v2942_v29 }
 0x59e   :  { %6004 = vmatpush1.msk.msra.mxu0 %vm2981_vm1, %v2941_v38 }
 0x59f   :  { %6005 = vmatmul.mubr.msk.f32.vlgmr.msra.gmra.mrb[12].mxu0 %vm2977_vm3, %v2926_v28  ;;  %6625 = vmatprep.subr.bf16.mxu0 %v6624_v60  ;;  %v7341_v60 = vld [vmem:[#allocation16 + $0x334] ss:$24 sps:$4 sm:$0xff]  }
 0x5a0   :  { %6627 = vmatpush1.bf16.msra.mxu0 %v6626_v39  ;;  %3206 = vmatprep.mubr.f32.mxu0 %v7967_v0  ;;  %v7255_v0 = vld [vmem:[#allocation16 + $0x90] ss:$24 sps:$4 sm:$0xff]   ;;  %v7344_v39 = vld [vmem:[#allocation16 + $0x33c] ss:$24 sps:$4 sm:$0xff]  }
 0x5a1   :  { %6006 = vmatprep.subr.msk.mxu0 %vm2981_vm1, %v2944_v40 }
 0x5a4   :  { %6007 = vmatpush1.msk.msra.mxu0 %vm2981_vm1, %v2943_v62 }
 0x5a5   :  { %6008 = vmatmul.mubr.msk.f32.vlgmr.msra.gmra.mrb[14].mxu0 %vm2977_vm3, %v2926_v28  ;;  %4985 = vmatprep.subr.bf16.mxu0 %v7239_v41  ;;  %v2962_v28 = vrot.slane %v8595_v22, %v8215_v37  ;;  %v7339_v41 = vld [vmem:[#allocation16 + $0x330] ss:$24 sps:$4 sm:$0xff]  }
 0x5a6   :  { %4986 = vmatpush1.bf16.msra.mxu0 %v7237_v47  ;;  %v7342_v47 = vld [vmem:[#allocation16 + $0x338] ss:$24 sps:$4 sm:$0xff]  }
 0x5a7   :  { %4987 = vmatprep.subr.bf16.mxu0 %v7245_v42 }
 0x5aa   :  { %4988 = vmatpush1.bf16.msra.mxu0 %v7243_v44 }
 0x5ab   :  { %4989 = vmatprep.subr.bf16.mxu0 %v7251_v45  ;;  %v7347_v45 = vld [vmem:[#allocation16 + $0x364] ss:$24 sps:$4 sm:$0xff]  }
 0x5ae   :  { %4990 = vmatpush1.bf16.msra.mxu0 %v7249_v46  ;;  %v7350_v46 = vld [vmem:[#allocation16 + $0x36c] ss:$24 sps:$4 sm:$0xff]  }
 0x5af   :  { %4991 = vmatprep.subr.bf16.mxu0 %v7257_v9 }
 0x5b2   :  { %4992 = vmatpush1.bf16.msra.mxu0 %v7255_v0  ;;  %v7345_v0 = vld [vmem:[#allocation16 + $0x360] ss:$24 sps:$4 sm:$0xff]  }
 0x5b3   :  { %4993 = vmatprep.subr.bf16.mxu0 %v7263_v50  ;;  %v7348_v50 = vld [vmem:[#allocation16 + $0x368] ss:$24 sps:$4 sm:$0xff]  }
 0x5b6   :  { %4994 = vmatpush1.bf16.msra.mxu0 %v7261_v13  ;;  %v7353_v13 = vld [vmem:[#allocation16 + $0x394] ss:$24 sps:$4 sm:$0xff]  }
 0x5b7   :  { %4995 = vmatprep.subr.bf16.mxu0 %v7269_v52  ;;  %v7356_v52 = vld [vmem:[#allocation16 + $0x39c] ss:$24 sps:$4 sm:$0xff]  }
 0x5ba   :  { %4996 = vmatpush1.bf16.msra.mxu0 %v7267_v53  ;;  %v7351_v53 = vld [vmem:[#allocation16 + $0x390] ss:$24 sps:$4 sm:$0xff]  }
 0x5bb   :  { %4997 = vmatprep.subr.bf16.mxu0 %v7275_v54  ;;  %v7354_v54 = vld [vmem:[#allocation16 + $0x398] ss:$24 sps:$4 sm:$0xff]  }
 0x5be   :  { %4998 = vmatpush1.bf16.msra.mxu0 %v7273_v55  ;;  %v7359_v55 = vld [vmem:[#allocation16 + $0x3c4] ss:$24 sps:$4 sm:$0xff]  }
 0x5bf   :  { %4999 = vmatprep.subr.bf16.mxu0 %v7281_v56  ;;  %v7362_v56 = vld [vmem:[#allocation16 + $0x3cc] ss:$24 sps:$4 sm:$0xff]  }
 0x5c2   :  { %5000 = vmatpush1.bf16.msra.mxu0 %v7279_v57  ;;  %v7357_v57 = vld [vmem:[#allocation16 + $0x3c0] ss:$24 sps:$4 sm:$0xff]  }
 0x5c3   :  { %5001 = vmatprep.subr.bf16.mxu0 %v7287_v58  ;;  %v7360_v58 = vld [vmem:[#allocation16 + $0x3c8] ss:$24 sps:$4 sm:$0xff]  }
 0x5c6   :  { %5002 = vmatpush1.bf16.msra.mxu0 %v7285_v59  ;;  %v7365_v59 = vld [vmem:[#allocation16 + $0x3f4] ss:$24 sps:$4 sm:$0xff]  }
 0x5c7   :  { %5003 = vmatprep.subr.bf16.mxu0 %v7293_v63  ;;  %v7368_v63 = vld [vmem:[#allocation16 + $0x3fc] ss:$24 sps:$4 sm:$0xff]  }
 0x5ca   :  { %5004 = vmatpush1.bf16.msra.mxu0 %v7291_v1  ;;  %v7363_v1 = vld [vmem:[#allocation16 + $0x3f0] ss:$24 sps:$4 sm:$0xff]  }
 0x5cb   :  { %5005 = vmatprep.subr.bf16.mxu0 %v7299_v2  ;;  %v7366_v2 = vld [vmem:[#allocation16 + $0x3f8] ss:$24 sps:$4 sm:$0xff]  }
 0x5ce   :  { %5006 = vmatpush1.bf16.msra.mxu0 %v7297_v3  ;;  %v7371_v3 = vld [vmem:[#allocation16 + $0x424] ss:$24 sps:$4 sm:$0xff]  }
 0x5cf   :  { %5007 = vmatprep.subr.bf16.mxu0 %v7305_v4  ;;  %v7374_v4 = vld [vmem:[#allocation16 + $0x42c] ss:$24 sps:$4 sm:$0xff]  }
 0x5d2   :  { %5008 = vmatpush1.bf16.msra.mxu0 %v7303_v5  ;;  %v7369_v5 = vld [vmem:[#allocation16 + $0x420] ss:$24 sps:$4 sm:$0xff]  }
 0x5d3   :  { %5009 = vmatprep.subr.bf16.mxu0 %v7311_v6  ;;  %v7372_v6 = vld [vmem:[#allocation16 + $0x428] ss:$24 sps:$4 sm:$0xff]  }
 0x5d6   :  { %5010 = vmatpush1.bf16.msra.mxu0 %v7309_v7  ;;  %v7377_v7 = vld [vmem:[#allocation16 + $0x454] ss:$24 sps:$4 sm:$0xff]  }
 0x5d7   :  { %5011 = vmatprep.subr.bf16.mxu0 %v7317_v48  ;;  %v7380_v48 = vld [vmem:[#allocation16 + $0x45c] ss:$24 sps:$4 sm:$0xff]  }
 0x5da   :  { %5012 = vmatpush1.bf16.msra.mxu0 %v7315_v10  ;;  %v7375_v10 = vld [vmem:[#allocation16 + $0x450] ss:$24 sps:$4 sm:$0xff]  }
 0x5db   :  { %5013 = vmatprep.subr.bf16.mxu0 %v7323_v12  ;;  %v7378_v12 = vld [vmem:[#allocation16 + $0x458] ss:$24 sps:$4 sm:$0xff]  }
 0x5de   :  { %5014 = vmatpush1.bf16.msra.mxu0 %v7321_v15  ;;  %v7386_v15 = vld [vmem:[#allocation16 + $0x48c] ss:$24 sps:$4 sm:$0xff]  }
 0x5df   :  { %5015 = vmatprep.subr.bf16.mxu0 %v7329_v17  ;;  %v7384_v17 = vld [vmem:[#allocation16 + $0x488] ss:$24 sps:$4 sm:$0xff]  }
 0x5e2   :  { %5016 = vmatpush1.bf16.msra.mxu0 %v7327_v25  ;;  %v7392_v25 = vld [vmem:[#allocation16 + $0x4bc] ss:$24 sps:$4 sm:$0xff]  }
 0x5e3   :  { %5026 = vmatprep.subr.bf16.mxu0 %v7335_v20  ;;  %v7390_v20 = vld [vmem:[#allocation16 + $0x4b8] ss:$24 sps:$4 sm:$0xff]  }
 0x66c   :  { %v3066_v24 = vpop.f32.mrb[10].mxu0 }
 0x66d   :  { %v3067_v16 = vadd.f32 %v3066_v24, %v2950_v32  ;;  %v3068_v61 = vpop.f32.mrb[11].mxu0  ;;  %v7398_v32 = vld [vmem:[#allocation16 + $0x4ec] ss:$24 sps:$4 sm:$0xff]   ;;  %v7396_v24 = vld [vmem:[#allocation16 + $0x4e8] ss:$24 sps:$4 sm:$0xff]  }
 0x66e   :  { %v3069_v26 = vadd.f32 %v3068_v61, %v2954_v23  ;;  %v7393_v23 = vld [vmem:[#allocation16 + $0x4e0] ss:$24 sps:$4 sm:$0xff]   ;;  %v7404_v61 = vld [vmem:[#allocation16 + $0x51c] ss:$24 sps:$4 sm:$0xff]  }
 0x66f   :  { %v3213_v27 = vmax.f32 %v3067_v16, 0.0  ;;  %v7401_v16 = vld [vmem:[#allocation16 + $0x514] ss:$24 sps:$4 sm:$0xff]  }
 0x670   :  { %v3214_v11 = vmax.f32 %v3069_v26, 0.0  ;;  %v7399_v26 = vld [vmem:[#allocation16 + $0x510] ss:$24 sps:$4 sm:$0xff]  }
 0x671   :  { %v8607_v36 = vpack.c.bf16 %v3213_v27, %v3213_v27  ;;  %v7402_v27 = vld [vmem:[#allocation16 + $0x518] ss:$24 sps:$4 sm:$0xff]  }
 0x672   :  { %v8603_v29 = vpack.c.bf16 %v3214_v11, %v3214_v11  ;;  %v8605_v49 = vpop.f32.mrb[12].mxu0  ;;  %v7407_v11 = vld [vmem:[#allocation16 + $0x544] ss:$24 sps:$4 sm:$0xff]  }
 0x673   :  { %v3139_v38 = vpop.f32.mrb[13].mxu0 }
 0x674   :  { %v3140_v40 = vadd.f32 %v3139_v38, %v2962_v28  ;;  %5017 = vmatprep.mubr.bf16.mxu0 %v8603_v29  ;;  %5140 = vmatprep.mubr.bf16.mxu1 %v8603_v29  ;;  %v7410_v28 = vld [vmem:[#allocation16 + $0x54c] ss:$24 sps:$4 sm:$0xff]  }
 0x675   :  { %5018 = vmatmul.mubr.bf16.vlgmr.msra.gmra.mrb[16].mxu0 %v8607_v36  ;;  %5141 = vmatmul.mubr.bf16.vlgmr.msra.gmra.mrb[16].mxu1 %v8607_v36  ;;  %v7413_v38 = vld [vmem:[#allocation16 + $0x574] ss:$24 sps:$4 sm:$0xff]  }
 0x676   :  { %v3216_v62 = vmax.f32 %v3140_v40, 0.0  ;;  %5027 = vmatpush1.bf16.msra.mxu0 %v7333_v34  ;;  %5150 = vmatpush1.bf16.msra.mxu1 %v7336_v35  ;;  %v7405_v34 = vld [vmem:[#allocation16 + $0x540] ss:$24 sps:$4 sm:$0xff]   ;;  %v2958_v40 = vrot.slane %v8595_v22, %v8238_v43 }
 0x677   :  { %5028 = vmatprep.subr.bf16.mxu0 %v7341_v60  ;;  %5151 = vmatprep.subr.bf16.mxu1 %v7344_v39  ;;  %v7408_v35 = vld [vmem:[#allocation16 + $0x548] ss:$24 sps:$4 sm:$0xff]   ;;  %v7416_v60 = vld [vmem:[#allocation16 + $0x57c] ss:$24 sps:$4 sm:$0xff]  }
 0x678   :  { %v8613_v42 = vpack.c.bf16 %v3216_v62, %v3216_v62  ;;  %v8615_v44 = vpop.f32.mrb[14].mxu0  ;;  %v7411_v39 = vld [vmem:[#allocation16 + $0x570] ss:$24 sps:$4 sm:$0xff]  }
 0x679   :  { %v8617_v9 = vpop.f32.mrb[15].mxu0  ;;  %v7414_v62 = vld [vmem:[#allocation16 + $0x578] ss:$24 sps:$4 sm:$0xff]  }
 0x67a   :  { %5029 = vmatpush1.bf16.msra.mxu0 %v7339_v41  ;;  %5058 = vmatprep.mubr.bf16.mxu0 %v8613_v42  ;;  %v7419_v41 = vld [vmem:[#allocation16 + $0x5a4] ss:$24 sps:$4 sm:$0xff]  }
 0x67b   :  { %5152 = vmatpush1.bf16.msra.mxu1 %v7342_v47  ;;  %5181 = vmatprep.mubr.bf16.mxu1 %v8613_v42  ;;  %v7422_v47 = vld [vmem:[#allocation16 + $0x5ac] ss:$24 sps:$4 sm:$0xff]  }
 0x67c   :  { %5030 = vmatprep.subr.bf16.mxu0 %v7347_v45  ;;  %5153 = vmatprep.subr.bf16.mxu1 %v7350_v46  ;;  %v2970_v45 = vrot.slane %v8595_v22, %v8241_v51  ;;  %v7417_v46 = vld [vmem:[#allocation16 + $0x5a0] ss:$24 sps:$4 sm:$0xff]  }
 0x67e   :  { %5031 = vmatpush1.bf16.msra.mxu0 %v7345_v0  ;;  %v3138_v0 = vadd.f32 %v8605_v49, %v2958_v40  ;;  %v7429_v49 = vld [vmem:[#allocation16 + $0x600] ss:$24 sps:$4 sm:$0xff]   ;;  %v7485_v40 = vld [vmem:[#allocation16 + $0x7b4] ss:$24 sps:$4 sm:$0xff]  }
 0x67f   :  { %5154 = vmatpush1.bf16.msra.mxu1 %v7348_v50  ;;  %5032 = vmatprep.subr.bf16.mxu0 %v7353_v13  ;;  %v7420_v50 = vld [vmem:[#allocation16 + $0x5a8] ss:$24 sps:$4 sm:$0xff]   ;;  %v7425_v13 = vld [vmem:[#allocation16 + $0x5d4] ss:$24 sps:$4 sm:$0xff]  }
 0x680   :  { %5155 = vmatprep.subr.bf16.mxu1 %v7356_v52  ;;  %v7428_v52 = vld [vmem:[#allocation16 + $0x5dc] ss:$24 sps:$4 sm:$0xff]  }
 0x682   :  { %5033 = vmatpush1.bf16.msra.mxu0 %v7351_v53  ;;  %v3211_v53 = vadd.f32 %v8617_v9, %v2970_v45  ;;  %v7491_v45 = vld [vmem:[#allocation16 + $0x7e4] ss:$24 sps:$4 sm:$0xff]  }
 0x683   :  { %5156 = vmatpush1.bf16.msra.mxu1 %v7354_v54  ;;  %5034 = vmatprep.subr.bf16.mxu0 %v7359_v55  ;;  %v7423_v54 = vld [vmem:[#allocation16 + $0x5d0] ss:$24 sps:$4 sm:$0xff]   ;;  %v3215_v55 = vmax.f32 %v3138_v0, 0.0  ;;  %v7489_v0 = vld [vmem:[#allocation16 + $0x7e0] ss:$24 sps:$4 sm:$0xff]  }
 0x684   :  { %5157 = vmatprep.subr.bf16.mxu1 %v7362_v56  ;;  %v7426_v56 = vld [vmem:[#allocation16 + $0x5d8] ss:$24 sps:$4 sm:$0xff]  }
 0x686   :  { %5035 = vmatpush1.bf16.msra.mxu0 %v7357_v57  ;;  %v7431_v57 = vld [vmem:[#allocation16 + $0x604] ss:$24 sps:$4 sm:$0xff]  }
 0x687   :  { %5158 = vmatpush1.bf16.msra.mxu1 %v7360_v58  ;;  %5036 = vmatprep.subr.bf16.mxu0 %v7365_v59  ;;  %v7434_v58 = vld [vmem:[#allocation16 + $0x60c] ss:$24 sps:$4 sm:$0xff]   ;;  %v3218_v59 = vmax.f32 %v3211_v53, 0.0  ;;  %v7495_v53 = vld [vmem:[#allocation16 + $0x810] ss:$24 sps:$4 sm:$0xff]  }
 0x688   :  { %5159 = vmatprep.subr.bf16.mxu1 %v7368_v63  ;;  %v8627_v63 = vpack.c.bf16 %v3215_v55, %v3215_v55  ;;  %v7503_v55 = vld [vmem:[#allocation16 + $0x844] ss:$24 sps:$4 sm:$0xff]  }
 0x689   :  { %v8629_v9 = vpack.c.bf16 %v3218_v59, %v3218_v59  ;;  %v7509_v59 = vld [vmem:[#allocation16 + $0x874] ss:$24 sps:$4 sm:$0xff]  }
 0x68a   :  { %5037 = vmatpush1.bf16.msra.mxu0 %v7363_v1  ;;  %v7432_v1 = vld [vmem:[#allocation16 + $0x608] ss:$24 sps:$4 sm:$0xff]  }
 0x68b   :  { %5160 = vmatpush1.bf16.msra.mxu1 %v7366_v2  ;;  %5038 = vmatprep.subr.bf16.mxu0 %v7371_v3  ;;  %v7437_v2 = vld [vmem:[#allocation16 + $0x634] ss:$24 sps:$4 sm:$0xff]  }
 0x68c   :  { %5161 = vmatprep.subr.bf16.mxu1 %v7374_v4  ;;  %v7440_v3 = vld [vmem:[#allocation16 + $0x63c] ss:$24 sps:$4 sm:$0xff]   ;;  %v7435_v4 = vld [vmem:[#allocation16 + $0x630] ss:$24 sps:$4 sm:$0xff]  }
 0x68e   :  { %5039 = vmatpush1.bf16.msra.mxu0 %v7369_v5  ;;  %v7438_v5 = vld [vmem:[#allocation16 + $0x638] ss:$24 sps:$4 sm:$0xff]  }
 0x68f   :  { %5162 = vmatpush1.bf16.msra.mxu1 %v7372_v6  ;;  %5040 = vmatprep.subr.bf16.mxu0 %v7377_v7  ;;  %v7443_v6 = vld [vmem:[#allocation16 + $0x664] ss:$24 sps:$4 sm:$0xff]  }
 0x690   :  { %5163 = vmatprep.subr.bf16.mxu1 %v7380_v48  ;;  %v7446_v7 = vld [vmem:[#allocation16 + $0x66c] ss:$24 sps:$4 sm:$0xff]   ;;  %v7441_v48 = vld [vmem:[#allocation16 + $0x660] ss:$24 sps:$4 sm:$0xff]  }
 0x692   :  { %5041 = vmatpush1.bf16.msra.mxu0 %v7375_v10  ;;  %v7444_v10 = vld [vmem:[#allocation16 + $0x668] ss:$24 sps:$4 sm:$0xff]  }
 0x693   :  { %5164 = vmatpush1.bf16.msra.mxu1 %v7378_v12  ;;  %5042 = vmatprep.subr.bf16.mxu0 %v7383_v14  ;;  %v7449_v12 = vld [vmem:[#allocation16 + $0x694] ss:$24 sps:$4 sm:$0xff]  }
 0x694   :  { %5165 = vmatprep.subr.bf16.mxu1 %v7386_v15  ;;  %v7452_v14 = vld [vmem:[#allocation16 + $0x69c] ss:$24 sps:$4 sm:$0xff]   ;;  %v7447_v15 = vld [vmem:[#allocation16 + $0x690] ss:$24 sps:$4 sm:$0xff]  }
 0x696   :  { %5043 = vmatpush1.bf16.msra.mxu0 %v7381_v30  ;;  %v7450_v30 = vld [vmem:[#allocation16 + $0x698] ss:$24 sps:$4 sm:$0xff]  }
 0x697   :  { %5166 = vmatpush1.bf16.msra.mxu1 %v7384_v17  ;;  %5044 = vmatprep.subr.bf16.mxu0 %v7389_v18  ;;  %v7455_v17 = vld [vmem:[#allocation16 + $0x6c4] ss:$24 sps:$4 sm:$0xff]  }
 0x698   :  { %5167 = vmatprep.subr.bf16.mxu1 %v7392_v25  ;;  %v7458_v18 = vld [vmem:[#allocation16 + $0x6cc] ss:$24 sps:$4 sm:$0xff]   ;;  %v7453_v25 = vld [vmem:[#allocation16 + $0x6c0] ss:$24 sps:$4 sm:$0xff]  }
 0x69a   :  { %5045 = vmatpush1.bf16.msra.mxu0 %v7387_v19  ;;  %v7456_v19 = vld [vmem:[#allocation16 + $0x6c8] ss:$24 sps:$4 sm:$0xff]  }
 0x69b   :  { %5168 = vmatpush1.bf16.msra.mxu1 %v7390_v20  ;;  %5046 = vmatprep.subr.bf16.mxu0 %v7395_v21  ;;  %v7461_v20 = vld [vmem:[#allocation16 + $0x6f4] ss:$24 sps:$4 sm:$0xff]  }
 0x69c   :  { %5169 = vmatprep.subr.bf16.mxu1 %v7398_v32  ;;  %v7464_v21 = vld [vmem:[#allocation16 + $0x6fc] ss:$24 sps:$4 sm:$0xff]   ;;  %v7459_v32 = vld [vmem:[#allocation16 + $0x6f0] ss:$24 sps:$4 sm:$0xff]  }
 0x69e   :  { %5047 = vmatpush1.bf16.msra.mxu0 %v7393_v23  ;;  %v7462_v23 = vld [vmem:[#allocation16 + $0x6f8] ss:$24 sps:$4 sm:$0xff]  }
 0x69f   :  { %5170 = vmatpush1.bf16.msra.mxu1 %v7396_v24  ;;  %5048 = vmatprep.subr.bf16.mxu0 %v7401_v16  ;;  %v7467_v24 = vld [vmem:[#allocation16 + $0x724] ss:$24 sps:$4 sm:$0xff]  }
 0x6a0   :  { %5171 = vmatprep.subr.bf16.mxu1 %v7404_v61  ;;  %v7470_v16 = vld [vmem:[#allocation16 + $0x72c] ss:$24 sps:$4 sm:$0xff]   ;;  %v7465_v61 = vld [vmem:[#allocation16 + $0x720] ss:$24 sps:$4 sm:$0xff]  }
 0x6a2   :  { %5049 = vmatpush1.bf16.msra.mxu0 %v7399_v26  ;;  %v7468_v26 = vld [vmem:[#allocation16 + $0x728] ss:$24 sps:$4 sm:$0xff]  }
 0x6a3   :  { %5172 = vmatpush1.bf16.msra.mxu1 %v7402_v27  ;;  %5050 = vmatprep.subr.bf16.mxu0 %v7407_v11  ;;  %v7473_v27 = vld [vmem:[#allocation16 + $0x754] ss:$24 sps:$4 sm:$0xff]  }
 0x6a4   :  { %5173 = vmatprep.subr.bf16.mxu1 %v7410_v28  ;;  %v7476_v11 = vld [vmem:[#allocation16 + $0x75c] ss:$24 sps:$4 sm:$0xff]   ;;  %v7471_v28 = vld [vmem:[#allocation16 + $0x750] ss:$24 sps:$4 sm:$0xff]  }
 0x6a6   :  { %5051 = vmatpush1.bf16.msra.mxu0 %v7405_v34  ;;  %v7474_v34 = vld [vmem:[#allocation16 + $0x758] ss:$24 sps:$4 sm:$0xff]  }
 0x6a7   :  { %5174 = vmatpush1.bf16.msra.mxu1 %v7408_v35  ;;  %5052 = vmatprep.subr.bf16.mxu0 %v7413_v38  ;;  %v7479_v35 = vld [vmem:[#allocation16 + $0x784] ss:$24 sps:$4 sm:$0xff]  }
 0x6a8   :  { %5175 = vmatprep.subr.bf16.mxu1 %v7416_v60  ;;  %v7482_v38 = vld [vmem:[#allocation16 + $0x78c] ss:$24 sps:$4 sm:$0xff]   ;;  %v7477_v60 = vld [vmem:[#allocation16 + $0x780] ss:$24 sps:$4 sm:$0xff]  }
 0x6aa   :  { %5053 = vmatpush1.bf16.msra.mxu0 %v7411_v39  ;;  %v7480_v39 = vld [vmem:[#allocation16 + $0x788] ss:$24 sps:$4 sm:$0xff]  }
 0x6ab   :  { %5176 = vmatpush1.bf16.msra.mxu1 %v7414_v62  ;;  %5054 = vmatprep.subr.bf16.mxu0 %v7419_v41  ;;  %v7488_v62 = vld [vmem:[#allocation16 + $0x7bc] ss:$24 sps:$4 sm:$0xff]   ;;  %v7483_v41 = vld [vmem:[#allocation16 + $0x7b0] ss:$24 sps:$4 sm:$0xff]  }
 0x6ac   :  { %5177 = vmatprep.subr.bf16.mxu1 %v7422_v47  ;;  %v7486_v47 = vld [vmem:[#allocation16 + $0x7b8] ss:$24 sps:$4 sm:$0xff]  }
 0x6ae   :  { %5055 = vmatpush1.bf16.msra.mxu0 %v7417_v46  ;;  %v7494_v46 = vld [vmem:[#allocation16 + $0x7ec] ss:$24 sps:$4 sm:$0xff]  }
 0x6af   :  { %5178 = vmatpush1.bf16.msra.mxu1 %v7420_v50  ;;  %5056 = vmatprep.subr.bf16.mxu0 %v7425_v13  ;;  %v7492_v50 = vld [vmem:[#allocation16 + $0x7e8] ss:$24 sps:$4 sm:$0xff]   ;;  %v7497_v13 = vld [vmem:[#allocation16 + $0x814] ss:$24 sps:$4 sm:$0xff]  }
 0x6b0   :  { %5179 = vmatprep.subr.bf16.mxu1 %v7428_v52  ;;  %v7500_v52 = vld [vmem:[#allocation16 + $0x81c] ss:$24 sps:$4 sm:$0xff]  }
 0x6b2   :  { %5057 = vmatpush1.bf16.msra.mxu0 %v7423_v54  ;;  %v7498_v54 = vld [vmem:[#allocation16 + $0x818] ss:$24 sps:$4 sm:$0xff]  }
 0x6b3   :  { %5180 = vmatpush1.bf16.msra.mxu1 %v7426_v56  ;;  %5067 = vmatprep.subr.bf16.mxu0 %v7431_v57  ;;  %v7506_v56 = vld [vmem:[#allocation16 + $0x84c] ss:$24 sps:$4 sm:$0xff]   ;;  %v7501_v57 = vld [vmem:[#allocation16 + $0x840] ss:$24 sps:$4 sm:$0xff]  }
 0x6b4   :  { %5190 = vmatprep.subr.bf16.mxu1 %v7434_v58  ;;  %v7504_v58 = vld [vmem:[#allocation16 + $0x848] ss:$24 sps:$4 sm:$0xff]  }
 0x6b5   :  { %5059 = vmatmul.mubr.bf16.vlgmr.msra.gmra.mrb[16].mxu0 %v8627_v63 }
 0x6b6   :  { %5182 = vmatmul.mubr.bf16.vlgmr.msra.gmra.mrb[16].mxu1 %v8627_v63  ;;  %5068 = vmatpush1.bf16.msra.mxu0 %v7429_v49  ;;  %v7512_v49 = vld [vmem:[#allocation16 + $0x87c] ss:$24 sps:$4 sm:$0xff]  }
 0x6b7   :  { %5099 = vmatprep.mubr.bf16.mxu0 %v8629_v9  ;;  %5191 = vmatpush1.bf16.msra.mxu1 %v7432_v1  ;;  %v7507_v1 = vld [vmem:[#allocation16 + $0x870] ss:$24 sps:$4 sm:$0xff]  }
 0x6b8   :  { %5222 = vmatprep.mubr.bf16.mxu1 %v8629_v9  ;;  %5069 = vmatprep.subr.bf16.mxu0 %v7437_v2  ;;  %v2966_v2 = vrot.slane %v8595_v22, %v8258_v8  ;;  %v7522_v22 = vld [vmem:[#allocation16 + $0x8d8] ss:$24 sps:$4 sm:$0xff]  }
 0x6b9   :  { %5192 = vmatprep.subr.bf16.mxu1 %v7440_v3  ;;  %v7510_v3 = vld [vmem:[#allocation16 + $0x878] ss:$24 sps:$4 sm:$0xff]  }
 0x6ba   :  { %5070 = vmatpush1.bf16.msra.mxu0 %v7435_v4  ;;  %v7515_v4 = vld [vmem:[#allocation16 + $0x8a4] ss:$24 sps:$4 sm:$0xff]  }
 0x6bb   :  { %5193 = vmatpush1.bf16.msra.mxu1 %v7438_v5  ;;  %5071 = vmatprep.subr.bf16.mxu0 %v7443_v6  ;;  %v7518_v5 = vld [vmem:[#allocation16 + $0x8ac] ss:$24 sps:$4 sm:$0xff]   ;;  %v7513_v6 = vld [vmem:[#allocation16 + $0x8a0] ss:$24 sps:$4 sm:$0xff]  }
 0x6bc   :  { %5194 = vmatprep.subr.bf16.mxu1 %v7446_v7  ;;  %v3209_v7 = vadd.f32 %v8615_v44, %v2966_v2  ;;  %v7530_v44 = vld [vmem:[#allocation16 + $0x44] ss:$24 sps:$4 sm:$0xff]   ;;  %v7573_v2 = vld [vmem:[#allocation16 + $0x310] ss:$24 sps:$4 sm:$0xff]  }
 0x6be   :  { %5072 = vmatpush1.bf16.msra.mxu0 %v7441_v48  ;;  %v7516_v48 = vld [vmem:[#allocation16 + $0x8a8] ss:$24 sps:$4 sm:$0xff]  }
 0x6bf   :  { %5195 = vmatpush1.bf16.msra.mxu1 %v7444_v10  ;;  %5073 = vmatprep.subr.bf16.mxu0 %v7449_v12  ;;  %v7521_v10 = vld [vmem:[#allocation16 + $0x8d4] ss:$24 sps:$4 sm:$0xff]  }
 0x6c0   :  { %5196 = vmatprep.subr.bf16.mxu1 %v7452_v14  ;;  %v7524_v12 = vld [vmem:[#allocation16 + $0x8dc] ss:$24 sps:$4 sm:$0xff]   ;;  %v7519_v14 = vld [vmem:[#allocation16 + $0x8d0] ss:$24 sps:$4 sm:$0xff]  }
 0x6c2   :  { %5074 = vmatpush1.bf16.msra.mxu0 %v7447_v15  ;;  %v3217_v15 = vmax.f32 %v3209_v7, 0.0 }
 0x6c3   :  { %5197 = vmatpush1.bf16.msra.mxu1 %v7450_v30  ;;  %5075 = vmatprep.subr.bf16.mxu0 %v7455_v17  ;;  %v7527_v30 = vld [vmem:[#allocation16 + $0x14] ss:$24 sps:$4 sm:$0xff]   ;;  %v7525_v17 = vld [vmem:[#allocation16 + $0x10] ss:$24 sps:$4 sm:$0xff]  }
 0x6c4   :  { %5198 = vmatprep.subr.bf16.mxu1 %v7458_v18  ;;  %v8638_v18 = vpack.c.bf16 %v3217_v15, %v3217_v15  ;;  %v5364_v15 = vld [vmem:[%s8977_s11 + $0x20] sm:$0xff] }
 0x6c6   :  { %5076 = vmatpush1.bf16.msra.mxu0 %v7453_v25  ;;  %v7528_v25 = vld [vmem:[#allocation16 + $0x40] ss:$24 sps:$4 sm:$0xff]  }
 0x6c7   :  { %5199 = vmatpush1.bf16.msra.mxu1 %v7456_v19  ;;  %5077 = vmatprep.subr.bf16.mxu0 %v7461_v20  ;;  %v7533_v19 = vld [vmem:[#allocation16 + $0x74] ss:$24 sps:$4 sm:$0xff]   ;;  %v7531_v20 = vld [vmem:[#allocation16 + $0x70] ss:$24 sps:$4 sm:$0xff]  }
 0x6c8   :  { %5200 = vmatprep.subr.bf16.mxu1 %v7464_v21  ;;  %v7536_v21 = vld [vmem:[#allocation16 + $0xa4] ss:$24 sps:$4 sm:$0xff]  }
 0x6ca   :  { %5078 = vmatpush1.bf16.msra.mxu0 %v7459_v32  ;;  %v7534_v32 = vld [vmem:[#allocation16 + $0xa0] ss:$24 sps:$4 sm:$0xff]  }
 0x6cb   :  { %5201 = vmatpush1.bf16.msra.mxu1 %v7462_v23  ;;  %5079 = vmatprep.subr.bf16.mxu0 %v7467_v24  ;;  %v7539_v23 = vld [vmem:[#allocation16 + $0xd4] ss:$24 sps:$4 sm:$0xff]   ;;  %v7537_v24 = vld [vmem:[#allocation16 + $0xd0] ss:$24 sps:$4 sm:$0xff]  }
 0x6cc   :  { %5202 = vmatprep.subr.bf16.mxu1 %v7470_v16  ;;  %v7542_v16 = vld [vmem:[#allocation16 + $0x104] ss:$24 sps:$4 sm:$0xff]  }
 0x6ce   :  { %5080 = vmatpush1.bf16.msra.mxu0 %v7465_v61  ;;  %v7540_v61 = vld [vmem:[#allocation16 + $0x100] ss:$24 sps:$4 sm:$0xff]  }
 0x6cf   :  { %5203 = vmatpush1.bf16.msra.mxu1 %v7468_v26  ;;  %5081 = vmatprep.subr.bf16.mxu0 %v7473_v27  ;;  %v7545_v26 = vld [vmem:[#allocation16 + $0x134] ss:$24 sps:$4 sm:$0xff]   ;;  %v7548_v27 = vld [vmem:[#allocation16 + $0x164] ss:$24 sps:$4 sm:$0xff]  }
 0x6d0   :  { %5204 = vmatprep.subr.bf16.mxu1 %v7476_v11  ;;  %v7546_v11 = vld [vmem:[#allocation16 + $0x160] ss:$24 sps:$4 sm:$0xff]  }
 0x6d2   :  { %5082 = vmatpush1.bf16.msra.mxu0 %v7471_v28  ;;  %v7551_v28 = vld [vmem:[#allocation16 + $0x194] ss:$24 sps:$4 sm:$0xff]  }
 0x6d3   :  { %5205 = vmatpush1.bf16.msra.mxu1 %v7474_v34  ;;  %5083 = vmatprep.subr.bf16.mxu0 %v7479_v35  ;;  %v7549_v34 = vld [vmem:[#allocation16 + $0x190] ss:$24 sps:$4 sm:$0xff]   ;;  %v7554_v35 = vld [vmem:[#allocation16 + $0x1c4] ss:$24 sps:$4 sm:$0xff]  }
 0x6d4   :  { %5206 = vmatprep.subr.bf16.mxu1 %v7482_v38  ;;  %v7552_v38 = vld [vmem:[#allocation16 + $0x1c0] ss:$24 sps:$4 sm:$0xff]  }
 0x6d6   :  { %5084 = vmatpush1.bf16.msra.mxu0 %v7477_v60  ;;  %v7557_v60 = vld [vmem:[#allocation16 + $0x1f4] ss:$24 sps:$4 sm:$0xff]  }
 0x6d7   :  { %5207 = vmatpush1.bf16.msra.mxu1 %v7480_v39  ;;  %5085 = vmatprep.subr.bf16.mxu0 %v7485_v40  ;;  %v7555_v39 = vld [vmem:[#allocation16 + $0x1f0] ss:$24 sps:$4 sm:$0xff]   ;;  %v7560_v40 = vld [vmem:[#allocation16 + $0x224] ss:$24 sps:$4 sm:$0xff]  }
 0x6d8   :  { %5208 = vmatprep.subr.bf16.mxu1 %v7488_v62  ;;  %v7558_v62 = vld [vmem:[#allocation16 + $0x220] ss:$24 sps:$4 sm:$0xff]  }
 0x6da   :  { %5086 = vmatpush1.bf16.msra.mxu0 %v7483_v41  ;;  %v7563_v41 = vld [vmem:[#allocation16 + $0x254] ss:$24 sps:$4 sm:$0xff]  }
 0x6db   :  { %5209 = vmatpush1.bf16.msra.mxu1 %v7486_v47  ;;  %5087 = vmatprep.subr.bf16.mxu0 %v7491_v45  ;;  %v7561_v47 = vld [vmem:[#allocation16 + $0x250] ss:$24 sps:$4 sm:$0xff]   ;;  %v7566_v45 = vld [vmem:[#allocation16 + $0x284] ss:$24 sps:$4 sm:$0xff]  }
 0x6dc   :  { %5210 = vmatprep.subr.bf16.mxu1 %v7494_v46  ;;  %v7564_v46 = vld [vmem:[#allocation16 + $0x280] ss:$24 sps:$4 sm:$0xff]  }
 0x6de   :  { %5088 = vmatpush1.bf16.msra.mxu0 %v7489_v0  ;;  %v7569_v0 = vld [vmem:[#allocation16 + $0x2b4] ss:$24 sps:$4 sm:$0xff]  }
 0x6df   :  { %5211 = vmatpush1.bf16.msra.mxu1 %v7492_v50  ;;  %5089 = vmatprep.subr.bf16.mxu0 %v7497_v13  ;;  %v7567_v50 = vld [vmem:[#allocation16 + $0x2b0] ss:$24 sps:$4 sm:$0xff]   ;;  %v7572_v13 = vld [vmem:[#allocation16 + $0x2e4] ss:$24 sps:$4 sm:$0xff]  }
 0x6e0   :  { %5212 = vmatprep.subr.bf16.mxu1 %v7500_v52  ;;  %v5376_v52 = vld [vmem:[%s8977_s11 + $0x80] sm:$0xff] }
 0x6e2   :  { %5090 = vmatpush1.bf16.msra.mxu0 %v7495_v53  ;;  %v5377_v53 = vld [vmem:[%s8977_s11 + $0x88] sm:$0xff] }
 0x6e3   :  { %5213 = vmatpush1.bf16.msra.mxu1 %v7498_v54  ;;  %5091 = vmatprep.subr.bf16.mxu0 %v7503_v55  ;;  %v7570_v54 = vld [vmem:[#allocation16 + $0x2e0] ss:$24 sps:$4 sm:$0xff]   ;;  %v6628_v55 = vpack.c.bf16 %v5377_v53, %v5376_v52  ;;  %v7593_v52 = vld [vmem:[#allocation16 + $0x434] ss:$24 sps:$4 sm:$0xff]  }
 0x6e4   :  { %5214 = vmatprep.subr.bf16.mxu1 %v7506_v56  ;;  %v5360_v56 = vld [vmem:[%s8977_s11] sm:$0xff]  ;;  %v5390_v53 = vld [vmem:[%s8977_s11 + $0xf0] sm:$0xff] }
 0x6e6   :  { %5092 = vmatpush1.bf16.msra.mxu0 %v7501_v57  ;;  %v5361_v57 = vld [vmem:[%s8977_s11 + $0x8] sm:$0xff] }
 0x6e7   :  { %5215 = vmatpush1.bf16.msra.mxu1 %v7504_v58  ;;  %5093 = vmatprep.subr.bf16.mxu0 %v7509_v59  ;;  %v7575_v58 = vld [vmem:[#allocation16 + $0x314] ss:$24 sps:$4 sm:$0xff]   ;;  %v6630_v59 = vpack.c.bf16 %v5361_v57, %v5360_v56 }
 0x6e8   :  { %5216 = vmatprep.subr.bf16.mxu1 %v7512_v49  ;;  %v5378_v49 = vld [vmem:[%s8977_s11 + $0x90] sm:$0xff] }
 0x6e9   :  { %v5374_v57 = vld [vmem:[%s8977_s11 + $0x70] sm:$0xff] }
 0x6ea   :  { %5094 = vmatpush1.bf16.msra.mxu0 %v7507_v1  ;;  %v5379_v1 = vld [vmem:[%s8977_s11 + $0x98] sm:$0xff] }
 0x6eb   :  { %5217 = vmatpush1.bf16.msra.mxu1 %v7510_v3  ;;  %5095 = vmatprep.subr.bf16.mxu0 %v7515_v4  ;;  %v6632_v3 = vpack.c.bf16 %v5379_v1, %v5378_v49  ;;  %v5362_v4 = vld [vmem:[%s8977_s11 + $0x10] sm:$0xff]  ;;  %v5408_v1 = vld [vmem:[%s8977_s11 + $0x180] sm:$0xff] }
 0x6ec   :  { %5218 = vmatprep.subr.bf16.mxu1 %v7518_v5  ;;  %v5363_v5 = vld [vmem:[%s8977_s11 + $0x18] sm:$0xff] }
 0x6ed   :  { %v6634_v7 = vpack.c.bf16 %v5363_v5, %v5362_v4  ;;  %v7599_v5 = vld [vmem:[#allocation16 + $0x494] ss:$24 sps:$4 sm:$0xff]  }
 0x6ee   :  { %5096 = vmatpush1.bf16.msra.mxu0 %v7513_v6  ;;  %v7578_v6 = vld [vmem:[#allocation16 + $0x344] ss:$24 sps:$4 sm:$0xff]  }
 0x6ef   :  { %5219 = vmatpush1.bf16.msra.mxu1 %v7516_v48  ;;  %5097 = vmatprep.subr.bf16.mxu0 %v7521_v10  ;;  %v7576_v48 = vld [vmem:[#allocation16 + $0x340] ss:$24 sps:$4 sm:$0xff]   ;;  %v7581_v10 = vld [vmem:[#allocation16 + $0x374] ss:$24 sps:$4 sm:$0xff]  }
 0x6f0   :  { %5220 = vmatprep.subr.bf16.mxu1 %v7524_v12  ;;  %v5380_v12 = vld [vmem:[%s8977_s11 + $0xa0] sm:$0xff] }
 0x6f2   :  { %5098 = vmatpush1.bf16.msra.mxu0 %v7519_v14  ;;  %v5381_v14 = vld [vmem:[%s8977_s11 + $0xa8] sm:$0xff] }
 0x6f3   :  { %5221 = vmatpush1.bf16.msra.mxu1 %v7522_v22  ;;  %5231 = vmatprep.subr.bf16.mxu0 %v7527_v30  ;;  %v6636_v22 = vpack.c.bf16 %v5381_v14, %v5380_v12  ;;  %v5382_v30 = vld [vmem:[%s8977_s11 + $0xb0] sm:$0xff]  ;;  %v7603_v12 = vld [vmem:[#allocation16 + $0x4f0] ss:$24 sps:$4 sm:$0xff]   ;;  %v7608_v14 = vld [vmem:[#allocation16 + $0x524] ss:$24 sps:$4 sm:$0xff]  }
 0x6f4   :  { %6629 = vmatprep.subr.bf16.mxu1 %v6628_v55  ;;  %v7591_v55 = vld [vmem:[#allocation16 + $0x430] ss:$24 sps:$4 sm:$0xff]  }
 0x6f5   :  { %5100 = vmatmul.mubr.bf16.vlgmr.msra.gmra.mrb[16].mxu0 %v8638_v18 }
 0x6f6   :  { %5223 = vmatmul.mubr.bf16.vlgmr.msra.gmra.mrb[16].mxu1 %v8638_v18  ;;  %5232 = vmatpush1.bf16.msra.mxu0 %v7525_v17  ;;  %v5383_v17 = vld [vmem:[%s8977_s11 + $0xb8] sm:$0xff] }
 0x6f7   :  { %5263 = vmatprep.mubr.bf16.mxu0 %v8603_v29  ;;  %5233 = vmatprep.subr.bf16.mxu0 %v7530_v44  ;;  %v7543_v29 = vld [vmem:[#allocation16 + $0x130] ss:$24 sps:$4 sm:$0xff]  }
 0x6f8   :  { %6631 = vmatpush3.bf16.msra.mxu1 %v6630_v59  ;;  %v7596_v59 = vld [vmem:[#allocation16 + $0x464] ss:$24 sps:$4 sm:$0xff]  }
 0x6f9   :  { %6633 = vmatprep.subr.bf16.mxu1 %v6632_v3  ;;  %v7594_v3 = vld [vmem:[#allocation16 + $0x460] ss:$24 sps:$4 sm:$0xff]  }
 0x6fa   :  { %5234 = vmatpush1.bf16.msra.mxu0 %v7528_v25  ;;  %v6640_v25 = vpack.c.bf16 %v5383_v17, %v5382_v30  ;;  %v7614_v30 = vld [vmem:[#allocation16 + $0x584] ss:$24 sps:$4 sm:$0xff]   ;;  %v7612_v17 = vld [vmem:[#allocation16 + $0x580] ss:$24 sps:$4 sm:$0xff]  }
 0x6fb   :  { %5235 = vmatprep.subr.bf16.mxu0 %v7533_v19  ;;  %v5367_v19 = vld [vmem:[%s8977_s11 + $0x38] sm:$0xff] }
 0x6fc   :  { %6635 = vmatpush3.bf16.msra.mxu1 %v6634_v7  ;;  %v7602_v7 = vld [vmem:[#allocation16 + $0x4c4] ss:$24 sps:$4 sm:$0xff]  }
 0x6fd   :  { %6637 = vmatprep.subr.bf16.mxu1 %v6636_v22  ;;  %v7611_v22 = vld [vmem:[#allocation16 + $0x554] ss:$24 sps:$4 sm:$0xff]  }
 0x6fe   :  { %5236 = vmatpush1.bf16.msra.mxu0 %v7531_v20  ;;  %v5384_v20 = vld [vmem:[%s8977_s11 + $0xc0] sm:$0xff] }
 0x6ff   :  { %5237 = vmatprep.subr.bf16.mxu0 %v7536_v21  ;;  %v5385_v21 = vld [vmem:[%s8977_s11 + $0xc8] sm:$0xff] }
 0x702   :  { %5238 = vmatpush1.bf16.msra.mxu0 %v7534_v32 }
 0x703   :  { %5239 = vmatprep.subr.bf16.mxu0 %v7539_v23  ;;  %v7579_v23 = vld [vmem:[#allocation16 + $0x370] ss:$24 sps:$4 sm:$0xff]  }
 0x706   :  { %5240 = vmatpush1.bf16.msra.mxu0 %v7537_v24  ;;  %v6644_v24 = vpack.c.bf16 %v5385_v21, %v5384_v20  ;;  %v7623_v20 = vld [vmem:[#allocation16 + $0x614] ss:$24 sps:$4 sm:$0xff]   ;;  %v7621_v21 = vld [vmem:[#allocation16 + $0x610] ss:$24 sps:$4 sm:$0xff]  }
 0x707   :  { %5241 = vmatprep.subr.bf16.mxu0 %v7542_v16  ;;  %v5368_v16 = vld [vmem:[%s8977_s11 + $0x40] sm:$0xff] }
 0x70a   :  { %5242 = vmatpush1.bf16.msra.mxu0 %v7540_v61  ;;  %v5369_v61 = vld [vmem:[%s8977_s11 + $0x48] sm:$0xff] }
 0x70b   :  { %5243 = vmatprep.subr.bf16.mxu0 %v7545_v26  ;;  %v7584_v26 = vld [vmem:[#allocation16 + $0x3a4] ss:$24 sps:$4 sm:$0xff]  }
 0x70e   :  { %5244 = vmatpush1.bf16.msra.mxu0 %v7543_v29  ;;  %v5386_v29 = vld [vmem:[%s8977_s11 + $0xd0] sm:$0xff] }
 0x70f   :  { %5245 = vmatprep.subr.bf16.mxu0 %v7548_v27  ;;  %v5387_v27 = vld [vmem:[%s8977_s11 + $0xd8] sm:$0xff] }
 0x712   :  { %5246 = vmatpush1.bf16.msra.mxu0 %v7546_v11  ;;  %v6646_v11 = vpack.c.bf16 %v5369_v61, %v5368_v16  ;;  %v7627_v16 = vld [vmem:[#allocation16 + $0x670] ss:$24 sps:$4 sm:$0xff]   ;;  %v7632_v61 = vld [vmem:[#allocation16 + $0x6a4] ss:$24 sps:$4 sm:$0xff]  }
 0x713   :  { %5247 = vmatprep.subr.bf16.mxu0 %v7551_v28  ;;  %v7582_v28 = vld [vmem:[#allocation16 + $0x3a0] ss:$24 sps:$4 sm:$0xff]  }
 0x716   :  { %5248 = vmatpush1.bf16.msra.mxu0 %v7549_v34  ;;  %v6648_v34 = vpack.c.bf16 %v5387_v27, %v5386_v29  ;;  %v7635_v29 = vld [vmem:[#allocation16 + $0x6d4] ss:$24 sps:$4 sm:$0xff]   ;;  %v7633_v27 = vld [vmem:[#allocation16 + $0x6d0] ss:$24 sps:$4 sm:$0xff]  }
 0x717   :  { %5249 = vmatprep.subr.bf16.mxu0 %v7554_v35  ;;  %v5370_v35 = vld [vmem:[%s8977_s11 + $0x50] sm:$0xff] }
 0x71a   :  { %5250 = vmatpush1.bf16.msra.mxu0 %v7552_v38  ;;  %v5371_v38 = vld [vmem:[%s8977_s11 + $0x58] sm:$0xff] }
 0x71b   :  { %5251 = vmatprep.subr.bf16.mxu0 %v7557_v60  ;;  %v7587_v60 = vld [vmem:[#allocation16 + $0x3d4] ss:$24 sps:$4 sm:$0xff]  }
 0x71e   :  { %5252 = vmatpush1.bf16.msra.mxu0 %v7555_v39  ;;  %v5388_v39 = vld [vmem:[%s8977_s11 + $0xe0] sm:$0xff] }
 0x71f   :  { %5253 = vmatprep.subr.bf16.mxu0 %v7560_v40  ;;  %v5389_v40 = vld [vmem:[%s8977_s11 + $0xe8] sm:$0xff] }
 0x722   :  { %5254 = vmatpush1.bf16.msra.mxu0 %v7558_v62  ;;  %v6650_v62 = vpack.c.bf16 %v5371_v38, %v5370_v35  ;;  %v7642_v35 = vld [vmem:[#allocation16 + $0x760] ss:$24 sps:$4 sm:$0xff]   ;;  %v7647_v38 = vld [vmem:[#allocation16 + $0x794] ss:$24 sps:$4 sm:$0xff]  }
 0x723   :  { %5255 = vmatprep.subr.bf16.mxu0 %v7563_v41  ;;  %v7585_v41 = vld [vmem:[#allocation16 + $0x3d0] ss:$24 sps:$4 sm:$0xff]  }
 0x726   :  { %5256 = vmatpush1.bf16.msra.mxu0 %v7561_v47  ;;  %v6652_v47 = vpack.c.bf16 %v5389_v40, %v5388_v39  ;;  %v7650_v39 = vld [vmem:[#allocation16 + $0x7c4] ss:$24 sps:$4 sm:$0xff]   ;;  %v7648_v40 = vld [vmem:[#allocation16 + $0x7c0] ss:$24 sps:$4 sm:$0xff]  }
 0x727   :  { %5257 = vmatprep.subr.bf16.mxu0 %v7566_v45  ;;  %v5372_v45 = vld [vmem:[%s8977_s11 + $0x60] sm:$0xff] }
 0x72a   :  { %5258 = vmatpush1.bf16.msra.mxu0 %v7564_v46  ;;  %v5373_v46 = vld [vmem:[%s8977_s11 + $0x68] sm:$0xff] }
 0x72b   :  { %5259 = vmatprep.subr.bf16.mxu0 %v7569_v0  ;;  %v7590_v0 = vld [vmem:[#allocation16 + $0x404] ss:$24 sps:$4 sm:$0xff]  }
 0x72e   :  { %5260 = vmatpush1.bf16.msra.mxu0 %v7567_v50  ;;  %v6654_v50 = vpack.c.bf16 %v5373_v46, %v5372_v45  ;;  %v7654_v45 = vld [vmem:[#allocation16 + $0x820] ss:$24 sps:$4 sm:$0xff]   ;;  %v7659_v46 = vld [vmem:[#allocation16 + $0x854] ss:$24 sps:$4 sm:$0xff]  }
 0x72f   :  { %5261 = vmatprep.subr.bf16.mxu0 %v7572_v13  ;;  %v7588_v13 = vld [vmem:[#allocation16 + $0x400] ss:$24 sps:$4 sm:$0xff]  }
 0x732   :  { %5262 = vmatpush1.bf16.msra.mxu0 %v7570_v54  ;;  %v5391_v54 = vld [vmem:[%s8977_s11 + $0xf8] sm:$0xff] }
 0x733   :  { %5272 = vmatprep.subr.bf16.mxu0 %v7575_v58  ;;  %v6656_v56 = vpack.c.bf16 %v5391_v54, %v5390_v53  ;;  %v5375_v58 = vld [vmem:[%s8977_s11 + $0x78] sm:$0xff]  ;;  %v7663_v53 = vld [vmem:[#allocation16 + $0x8b0] ss:$24 sps:$4 sm:$0xff]  }
 0x734   :  { %v6658_v49 = vpack.c.bf16 %v5375_v58, %v5374_v57  ;;  %v7668_v54 = vld [vmem:[#allocation16 + $0x8e4] ss:$24 sps:$4 sm:$0xff]  }
 0x735   :  { %5264 = vmatmul.mubr.bf16.vlgmr.msra.gmra.mrb[20].mxu0 %v8607_v36  ;;  %v5365_v36 = vld [vmem:[%s8977_s11 + $0x28] sm:$0xff] }
 0x736   :  { %5273 = vmatpush1.bf16.msra.mxu0 %v7573_v2  ;;  %5304 = vmatprep.mubr.bf16.mxu0 %v8613_v42  ;;  %v6638_v44 = vpack.c.bf16 %v5365_v36, %v5364_v15  ;;  %v5366_v42 = vld [vmem:[%s8977_s11 + $0x30] sm:$0xff]  ;;  %v5409_v2 = vld [vmem:[%s8977_s11 + $0x188] sm:$0xff] }
 0x737   :  { %5274 = vmatprep.subr.bf16.mxu0 %v7578_v6  ;;  %v6642_v32 = vpack.c.bf16 %v5367_v19, %v5366_v42  ;;  %v6660_v4 = vpack.c.bf16 %v5409_v2, %v5408_v1  ;;  %v7597_v6 = vld [vmem:[#allocation16 + $0x490] ss:$24 sps:$4 sm:$0xff]   ;;  %v7606_v15 = vld [vmem:[#allocation16 + $0x520] ss:$24 sps:$4 sm:$0xff]   ;;  %v7620_v42 = vld [vmem:[#allocation16 + $0x5e4] ss:$24 sps:$4 sm:$0xff]  }
 0x738   :  { %6639 = vmatpush3.bf16.msra.mxu1 %v6638_v44  ;;  %v7609_v36 = vld [vmem:[#allocation16 + $0x550] ss:$24 sps:$4 sm:$0xff]   ;;  %v7617_v44 = vld [vmem:[#allocation16 + $0x5b4] ss:$24 sps:$4 sm:$0xff]   ;;  %v7618_v19 = vld [vmem:[#allocation16 + $0x5e0] ss:$24 sps:$4 sm:$0xff]  }
 0x739   :  { %6641 = vmatprep.subr.bf16.mxu1 %v6640_v25  ;;  %v7615_v25 = vld [vmem:[#allocation16 + $0x5b0] ss:$24 sps:$4 sm:$0xff]  }
 0x73a   :  { %5275 = vmatpush1.bf16.msra.mxu0 %v7576_v48  ;;  %v7600_v48 = vld [vmem:[#allocation16 + $0x4c0] ss:$24 sps:$4 sm:$0xff]  }
 0x73b   :  { %5276 = vmatprep.subr.bf16.mxu0 %v7581_v10  ;;  %v7605_v10 = vld [vmem:[#allocation16 + $0x4f4] ss:$24 sps:$4 sm:$0xff]  }
 0x73c   :  { %6643 = vmatpush3.bf16.msra.mxu1 %v6642_v32  ;;  %v7626_v32 = vld [vmem:[#allocation16 + $0x644] ss:$24 sps:$4 sm:$0xff]  }
 0x73d   :  { %6645 = vmatprep.subr.bf16.mxu1 %v6644_v24  ;;  %v7629_v24 = vld [vmem:[#allocation16 + $0x674] ss:$24 sps:$4 sm:$0xff]  }
 0x73e   :  { %5277 = vmatpush1.bf16.msra.mxu0 %v7579_v23  ;;  %v7624_v23 = vld [vmem:[#allocation16 + $0x640] ss:$24 sps:$4 sm:$0xff]  }
 0x73f   :  { %5278 = vmatprep.subr.bf16.mxu0 %v7584_v26  ;;  %v7630_v26 = vld [vmem:[#allocation16 + $0x6a0] ss:$24 sps:$4 sm:$0xff]  }
 0x740   :  { %6647 = vmatpush3.bf16.msra.mxu1 %v6646_v11  ;;  %v7638_v11 = vld [vmem:[#allocation16 + $0x704] ss:$24 sps:$4 sm:$0xff]  }
 0x741   :  { %6649 = vmatprep.subr.bf16.mxu1 %v6648_v34  ;;  %v7644_v34 = vld [vmem:[#allocation16 + $0x764] ss:$24 sps:$4 sm:$0xff]  }
 0x742   :  { %5279 = vmatpush1.bf16.msra.mxu0 %v7582_v28  ;;  %v7641_v28 = vld [vmem:[#allocation16 + $0x734] ss:$24 sps:$4 sm:$0xff]  }
 0x743   :  { %5280 = vmatprep.subr.bf16.mxu0 %v7587_v60  ;;  %v7645_v60 = vld [vmem:[#allocation16 + $0x790] ss:$24 sps:$4 sm:$0xff]  }
 0x744   :  { %6651 = vmatpush3.bf16.msra.mxu1 %v6650_v62  ;;  %v7653_v62 = vld [vmem:[#allocation16 + $0x7f4] ss:$24 sps:$4 sm:$0xff]  }
 0x745   :  { %6653 = vmatprep.subr.bf16.mxu1 %v6652_v47  ;;  %v7656_v47 = vld [vmem:[#allocation16 + $0x824] ss:$24 sps:$4 sm:$0xff]  }
 0x746   :  { %5281 = vmatpush1.bf16.msra.mxu0 %v7585_v41  ;;  %v7651_v41 = vld [vmem:[#allocation16 + $0x7f0] ss:$24 sps:$4 sm:$0xff]  }
 0x747   :  { %5282 = vmatprep.subr.bf16.mxu0 %v7590_v0  ;;  %v7657_v0 = vld [vmem:[#allocation16 + $0x850] ss:$24 sps:$4 sm:$0xff]  }
 0x748   :  { %6655 = vmatpush3.bf16.msra.mxu1 %v6654_v50  ;;  %v7662_v50 = vld [vmem:[#allocation16 + $0x884] ss:$24 sps:$4 sm:$0xff]  }
 0x749   :  { %6657 = vmatprep.subr.bf16.mxu1 %v6656_v56  ;;  %v8750_v56 = vld [vmem:[#allocation17] sm:$0x3f] }
 0x74a   :  { %5283 = vmatpush1.bf16.msra.mxu0 %v7588_v13  ;;  %v7660_v13 = vld [vmem:[#allocation16 + $0x880] ss:$24 sps:$4 sm:$0xff]   ;;  %v3518_v57 = vrot.slane %v8750_v56, %v8203_v31  ;;  %v3522_v58 = vrot.slane %v8750_v56, %v8208_v33 }
 0x74b   :  { %5284 = vmatprep.subr.bf16.mxu0 %v7593_v52  ;;  %v7665_v52 = vld [vmem:[#allocation16 + $0x8b4] ss:$24 sps:$4 sm:$0xff]  }
 0x74c   :  { %6659 = vmatpush3.bf16.msra.mxu1 %v6658_v49  ;;  %v5410_v33 = vld [vmem:[%s8977_s11 + $0x190] sm:$0xff] }
 0x74d   :  { %6661 = vmatprep.subr.bf16.mxu1 %v6660_v4  ;;  %v5393_v4 = vld [vmem:[%s8977_s11 + $0x108] sm:$0xff] }
 0x74e   :  { %5285 = vmatpush1.bf16.msra.mxu0 %v7591_v55  ;;  %v7666_v55 = vld [vmem:[#allocation16 + $0x8e0] ss:$24 sps:$4 sm:$0xff]  }
 0x74f   :  { %5286 = vmatprep.subr.bf16.mxu0 %v7596_v59  ;;  %v3530_v59 = vrot.slane %v8750_v56, %v8215_v37  ;;  %v5411_v37 = vld [vmem:[%s8977_s11 + $0x198] sm:$0xff] }
 0x752   :  { %5287 = vmatpush1.bf16.msra.mxu0 %v7594_v3 }
 0x753   :  { %5288 = vmatprep.subr.bf16.mxu0 %v7599_v5 }
 0x756   :  { %5289 = vmatpush1.bf16.msra.mxu0 %v7597_v6 }
 0x757   :  { %5290 = vmatprep.subr.bf16.mxu0 %v7602_v7 }
 0x75a   :  { %5291 = vmatpush1.bf16.msra.mxu0 %v7600_v48 }
 0x75b   :  { %5292 = vmatprep.subr.bf16.mxu0 %v7605_v10 }
 0x75e   :  { %5293 = vmatpush1.bf16.msra.mxu0 %v7603_v12 }
 0x75f   :  { %5294 = vmatprep.subr.bf16.mxu0 %v7608_v14 }
 0x762   :  { %5295 = vmatpush1.bf16.msra.mxu0 %v7606_v15 }
 0x763   :  { %5296 = vmatprep.subr.bf16.mxu0 %v7611_v22 }
 0x766   :  { %5297 = vmatpush1.bf16.msra.mxu0 %v7609_v36  ;;  %v6664_v36 = vpack.c.bf16 %v5411_v37, %v5410_v33  ;;  %v5426_v37 = vld [vmem:[%s8977_s11 + $0x210] sm:$0xff] }
 0x767   :  { %5298 = vmatprep.subr.bf16.mxu0 %v7614_v30  ;;  %v5394_v30 = vld [vmem:[%s8977_s11 + $0x110] sm:$0xff] }
 0x76a   :  { %5299 = vmatpush1.bf16.msra.mxu0 %v7612_v17  ;;  %v5395_v17 = vld [vmem:[%s8977_s11 + $0x118] sm:$0xff] }
 0x76b   :  { %5300 = vmatprep.subr.bf16.mxu0 %v7617_v44 }
 0x76e   :  { %5301 = vmatpush1.bf16.msra.mxu0 %v7615_v25  ;;  %v5412_v25 = vld [vmem:[%s8977_s11 + $0x1a0] sm:$0xff] }
 0x76f   :  { %5302 = vmatprep.subr.bf16.mxu0 %v7620_v42  ;;  %v5413_v42 = vld [vmem:[%s8977_s11 + $0x1a8] sm:$0xff] }
 0x772   :  { %5303 = vmatpush1.bf16.msra.mxu0 %v7618_v19  ;;  %v6666_v19 = vpack.c.bf16 %v5395_v17, %v5394_v30  ;;  %v5447_v30 = vld [vmem:[%s8977_s11 + $0x2b8] sm:$0xff] }
 0x773   :  { %5313 = vmatprep.subr.bf16.mxu0 %v7623_v20  ;;  %v6668_v20 = vpack.c.bf16 %v5413_v42, %v5412_v25  ;;  %v5430_v25 = vld [vmem:[%s8977_s11 + $0x230] sm:$0xff]  ;;  %v5431_v42 = vld [vmem:[%s8977_s11 + $0x238] sm:$0xff] }
 0x775   :  { %5305 = vmatmul.mubr.bf16.vlgmr.msra.gmra.mrb[20].mxu0 %v8627_v63  ;;  %v7636_v63 = vld [vmem:[#allocation16 + $0x700] ss:$24 sps:$4 sm:$0xff]  }
 0x776   :  { %5314 = vmatpush1.bf16.msra.mxu0 %v7621_v21  ;;  %5345 = vmatprep.mubr.bf16.mxu0 %v8629_v9  ;;  %v7639_v9 = vld [vmem:[#allocation16 + $0x730] ss:$24 sps:$4 sm:$0xff]  }
 0x777   :  { %5315 = vmatprep.subr.bf16.mxu0 %v7626_v32  ;;  %v5396_v21 = vld [vmem:[%s8977_s11 + $0x120] sm:$0xff]  ;;  %v5397_v32 = vld [vmem:[%s8977_s11 + $0x128] sm:$0xff] }
 0x77a   :  { %5316 = vmatpush1.bf16.msra.mxu0 %v7624_v23  ;;  %v5414_v23 = vld [vmem:[%s8977_s11 + $0x1b0] sm:$0xff] }
 0x77b   :  { %5317 = vmatprep.subr.bf16.mxu0 %v7629_v24  ;;  %v5415_v24 = vld [vmem:[%s8977_s11 + $0x1b8] sm:$0xff] }
 0x77e   :  { %5318 = vmatpush1.bf16.msra.mxu0 %v7627_v16  ;;  %v6670_v16 = vpack.c.bf16 %v5397_v32, %v5396_v21  ;;  %v6706_v21 = vpack.c.bf16 %v5431_v42, %v5430_v25 }
 0x77f   :  { %5319 = vmatprep.subr.bf16.mxu0 %v7632_v61  ;;  %v6672_v61 = vpack.c.bf16 %v5415_v24, %v5414_v23  ;;  %v5432_v23 = vld [vmem:[%s8977_s11 + $0x240] sm:$0xff]  ;;  %v5433_v24 = vld [vmem:[%s8977_s11 + $0x248] sm:$0xff] }
 0x782   :  { %5320 = vmatpush1.bf16.msra.mxu0 %v7630_v26  ;;  %v5398_v26 = vld [vmem:[%s8977_s11 + $0x130] sm:$0xff] }
 0x783   :  { %5321 = vmatprep.subr.bf16.mxu0 %v7635_v29  ;;  %v5399_v29 = vld [vmem:[%s8977_s11 + $0x138] sm:$0xff] }
 0x786   :  { %5322 = vmatpush1.bf16.msra.mxu0 %v7633_v27  ;;  %v5416_v27 = vld [vmem:[%s8977_s11 + $0x1c0] sm:$0xff] }
 0x787   :  { %5323 = vmatprep.subr.bf16.mxu0 %v7638_v11  ;;  %v5417_v11 = vld [vmem:[%s8977_s11 + $0x1c8] sm:$0xff] }
 0x78a   :  { %5324 = vmatpush1.bf16.msra.mxu0 %v7636_v63  ;;  %v6674_v63 = vpack.c.bf16 %v5399_v29, %v5398_v26  ;;  %v6710_v26 = vpack.c.bf16 %v5433_v24, %v5432_v23 }
 0x78b   :  { %5325 = vmatprep.subr.bf16.mxu0 %v7641_v28  ;;  %v6676_v28 = vpack.c.bf16 %v5417_v11, %v5416_v27  ;;  %v5434_v27 = vld [vmem:[%s8977_s11 + $0x250] sm:$0xff]  ;;  %v5435_v11 = vld [vmem:[%s8977_s11 + $0x258] sm:$0xff] }
 0x78e   :  { %5326 = vmatpush1.bf16.msra.mxu0 %v7639_v9  ;;  %v5400_v9 = vld [vmem:[%s8977_s11 + $0x140] sm:$0xff] }
 0x78f   :  { %5327 = vmatprep.subr.bf16.mxu0 %v7644_v34  ;;  %v5401_v34 = vld [vmem:[%s8977_s11 + $0x148] sm:$0xff] }
 0x792   :  { %5328 = vmatpush1.bf16.msra.mxu0 %v7642_v35  ;;  %v5418_v35 = vld [vmem:[%s8977_s11 + $0x1d0] sm:$0xff] }
 0x793   :  { %5329 = vmatprep.subr.bf16.mxu0 %v7647_v38  ;;  %v5419_v38 = vld [vmem:[%s8977_s11 + $0x1d8] sm:$0xff] }
 0x796   :  { %5330 = vmatpush1.bf16.msra.mxu0 %v7645_v60  ;;  %v6678_v60 = vpack.c.bf16 %v5401_v34, %v5400_v9  ;;  %v6714_v9 = vpack.c.bf16 %v5435_v11, %v5434_v27 }
 0x797   :  { %5331 = vmatprep.subr.bf16.mxu0 %v7650_v39  ;;  %v6680_v39 = vpack.c.bf16 %v5419_v38, %v5418_v35  ;;  %v5436_v35 = vld [vmem:[%s8977_s11 + $0x260] sm:$0xff]  ;;  %v5437_v38 = vld [vmem:[%s8977_s11 + $0x268] sm:$0xff] }
 0x79a   :  { %5332 = vmatpush1.bf16.msra.mxu0 %v7648_v40  ;;  %v5402_v40 = vld [vmem:[%s8977_s11 + $0x150] sm:$0xff] }
 0x79b   :  { %5333 = vmatprep.subr.bf16.mxu0 %v7653_v62  ;;  %v5403_v62 = vld [vmem:[%s8977_s11 + $0x158] sm:$0xff] }
 0x79e   :  { %5334 = vmatpush1.bf16.msra.mxu0 %v7651_v41  ;;  %v5420_v41 = vld [vmem:[%s8977_s11 + $0x1e0] sm:$0xff] }
 0x79f   :  { %5335 = vmatprep.subr.bf16.mxu0 %v7656_v47  ;;  %v5421_v47 = vld [vmem:[%s8977_s11 + $0x1e8] sm:$0xff] }
 0x7a2   :  { %5336 = vmatpush1.bf16.msra.mxu0 %v7654_v45  ;;  %v6682_v45 = vpack.c.bf16 %v5403_v62, %v5402_v40  ;;  %v5455_v40 = vld [vmem:[%s8977_s11 + $0x2f8] sm:$0xff] }
 0x7a3   :  { %5337 = vmatprep.subr.bf16.mxu0 %v7659_v46  ;;  %v6684_v46 = vpack.c.bf16 %v5421_v47, %v5420_v41  ;;  %v5438_v41 = vld [vmem:[%s8977_s11 + $0x270] sm:$0xff]  ;;  %v5439_v47 = vld [vmem:[%s8977_s11 + $0x278] sm:$0xff] }
 0x7a6   :  { %5338 = vmatpush1.bf16.msra.mxu0 %v7657_v0  ;;  %v5404_v0 = vld [vmem:[%s8977_s11 + $0x160] sm:$0xff] }
 0x7a7   :  { %5339 = vmatprep.subr.bf16.mxu0 %v7662_v50  ;;  %v5405_v50 = vld [vmem:[%s8977_s11 + $0x168] sm:$0xff] }
 0x7aa   :  { %5340 = vmatpush1.bf16.msra.mxu0 %v7660_v13  ;;  %v5422_v13 = vld [vmem:[%s8977_s11 + $0x1f0] sm:$0xff] }
 0x7ab   :  { %5341 = vmatprep.subr.bf16.mxu0 %v7665_v52  ;;  %v5423_v52 = vld [vmem:[%s8977_s11 + $0x1f8] sm:$0xff] }
 0x7ae   :  { %5342 = vmatpush1.bf16.msra.mxu0 %v7663_v53  ;;  %v6686_v53 = vpack.c.bf16 %v5405_v50, %v5404_v0  ;;  %v3538_v0 = vrot.slane %v8750_v56, %v8241_v51 }
 0x7af   :  { %5343 = vmatprep.subr.bf16.mxu0 %v7668_v54  ;;  %v3526_v54 = vrot.slane %v8750_v56, %v8238_v43 }
 0x7b2   :  { %5344 = vmatpush1.bf16.msra.mxu0 %v7666_v55  ;;  %v6688_v55 = vpack.c.bf16 %v5423_v52, %v5422_v13 }
 0x7b5   :  { %5346 = vmatmul.mubr.bf16.vlgmr.msra.gmra.mrb[20].mxu0 %v8638_v18  ;;  %v5392_v18 = vld [vmem:[%s8977_s11 + $0x100] sm:$0xff] }
 0x7b6   :  { %v6662_v15 = vpack.c.bf16 %v5393_v4, %v5392_v18  ;;  %v5424_v18 = vld [vmem:[%s8977_s11 + $0x200] sm:$0xff]  ;;  %v5425_v4 = vld [vmem:[%s8977_s11 + $0x208] sm:$0xff] }
 0x7c8   :  { %v5101_v49 = vpop.f32.mrb[16].mxu0 }
 0x7c9   :  { %v6730_v1 = vadd.f32 %v5101_v49, %v3518_v57  ;;  %v8758_v2 = vpop.f32.mrb[16].mxu1  ;;  %v5103_v3 = vpop.f32.mrb[17].mxu0  ;;  %v5406_v57 = vld [vmem:[%s8977_s11 + $0x170] sm:$0xff]  ;;  %v5441_v49 = vld [vmem:[%s8977_s11 + $0x288] sm:$0xff] }
 0x7ca   :  { %v6731_v31 = vadd.f32 %v5103_v3, %v3522_v58  ;;  %v5226_v5 = vpop.f32.mrb[17].mxu1  ;;  %v5105_v6 = vpop.f32.mrb[18].mxu0  ;;  %v5407_v58 = vld [vmem:[%s8977_s11 + $0x178] sm:$0xff] }
 0x7cb   :  { %v6733_v7 = vadd.f32 %v5226_v5, %v3530_v59  ;;  %v5228_v48 = vpop.f32.mrb[18].mxu1  ;;  %v5106_v10 = vpop.f32.mrb[19].mxu0  ;;  %v5354_v22 = vmax.f32 %v6730_v1, 0.0  ;;  %v5440_v59 = vld [vmem:[%s8977_s11 + $0x280] sm:$0xff]  ;;  %v6690_v43 = vpack.c.bf16 %v5407_v58, %v5406_v57  ;;  %v6732_v1 = vadd.f32 %v8758_v2, %v3526_v54  ;;  %v5443_v5 = vld [vmem:[%s8977_s11 + $0x298] sm:$0xff] }
 0x7cc   :  { %v5355_v12 = vmax.f32 %v6731_v31, 0.0  ;;  %v5229_v14 = vpop.f32.mrb[19].mxu1  ;;  %v6692_v3 = vpack.c.bf16 %v5441_v49, %v5440_v59  ;;  %v5442_v31 = vld [vmem:[%s8977_s11 + $0x290] sm:$0xff]  ;;  %v6694_v2 = vpack.c.bf16 %v5425_v4, %v5424_v18  ;;  %v5444_v48 = vld [vmem:[%s8977_s11 + $0x2a0] sm:$0xff]  ;;  %v5445_v10 = vld [vmem:[%s8977_s11 + $0x2a8] sm:$0xff] }
 0x7cd   :  { %v5357_v44 = vmax.f32 %v6733_v7, 0.0  ;;  %v5356_v6 = vmax.f32 %v6732_v1, 0.0  ;;  %v6696_v33 = vpack.c.bf16 %v5443_v5, %v5442_v31  ;;  %v5427_v7 = vld [vmem:[%s8977_s11 + $0x218] sm:$0xff]  ;;  %v6700_v14 = vpack.c.bf16 %v5445_v10, %v5444_v48  ;;  %v6297_v1 = vld [vmem:[#allocation19] ss:$0 sm:$0xff] }
 0x7ce   :  { %5527 = vmatprep.mubr.f32.mxu1 %v5355_v12  ;;  %v6698_v12 = vpack.c.bf16 %v5427_v7, %v5426_v37  ;;  %v5680_v37 = vpop.permute.xlu0 %5679 }
 0x7cf   :  { %5528 = vmatmul.mubr.f32.vlgmr.msra.gmra.mrb[6].mxu1 %v5354_v22  ;;  %v5429_v22 = vld [vmem:[%s8977_s11 + $0x228] sm:$0xff] }
 0x7d0   :  { %6663 = vmatpush3.bf16.msra.mxu1 %v6662_v15  ;;  %5597 = vmatprep.mubr.f32.mxu1 %v5357_v44  ;;  %v5428_v15 = vld [vmem:[%s8977_s11 + $0x220] sm:$0xff] }
 0x7d1   :  { %6665 = vmatprep.subr.bf16.mxu1 %v6664_v36  ;;  %v5446_v36 = vld [vmem:[%s8977_s11 + $0x2b0] sm:$0xff]  ;;  %v6702_v17 = vpack.c.bf16 %v5429_v22, %v5428_v15 }
 0x7d2   :  { %v6704_v44 = vpack.c.bf16 %v5447_v30, %v5446_v36 }
 0x7d4   :  { %6667 = vmatpush3.bf16.msra.mxu1 %v6666_v19  ;;  %v5448_v19 = vld [vmem:[%s8977_s11 + $0x2c0] sm:$0xff] }
 0x7d5   :  { %6669 = vmatprep.subr.bf16.mxu1 %v6668_v20  ;;  %v5449_v20 = vld [vmem:[%s8977_s11 + $0x2c8] sm:$0xff] }
 0x7d6   :  { %v6708_v32 = vpack.c.bf16 %v5449_v20, %v5448_v19 }
 0x7d8   :  { %6671 = vmatpush3.bf16.msra.mxu1 %v6670_v16  ;;  %v5450_v16 = vld [vmem:[%s8977_s11 + $0x2d0] sm:$0xff] }
 0x7d9   :  { %6673 = vmatprep.subr.bf16.mxu1 %v6672_v61  ;;  %v5451_v61 = vld [vmem:[%s8977_s11 + $0x2d8] sm:$0xff] }
 0x7da   :  { %v6712_v29 = vpack.c.bf16 %v5451_v61, %v5450_v16 }
 0x7dc   :  { %6675 = vmatpush3.bf16.msra.mxu1 %v6674_v63  ;;  %v5452_v63 = vld [vmem:[%s8977_s11 + $0x2e0] sm:$0xff] }
 0x7dd   :  { %6677 = vmatprep.subr.bf16.mxu1 %v6676_v28  ;;  %v5453_v28 = vld [vmem:[%s8977_s11 + $0x2e8] sm:$0xff] }
 0x7de   :  { %v6716_v34 = vpack.c.bf16 %v5453_v28, %v5452_v63 }
 0x7e0   :  { %6679 = vmatpush3.bf16.msra.mxu1 %v6678_v60  ;;  %v6718_v60 = vpack.c.bf16 %v5437_v38, %v5436_v35 }
 0x7e1   :  { %6681 = vmatprep.subr.bf16.mxu1 %v6680_v39  ;;  %v5454_v39 = vld [vmem:[%s8977_s11 + $0x2f0] sm:$0xff]  ;;  %s7972_s11 = smov [#allocation20]  }
 0x7e2   :  { %v6720_v62 = vpack.c.bf16 %v5455_v40, %v5454_v39  ;;  %s5694_s14 = sshll.u32 %s7972_s11, 4  ;;  %s5695_s14 = int_to_ptr.vmem [resolvable:$true] %s5694_s14 }
 0x7e3   :  { %s7916_s21 = scalar_lea.vmem %s5695_s14, 128  ;;  %p7921_p5 = scmp.lt.s32.totalorder %s5695_s14, %s5695_s14 }
 0x7e4   :  { %6683 = vmatpush3.bf16.msra.mxu1 %v6682_v45  ;;  %v6722_v45 = vpack.c.bf16 %v5439_v47, %v5438_v41  ;;  %p7917_p4 = scmp.ne.s32.totalorder %s5695_s14, %s7916_s21  ;;  %p7922_p6 = scmp.lt.s32.totalorder %s7916_s21, %s7916_s21 }
 0x7e5   :  { %6685 = vmatprep.subr.bf16.mxu1 %v6684_v46  ;;  %v3534_v46 = vrot.slane %v8750_v56, %v8258_v8 }
 0x7e6   :  { %p7923_p7 = por %p7922_p6, %p7921_p5 }
 0x7e8   :  { %6687 = vmatpush3.bf16.msra.mxu1 %v6686_v53  ;;  %p7924_p8 = pnand %p7923_p7, %p7917_p4 }
 0x7e9   :  { %6689 = vmatprep.subr.bf16.mxu1 %v6688_v55 }
 0x7ec   :  { %6691 = vmatpush3.bf16.msra.mxu1 %v6690_v43 }
 0x7ed   :  { %6693 = vmatprep.subr.bf16.mxu1 %v6692_v3 }
 0x7ef   :  { %5598 = vmatmul.mubr.f32.vlgmr.msra.gmra.mrb[20].mxu1 %v5356_v6 }
 0x7f0   :  { %6695 = vmatpush3.bf16.msra.mxu1 %v6694_v2 }
 0x7f1   :  { %6697 = vmatprep.subr.bf16.mxu1 %v6696_v33  ;;  %v5676_v33 = vpop.permute.xlu1 %5675 }
 0x7f4   :  { %6699 = vmatpush3.bf16.msra.mxu1 %v6698_v12 }
 0x7f5   :  { %6701 = vmatprep.subr.bf16.mxu1 %v6700_v14 }
 0x7f8   :  { %6703 = vmatpush3.bf16.msra.mxu1 %v6702_v17 }
 0x7f9   :  { %6705 = vmatprep.subr.bf16.mxu1 %v6704_v44 }
 0x7fc   :  { %6707 = vmatpush3.bf16.msra.mxu1 %v6706_v21 }
 0x7fd   :  { %6709 = vmatprep.subr.bf16.mxu1 %v6708_v32 }
 0x800   :  { %6711 = vmatpush3.bf16.msra.mxu1 %v6710_v26 }
 0x801   :  { %6713 = vmatprep.subr.bf16.mxu1 %v6712_v29 }
 0x804   :  { %6715 = vmatpush3.bf16.msra.mxu1 %v6714_v9 }
 0x805   :  { %6717 = vmatprep.subr.bf16.mxu1 %v6716_v34 }
 0x808   :  { %6719 = vmatpush3.bf16.msra.mxu1 %v6718_v60 }
 0x809   :  { %6721 = vmatprep.subr.bf16.mxu1 %v6720_v62 }
 0x80c   :  { %6723 = vmatpush3.bf16.msra.mxu1 %v6722_v45 }
 0x888   :  { %v5347_v50 = vpop.f32.mrb[20].mxu0 }
 0x889   :  { %v6734_v13 = vadd.f32 %v5347_v50, %v3534_v46  ;;  %v5349_v52 = vpop.f32.mrb[21].mxu0 }
 0x88a   :  { %v6735_v53 = vadd.f32 %v5349_v52, %v3538_v0  ;;  %v5351_v54 = vpop.f32.mrb[22].mxu0 }
 0x88b   :  { %v5352_v55 = vpop.f32.mrb[23].mxu0  ;;  %v5358_v58 = vmax.f32 %v6734_v13, 0.0 }
 0x88c   :  { %v5359_v57 = vmax.f32 %v6735_v53, 0.0 }
 0x88e   :  { %5667 = vmatprep.mubr.f32.mxu1 %v5359_v57 }
 0x88f   :  { %5668 = vmatmul.mubr.f32.vlgmr.msra.gmra.mrb[22].mxu1 %v5358_v58 }
 0x8a2   :  { %v6435_v59 = vpop.f32.mrb[6].mxu1 }
 0x8a3   :  { %v6436_v49 = vpop.f32.mrb[7].mxu1 }
 0x8a4   :  { %v6437_v43 = vadd.f32 %v6436_v49, %v6435_v59 }
 0x8a6   :  { %v5530_v8 = vadd.f32 %v6437_v43, %v6297_v1 }
 0x8c2   :  { %v6470_v3 = vpop.f32.mrb[20].mxu1 }
 0x8c3   :  { %v6471_v18 = vpop.f32.mrb[21].mxu1 }
 0x8c4   :  { %v6472_v4 = vadd.f32 %v6471_v18, %v6470_v3 }
 0x8c6   :  { %v5600_v31 = vadd.f32 %v6472_v4, %v5530_v8 }
 0x962   :  { %v6505_v51 = vpop.f32.mrb[22].mxu1 }
 0x963   :  { %v6506_v56 = vpop.f32.mrb[23].mxu1 }
 0x964   :  { %v6507_v5 = vadd.f32 %v6506_v56, %v6505_v51 }
 0x966   :  { %v5670_v2 = vadd.f32 %v6507_v5, %v5600_v31 }
 0x968   :  { %7671 = vtanh.f32 %v5670_v2 }
 0x972   :  { %v7672_v6 = vpop.eup %7671 }
 0x973   :  { %v5683_v7 = vsel %vm5682_vm4, %v7672_v6, %v5676_v33 }
 0x974   :  { %v5685_v48 = vsel %vm5684_vm5, %v5683_v7, %v5680_v37 }
 0x975   :  { %v5686_v10 = vsel %vm2925_vm2, %v5685_v48, 0.0 }
 0x976   :  { %5687 = vst [vmem:[#allocation20] sm:$0xff] %v5686_v10 }
 0x977   :  { %7927 = shalt.err (!%p7924_p8)
}
 0x978   :  { %s7928_s16 = scalar_lea.hbm %s8979_s13, 128 }
 0x979   :  { %p7929_p9 = scmp.ne.s32.totalorder %s8979_s13, %s7928_s16  ;;  %p7932_p10 = scmp.lt.u32.totalorder %s7928_s16, %s8979_s13 }
 0x97b   :  { %p7934_p11 = pnand %p7932_p10, %p7929_p9 }
 0x97d   :  { %7937 = shalt.err (!%p7934_p11)
}
 0x97e   :  { %5697 = dma.vmem_to_hbm [thread:$0]  %s5695_s14, 128, %s8979_s13, [#allocation4]  }
 0x97f   :  { %7950 = dma.done.wait [#allocation4], 128  }
 0x980   :  { %7951 = vsyncadd [#allocation4], 4294967168 }
 0x981   :  { %5701 = vsyncpa [#allocation3], 1 }
 0x982   :  { %5702 = vsyncpa [#allocation6], 1 }
 0x983   :  { %5703 = vsyncpa [#allocation9], 1 }
 0x984   :  { %5704 = vsyncpa [#allocation12], 1 }
 0x985   :  { %5705 = vsyncpa [#allocation15], 1 }
 0x986   :  { %5706 = vsyncpa [#allocation18], 1 }
 0x987   :  { %5707 = vsyncpa [#allocation4], 1 }

</bundles_post_ra>
